<compile_context>
chip_gen: v6e
topology: v6e:2x2x1
jax: 0.10.0
libtpu: 0.0.40
codegen_flags: <defaults>
</compile_context>

<pallas_src>
import functools

import jax
import jax.numpy as jnp
from jax.experimental import pallas as pl
from jax.experimental.pallas import tpu as pltpu


def _round_up(x, m):
    return (x + m - 1) // m * m


# ---------------------------------------------------------------------------
# Pallas kernels
# ---------------------------------------------------------------------------
def _matmul_bias_relu_kernel(x_ref, w_ref, b_ref, o_ref):
    # x: (TM, K) bf16, w: (K, TN) bf16, b: (1, TN) f32 -> relu(x @ w + b)
    acc = jnp.dot(x_ref[...], w_ref[...], preferred_element_type=jnp.float32)
    acc = jnp.maximum(acc + b_ref[...], 0.0)
    o_ref[...] = acc.astype(o_ref.dtype)


def _fc_fused_kernel(x_ref, add_ref, w1a_ref, w1b_ref, b1_ref, w2_ref, b2_ref, o_ref):
    # Fused: relu(concat(x, add) @ W1 + b1) @ W2 + b2, with W1 split so the
    # concat never materializes.  All weights are VMEM-resident.
    h = jnp.dot(x_ref[...], w1a_ref[...], preferred_element_type=jnp.float32)
    h = h + add_ref[...].astype(jnp.float32) * w1b_ref[...]
    h = jnp.maximum(h + b1_ref[...], 0.0)
    o = jnp.dot(h.astype(w2_ref.dtype), w2_ref[...], preferred_element_type=jnp.float32)
    o_ref[...] = o + b2_ref[...]


# ---------------------------------------------------------------------------
# Pallas wrappers (tiled grids)
# ---------------------------------------------------------------------------
def _matmul_bias_relu(x, w, b, out_dtype=jnp.bfloat16):
    """x: (M, K) bf16, w: (K, Np) bf16 pre-packed, b: (1, Np) f32 -> (M, Np)."""
    M, K = x.shape
    Kw, Np = w.shape
    assert K == Kw, (K, Kw)

    TM = min(512, _round_up(M, 8))
    Mp = _round_up(M, TM)
    if Mp != M:
        x = jnp.pad(x, ((0, Mp - M), (0, 0)))
    TN = 256 if Np % 256 == 0 else 128

    out = pl.pallas_call(
        _matmul_bias_relu_kernel,
        out_shape=jax.ShapeDtypeStruct((Mp, Np), out_dtype),
        grid=(Mp // TM, Np // TN),
        in_specs=[
            pl.BlockSpec((TM, K), lambda i, j: (i, 0)),
            pl.BlockSpec((K, TN), lambda i, j: (0, j)),
            pl.BlockSpec((1, TN), lambda i, j: (0, j)),
        ],
        out_specs=pl.BlockSpec((TM, TN), lambda i, j: (i, j)),
        compiler_params=pltpu.CompilerParams(
            dimension_semantics=("parallel", "parallel")),
    )(x, w, b)
    return out[:M]


def _fc_fused(feat, add, w1a, w1b, b1, w2, b2):
    """feat: (B, 3136) bf16, add: (B, 1) bf16 -> (B, Np2) f32."""
    B, K = feat.shape
    Np2 = w2.shape[1]

    TM = min(512, _round_up(B, 8))
    Mp = _round_up(B, TM)
    if Mp != B:
        feat = jnp.pad(feat, ((0, Mp - B), (0, 0)))
        add = jnp.pad(add, ((0, Mp - B), (0, 0)))

    out = pl.pallas_call(
        _fc_fused_kernel,
        out_shape=jax.ShapeDtypeStruct((Mp, Np2), jnp.float32),
        grid=(Mp // TM,),
        in_specs=[
            pl.BlockSpec((TM, K), lambda i: (i, 0)),
            pl.BlockSpec((TM, 1), lambda i: (i, 0)),
            pl.BlockSpec(w1a.shape, lambda i: (0, 0)),
            pl.BlockSpec(w1b.shape, lambda i: (0, 0)),
            pl.BlockSpec(b1.shape, lambda i: (0, 0)),
            pl.BlockSpec(w2.shape, lambda i: (0, 0)),
            pl.BlockSpec(b2.shape, lambda i: (0, 0)),
        ],
        out_specs=pl.BlockSpec((TM, Np2), lambda i: (i, 0)),
        compiler_params=pltpu.CompilerParams(
            dimension_semantics=("parallel",)),
    )(feat, add, w1a, w1b, b1, w2, b2)
    return out[:B]


# ---------------------------------------------------------------------------
# im2col glue (plain JAX) — turns a VALID strided conv into one big matmul.
# Feature order is (kh, kw, C), matching the pre-packed conv weights.
# ---------------------------------------------------------------------------
def _im2col(x_nhwc, kh, kw, stride):
    B, H, W, C = x_nhwc.shape
    oh = (H - kh) // stride + 1
    ow = (W - kw) // stride + 1
    patches = []
    for i in range(kh):
        for j in range(kw):
            patches.append(
                x_nhwc[:, i:i + stride * oh:stride, j:j + stride * ow:stride, :]
            )
    p = jnp.stack(patches, axis=3)                       # (B, oh, ow, kh*kw, C)
    return p.reshape(B * oh * ow, kh * kw * C), oh, ow


def _conv2d_relu(x_nhwc, w_packed, b_packed, k, stride, out_ch):
    B = x_nhwc.shape[0]
    patches, oh, ow = _im2col(x_nhwc, k, k, stride)      # (B*oh*ow, k*k*C) bf16
    y = _matmul_bias_relu(patches, w_packed, b_packed)   # (B*oh*ow, Np) bf16
    return y[:, :out_ch].reshape(B, oh, ow, out_ch)


# ---------------------------------------------------------------------------
# Parameters: PyTorch-layout init + one-time packing for the TPU kernels
# ---------------------------------------------------------------------------
def init_params(key, action_size):
    ks = jax.random.split(key, 10)
    s = 0.01
    return {
        "conv1_w": jax.random.normal(ks[0], (32, 1, 8, 8), jnp.float32) * s,
        "conv1_b": jax.random.normal(ks[1], (32,), jnp.float32) * s,
        "conv2_w": jax.random.normal(ks[2], (64, 32, 4, 4), jnp.float32) * s,
        "conv2_b": jax.random.normal(ks[3], (64,), jnp.float32) * s,
        "conv3_w": jax.random.normal(ks[4], (64, 64, 3, 3), jnp.float32) * s,
        "conv3_b": jax.random.normal(ks[5], (64,), jnp.float32) * s,
        "fc1_w": jax.random.normal(ks[6], (64 * 7 * 7 + 1, 512), jnp.float32) * s,
        "fc1_b": jax.random.normal(ks[7], (512,), jnp.float32) * s,
        "fc2_w": jax.random.normal(ks[8], (512, action_size), jnp.float32) * s,
        "fc2_b": jax.random.normal(ks[9], (action_size,), jnp.float32) * s,
    }


def pack_params(params):
    """One-time repack: conv weights -> (kh*kw*C, O) padded bf16; fc1 rows
    permuted so an NHWC flatten matches torch's NCHW x.view(B, -1)."""
    packed = {}
    for name in ("conv1", "conv2", "conv3"):
        w = params[f"{name}_w"]                      # (O, C, kh, kw) PyTorch layout
        b = params[f"{name}_b"]
        O, C, kh, kw = w.shape
        wm = jnp.transpose(w, (2, 3, 1, 0)).reshape(kh * kw * C, O)
        Np = _round_up(O, 128)
        packed[f"{name}_w"] = jnp.pad(wm, ((0, 0), (0, Np - O))).astype(jnp.bfloat16)
        packed[f"{name}_b"] = jnp.pad(b, (0, Np - O)).astype(jnp.float32).reshape(1, Np)

    # fc1: rows 0..3135 are NCHW-flattened conv features (c*49 + h*7 + w);
    # permute so row order matches the NHWC flatten ((h*7+w)*64 + c).
    fc1_w = params["fc1_w"]                          # (3137, 512)
    hw = jnp.arange(7 * 7)
    c = jnp.arange(64)
    perm = (c[None, :] * 49 + hw[:, None]).reshape(-1)       # nhwc row -> nchw row
    packed["fc1_wa"] = fc1_w[:3136][perm].astype(jnp.bfloat16)   # (3136, 512)
    packed["fc1_wb"] = fc1_w[3136:].astype(jnp.float32)          # (1, 512) extra-state row
    packed["fc1_b"] = params["fc1_b"].astype(jnp.float32).reshape(1, -1)

    fc2_w = params["fc2_w"]                          # (512, A)
    A = fc2_w.shape[1]
    Ap = _round_up(A, 128)
    packed["fc2_w"] = jnp.pad(fc2_w, ((0, 0), (0, Ap - A))).astype(jnp.bfloat16)
    packed["fc2_b"] = jnp.pad(params["fc2_b"], (0, Ap - A)).astype(jnp.float32).reshape(1, Ap)
    return packed


# ---------------------------------------------------------------------------
# Forward
# ---------------------------------------------------------------------------
_CONV_CFG = (("conv1", 8, 4, 32), ("conv2", 4, 2, 64), ("conv3", 3, 1, 64))


@functools.partial(jax.jit, static_argnames=("action_size",))
def forward(packed, x_nchw, additional_state, *, action_size):
    B = x_nchw.shape[0]
    x = jnp.transpose(x_nchw, (0, 2, 3, 1)).astype(jnp.bfloat16)     # NCHW -> NHWC

    for name, k, stride, out_ch in _CONV_CFG:
        x = _conv2d_relu(x, packed[f"{name}_w"], packed[f"{name}_b"], k, stride, out_ch)
    # x: (B, 7, 7, 64). NHWC flatten; the NCHW permutation is baked into fc1_wa.
    feat = x.reshape(B, -1)                                          # (B, 3136) bf16
    add = additional_state.astype(jnp.bfloat16)                      # (B, 1)

    out = _fc_fused(feat, add,
                    packed["fc1_wa"], packed["fc1_wb"], packed["fc1_b"],
                    packed["fc2_w"], packed["fc2_b"])                # (B, 128) f32
    return out[:, :action_size]


if __name__ == "__main__":
    key = jax.random.PRNGKey(0)
    k_param, k_x, k_add = jax.random.split(key, 3)

    action_size = 4
    batch = 2
    # fc1 expects 64*7*7 conv features -> spatial input must be 84x84 (Atari DQN).
    x = jax.random.normal(k_x, (batch, 1, 84, 84), jnp.float32)
    additional_state = jax.random.normal(k_add, (batch, 1), jnp.float32)

    raw_params = init_params(k_param, action_size)
    packed = jax.tree_util.tree_map(jax.block_until_ready, pack_params(raw_params))

    out = forward(packed, x, additional_state, action_size=action_size)
    out = jax.block_until_ready(out)

    assert out.shape == (batch, action_size), out.shape
    assert out.dtype == jnp.float32
    print("KERNEL_OK")
</pallas_src>

<mosaic_0001>
module attributes {stable_mosaic.version = 11 : i64} {
  func.func @_matmul_bias_relu_kernel(%arg0: i32, %arg1: i32, %arg2: memref<512x64xbf16, #tpu.memory_space<vmem>>, %arg3: memref<64x128xbf16, #tpu.memory_space<vmem>>, %arg4: memref<1x128xf32, #tpu.memory_space<vmem>>, %arg5: memref<512x128xbf16, #tpu.memory_space<vmem>>) attributes {dimension_semantics = [#tpu.dimension_semantics<parallel>, #tpu.dimension_semantics<parallel>], iteration_bounds = array<i64: 2, 1>, scalar_prefetch = 0 : i64, scratch_operands = 0 : i64, tpu.core_type = #tpu.core_type<tc>, window_params = [{transform_indices = @transform_0, window_bounds = array<i64: 512, 64>}, {transform_indices = @transform_1, window_bounds = array<i64: 64, 128>}, {transform_indices = @transform_2, window_bounds = array<i64: 1, 128>}, {transform_indices = @transform_3, window_bounds = array<i64: 512, 128>}]} {
    %c0 = arith.constant 0 : index
    %c0_0 = arith.constant 0 : index
    %0 = vector.load %arg2[%c0, %c0_0] : memref<512x64xbf16, #tpu.memory_space<vmem>>, vector<512x64xbf16>
    %c0_1 = arith.constant 0 : index
    %c0_2 = arith.constant 0 : index
    %1 = vector.load %arg3[%c0_1, %c0_2] : memref<64x128xbf16, #tpu.memory_space<vmem>>, vector<64x128xbf16>
    %cst = arith.constant dense<0.000000e+00> : vector<512x128xf32>
    %2 = tpu.matmul %0, %1, %cst {dimension_numbers = #tpu.dot_dimension_numbers<[1], [0], [0], [1], [0, 0, 1, 1], [], []>} : vector<512x64xbf16>, vector<64x128xbf16>, vector<512x128xf32> -> vector<512x128xf32>
    %c0_3 = arith.constant 0 : index
    %c0_4 = arith.constant 0 : index
    %3 = vector.load %arg4[%c0_3, %c0_4] : memref<1x128xf32, #tpu.memory_space<vmem>>, vector<1x128xf32>
    %4 = vector.broadcast %3 : vector<1x128xf32> to vector<512x128xf32>
    %5 = arith.addf %2, %4 : vector<512x128xf32>
    %cst_5 = arith.constant 0.000000e+00 : f32
    %6 = vector.broadcast %cst_5 : f32 to vector<512x128xf32>
    %7 = arith.maximumf %5, %6 : vector<512x128xf32>
    %8 = arith.truncf %7 : vector<512x128xf32> to vector<512x128xbf16>
    %c0_6 = arith.constant 0 : index
    %c0_7 = arith.constant 0 : index
    %9 = vector.load %arg5[%c0_6, %c0_7] : memref<512x128xbf16, #tpu.memory_space<vmem>>, vector<512x128xbf16>
    tpu.vector_store %arg5[%c0_6, %c0_7], %8 {strides = array<i32>} : memref<512x128xbf16, #tpu.memory_space<vmem>>, vector<512x128xbf16>,
    return
  }
  func.func @transform_0(%arg0: i32, %arg1: i32) -> (i32, i32) {
    %c0_i32 = arith.constant 0 : i32
    %c0_i32_0 = arith.constant 0 : i32
    return %arg0, %c0_i32 : i32, i32
  }
  func.func @transform_1(%arg0: i32, %arg1: i32) -> (i32, i32) {
    %c0_i32 = arith.constant 0 : i32
    %c0_i32_0 = arith.constant 0 : i32
    return %c0_i32, %arg1 : i32, i32
  }
  func.func @transform_2(%arg0: i32, %arg1: i32) -> (i32, i32) {
    %c0_i32 = arith.constant 0 : i32
    %c0_i32_0 = arith.constant 0 : i32
    return %c0_i32, %arg1 : i32, i32
  }
  func.func @transform_3(%arg0: i32, %arg1: i32) -> (i32, i32) {
    %c0_i32 = arith.constant 0 : i32
    return %arg0, %arg1 : i32, i32
  }
}

module attributes {stable_mosaic.version = 11 : i64} {
  func.func @_matmul_bias_relu_kernel(%arg0: i32, %arg1: i32, %arg2: memref<168x512xbf16, #tpu.memory_space<vmem>>, %arg3: memref<512x128xbf16, #tpu.memory_space<vmem>>, %arg4: memref<1x128xf32, #tpu.memory_space<vmem>>, %arg5: memref<168x128xbf16, #tpu.memory_space<vmem>>) attributes {dimension_semantics = [#tpu.dimension_semantics<parallel>, #tpu.dimension_semantics<parallel>], iteration_bounds = array<i64: 1, 1>, scalar_prefetch = 0 : i64, scratch_operands = 0 : i64, tpu.core_type = #tpu.core_type<tc>, window_params = [{transform_indices = @transform_0, window_bounds = array<i64: 168, 512>}, {transform_indices = @transform_1, window_bounds = array<i64: 512, 128>}, {transform_indices = @transform_2, window_bounds = array<i64: 1, 128>}, {transform_indices = @transform_3, window_bounds = array<i64: 168, 128>}]} {
    %c0 = arith.constant 0 : index
    %c0_0 = arith.constant 0 : index
    %0 = vector.load %arg2[%c0, %c0_0] : memref<168x512xbf16, #tpu.memory_space<vmem>>, vector<168x512xbf16>
    %c0_1 = arith.constant 0 : index
    %c0_2 = arith.constant 0 : index
    %1 = vector.load %arg3[%c0_1, %c0_2] : memref<512x128xbf16, #tpu.memory_space<vmem>>, vector<512x128xbf16>
    %cst = arith.constant dense<0.000000e+00> : vector<168x128xf32>
    %2 = tpu.matmul %0, %1, %cst {dimension_numbers = #tpu.dot_dimension_numbers<[1], [0], [0], [1], [0, 0, 1, 1], [], []>} : vector<168x512xbf16>, vector<512x128xbf16>, vector<168x128xf32> -> vector<168x128xf32>
    %c0_3 = arith.constant 0 : index
    %c0_4 = arith.constant 0 : index
    %3 = vector.load %arg4[%c0_3, %c0_4] : memref<1x128xf32, #tpu.memory_space<vmem>>, vector<1x128xf32>
    %4 = vector.broadcast %3 : vector<1x128xf32> to vector<168x128xf32>
    %5 = arith.addf %2, %4 : vector<168x128xf32>
    %cst_5 = arith.constant 0.000000e+00 : f32
    %6 = vector.broadcast %cst_5 : f32 to vector<168x128xf32>
    %7 = arith.maximumf %5, %6 : vector<168x128xf32>
    %8 = arith.truncf %7 : vector<168x128xf32> to vector<168x128xbf16>
    %c0_6 = arith.constant 0 : index
    %c0_7 = arith.constant 0 : index
    %9 = vector.load %arg5[%c0_6, %c0_7] : memref<168x128xbf16, #tpu.memory_space<vmem>>, vector<168x128xbf16>
    tpu.vector_store %arg5[%c0_6, %c0_7], %8 {strides = array<i32>} : memref<168x128xbf16, #tpu.memory_space<vmem>>, vector<168x128xbf16>,
    return
  }
  func.func @transform_0(%arg0: i32, %arg1: i32) -> (i32, i32) {
    %c0_i32 = arith.constant 0 : i32
    %c0_i32_0 = arith.constant 0 : i32
    return %arg0, %c0_i32 : i32, i32
  }
  func.func @transform_1(%arg0: i32, %arg1: i32) -> (i32, i32) {
    %c0_i32 = arith.constant 0 : i32
    %c0_i32_0 = arith.constant 0 : i32
    return %c0_i32, %arg1 : i32, i32
  }
  func.func @transform_2(%arg0: i32, %arg1: i32) -> (i32, i32) {
    %c0_i32 = arith.constant 0 : i32
    %c0_i32_0 = arith.constant 0 : i32
    return %c0_i32, %arg1 : i32, i32
  }
  func.func @transform_3(%arg0: i32, %arg1: i32) -> (i32, i32) {
    %c0_i32 = arith.constant 0 : i32
    return %arg0, %arg1 : i32, i32
  }
}

module attributes {stable_mosaic.version = 11 : i64} {
  func.func @_matmul_bias_relu_kernel(%arg0: i32, %arg1: i32, %arg2: memref<104x576xbf16, #tpu.memory_space<vmem>>, %arg3: memref<576x128xbf16, #tpu.memory_space<vmem>>, %arg4: memref<1x128xf32, #tpu.memory_space<vmem>>, %arg5: memref<104x128xbf16, #tpu.memory_space<vmem>>) attributes {dimension_semantics = [#tpu.dimension_semantics<parallel>, #tpu.dimension_semantics<parallel>], iteration_bounds = array<i64: 1, 1>, scalar_prefetch = 0 : i64, scratch_operands = 0 : i64, tpu.core_type = #tpu.core_type<tc>, window_params = [{transform_indices = @transform_0, window_bounds = array<i64: 104, 576>}, {transform_indices = @transform_1, window_bounds = array<i64: 576, 128>}, {transform_indices = @transform_2, window_bounds = array<i64: 1, 128>}, {transform_indices = @transform_3, window_bounds = array<i64: 104, 128>}]} {
    %c0 = arith.constant 0 : index
    %c0_0 = arith.constant 0 : index
    %0 = vector.load %arg2[%c0, %c0_0] : memref<104x576xbf16, #tpu.memory_space<vmem>>, vector<104x576xbf16>
    %c0_1 = arith.constant 0 : index
    %c0_2 = arith.constant 0 : index
    %1 = vector.load %arg3[%c0_1, %c0_2] : memref<576x128xbf16, #tpu.memory_space<vmem>>, vector<576x128xbf16>
    %cst = arith.constant dense<0.000000e+00> : vector<104x128xf32>
    %2 = tpu.matmul %0, %1, %cst {dimension_numbers = #tpu.dot_dimension_numbers<[1], [0], [0], [1], [0, 0, 1, 1], [], []>} : vector<104x576xbf16>, vector<576x128xbf16>, vector<104x128xf32> -> vector<104x128xf32>
    %c0_3 = arith.constant 0 : index
    %c0_4 = arith.constant 0 : index
    %3 = vector.load %arg4[%c0_3, %c0_4] : memref<1x128xf32, #tpu.memory_space<vmem>>, vector<1x128xf32>
    %4 = vector.broadcast %3 : vector<1x128xf32> to vector<104x128xf32>
    %5 = arith.addf %2, %4 : vector<104x128xf32>
    %cst_5 = arith.constant 0.000000e+00 : f32
    %6 = vector.broadcast %cst_5 : f32 to vector<104x128xf32>
    %7 = arith.maximumf %5, %6 : vector<104x128xf32>
    %8 = arith.truncf %7 : vector<104x128xf32> to vector<104x128xbf16>
    %c0_6 = arith.constant 0 : index
    %c0_7 = arith.constant 0 : index
    %9 = vector.load %arg5[%c0_6, %c0_7] : memref<104x128xbf16, #tpu.memory_space<vmem>>, vector<104x128xbf16>
    tpu.vector_store %arg5[%c0_6, %c0_7], %8 {strides = array<i32>} : memref<104x128xbf16, #tpu.memory_space<vmem>>, vector<104x128xbf16>,
    return
  }
  func.func @transform_0(%arg0: i32, %arg1: i32) -> (i32, i32) {
    %c0_i32 = arith.constant 0 : i32
    %c0_i32_0 = arith.constant 0 : i32
    return %arg0, %c0_i32 : i32, i32
  }
  func.func @transform_1(%arg0: i32, %arg1: i32) -> (i32, i32) {
    %c0_i32 = arith.constant 0 : i32
    %c0_i32_0 = arith.constant 0 : i32
    return %c0_i32, %arg1 : i32, i32
  }
  func.func @transform_2(%arg0: i32, %arg1: i32) -> (i32, i32) {
    %c0_i32 = arith.constant 0 : i32
    %c0_i32_0 = arith.constant 0 : i32
    return %c0_i32, %arg1 : i32, i32
  }
  func.func @transform_3(%arg0: i32, %arg1: i32) -> (i32, i32) {
    %c0_i32 = arith.constant 0 : i32
    return %arg0, %arg1 : i32, i32
  }
}

module attributes {stable_mosaic.version = 11 : i64} {
  func.func @_fc_fused_kernel(%arg0: i32, %arg1: memref<8x3136xbf16, #tpu.memory_space<vmem>>, %arg2: memref<8x1xbf16, #tpu.memory_space<vmem>>, %arg3: memref<3136x512xbf16, #tpu.memory_space<vmem>>, %arg4: memref<1x512xf32, #tpu.memory_space<vmem>>, %arg5: memref<1x512xf32, #tpu.memory_space<vmem>>, %arg6: memref<512x128xbf16, #tpu.memory_space<vmem>>, %arg7: memref<1x128xf32, #tpu.memory_space<vmem>>, %arg8: memref<8x128xf32, #tpu.memory_space<vmem>>) attributes {dimension_semantics = [#tpu.dimension_semantics<parallel>], iteration_bounds = array<i64: 1>, scalar_prefetch = 0 : i64, scratch_operands = 0 : i64, tpu.core_type = #tpu.core_type<tc>, window_params = [{transform_indices = @transform_0, window_bounds = array<i64: 8, 3136>}, {transform_indices = @transform_1, window_bounds = array<i64: 8, 1>}, {pipeline_mode = #tpu.pipeline_mode<synchronous>, transform_indices = @transform_2, window_bounds = array<i64: 3136, 512>}, {pipeline_mode = #tpu.pipeline_mode<synchronous>, transform_indices = @transform_3, window_bounds = array<i64: 1, 512>}, {pipeline_mode = #tpu.pipeline_mode<synchronous>, transform_indices = @transform_4, window_bounds = array<i64: 1, 512>}, {pipeline_mode = #tpu.pipeline_mode<synchronous>, transform_indices = @transform_5, window_bounds = array<i64: 512, 128>}, {pipeline_mode = #tpu.pipeline_mode<synchronous>, transform_indices = @transform_6, window_bounds = array<i64: 1, 128>}, {transform_indices = @transform_7, window_bounds = array<i64: 8, 128>}]} {
    %c0 = arith.constant 0 : index
    %c0_0 = arith.constant 0 : index
    %0 = vector.load %arg1[%c0, %c0_0] : memref<8x3136xbf16, #tpu.memory_space<vmem>>, vector<8x3136xbf16>
    %c0_1 = arith.constant 0 : index
    %c0_2 = arith.constant 0 : index
    %1 = vector.load %arg3[%c0_1, %c0_2] : memref<3136x512xbf16, #tpu.memory_space<vmem>>, vector<3136x512xbf16>
    %cst = arith.constant dense<0.000000e+00> : vector<8x512xf32>
    %2 = tpu.matmul %0, %1, %cst {dimension_numbers = #tpu.dot_dimension_numbers<[1], [0], [0], [1], [0, 0, 1, 1], [], []>} : vector<8x3136xbf16>, vector<3136x512xbf16>, vector<8x512xf32> -> vector<8x512xf32>
    %c0_3 = arith.constant 0 : index
    %c0_4 = arith.constant 0 : index
    %3 = vector.load %arg2[%c0_3, %c0_4] : memref<8x1xbf16, #tpu.memory_space<vmem>>, vector<8x1xbf16>
    %4 = arith.extf %3 : vector<8x1xbf16> to vector<8x1xf32>
    %c0_5 = arith.constant 0 : index
    %c0_6 = arith.constant 0 : index
    %5 = vector.load %arg4[%c0_5, %c0_6] : memref<1x512xf32, #tpu.memory_space<vmem>>, vector<1x512xf32>
    %6 = vector.broadcast %4 : vector<8x1xf32> to vector<8x512xf32>
    %7 = vector.broadcast %5 : vector<1x512xf32> to vector<8x512xf32>
    %8 = arith.mulf %6, %7 : vector<8x512xf32>
    %9 = arith.addf %2, %8 : vector<8x512xf32>
    %c0_7 = arith.constant 0 : index
    %c0_8 = arith.constant 0 : index
    %10 = vector.load %arg5[%c0_7, %c0_8] : memref<1x512xf32, #tpu.memory_space<vmem>>, vector<1x512xf32>
    %11 = vector.broadcast %10 : vector<1x512xf32> to vector<8x512xf32>
    %12 = arith.addf %9, %11 : vector<8x512xf32>
    %cst_9 = arith.constant 0.000000e+00 : f32
    %13 = vector.broadcast %cst_9 : f32 to vector<8x512xf32>
    %14 = arith.maximumf %12, %13 : vector<8x512xf32>
    %15 = arith.truncf %14 : vector<8x512xf32> to vector<8x512xbf16>
    %c0_10 = arith.constant 0 : index
    %c0_11 = arith.constant 0 : index
    %16 = vector.load %arg6[%c0_10, %c0_11] : memref<512x128xbf16, #tpu.memory_space<vmem>>, vector<512x128xbf16>
    %cst_12 = arith.constant dense<0.000000e+00> : vector<8x128xf32>
    %17 = tpu.matmul %15, %16, %cst_12 {dimension_numbers = #tpu.dot_dimension_numbers<[1], [0], [0], [1], [0, 0, 1, 1], [], []>} : vector<8x512xbf16>, vector<512x128xbf16>, vector<8x128xf32> -> vector<8x128xf32>
    %c0_13 = arith.constant 0 : index
    %c0_14 = arith.constant 0 : index
    %18 = vector.load %arg7[%c0_13, %c0_14] : memref<1x128xf32, #tpu.memory_space<vmem>>, vector<1x128xf32>
    %19 = vector.broadcast %18 : vector<1x128xf32> to vector<8x128xf32>
    %20 = arith.addf %17, %19 : vector<8x128xf32>
    %c0_15 = arith.constant 0 : index
    %c0_16 = arith.constant 0 : index
    %21 = vector.load %arg8[%c0_15, %c0_16] : memref<8x128xf32, #tpu.memory_space<vmem>>, vector<8x128xf32>
    tpu.vector_store %arg8[%c0_15, %c0_16], %20 {strides = array<i32>} : memref<8x128xf32, #tpu.memory_space<vmem>>, vector<8x128xf32>,
    return
  }
  func.func @transform_0(%arg0: i32) -> (i32, i32) {
    %c0_i32 = arith.constant 0 : i32
    %c0_i32_0 = arith.constant 0 : i32
    return %arg0, %c0_i32 : i32, i32
  }
  func.func @transform_1(%arg0: i32) -> (i32, i32) {
    %c0_i32 = arith.constant 0 : i32
    %c0_i32_0 = arith.constant 0 : i32
    return %arg0, %c0_i32 : i32, i32
  }
  func.func @transform_2(%arg0: i32) -> (i32, i32) {
    %c0_i32 = arith.constant 0 : i32
    %c0_i32_0 = arith.constant 0 : i32
    %c0_i32_1 = arith.constant 0 : i32
    return %c0_i32, %c0_i32_0 : i32, i32
  }
  func.func @transform_3(%arg0: i32) -> (i32, i32) {
    %c0_i32 = arith.constant 0 : i32
    %c0_i32_0 = arith.constant 0 : i32
    %c0_i32_1 = arith.constant 0 : i32
    return %c0_i32, %c0_i32_0 : i32, i32
  }
  func.func @transform_4(%arg0: i32) -> (i32, i32) {
    %c0_i32 = arith.constant 0 : i32
    %c0_i32_0 = arith.constant 0 : i32
    %c0_i32_1 = arith.constant 0 : i32
    return %c0_i32, %c0_i32_0 : i32, i32
  }
  func.func @transform_5(%arg0: i32) -> (i32, i32) {
    %c0_i32 = arith.constant 0 : i32
    %c0_i32_0 = arith.constant 0 : i32
    %c0_i32_1 = arith.constant 0 : i32
    return %c0_i32, %c0_i32_0 : i32, i32
  }
  func.func @transform_6(%arg0: i32) -> (i32, i32) {
    %c0_i32 = arith.constant 0 : i32
    %c0_i32_0 = arith.constant 0 : i32
    %c0_i32_1 = arith.constant 0 : i32
    return %c0_i32, %c0_i32_0 : i32, i32
  }
  func.func @transform_7(%arg0: i32) -> (i32, i32) {
    %c0_i32 = arith.constant 0 : i32
    %c0_i32_0 = arith.constant 0 : i32
    return %arg0, %c0_i32 : i32, i32
  }
}

</mosaic_0001>

<bundles_post_ra>
// kernel: forward.4
= control target key start
LH: loop header
LB: loop body
LE: loop exit
PB: predicated region body
PF: predicated region fallthrough
CT: control target
= control target key end

     0   :  { %s1982_s12 = smov 0   ;;  %s1984_s13 = smov 0   ;;  %s2203_s0 = inlined_call_operand.vmem [shape: bf16[1024,64], index: 0, kind: input, shape index: {}]   ;;  %s2204_s1 = inlined_call_operand.vmem [shape: bf16[64,128], index: 1, kind: input, shape index: {}]   ;;  %s2205_s2 = inlined_call_operand.vmem [shape: f32[1,128], index: 2, kind: input, shape index: {}]   ;;  %s2206_s3 = inlined_call_operand.vmem [shape: bf16[1024,128], index: 3, kind: output, shape index: {}]  }
   0x1   :  { %s1986_s14 = smov 0  }
   0x2 LB: > { %s25_s15 = sadd.s32 1, %s1956_s13  ;;  %p1367_p0 = scmp.ge.s32.totalorder %s1960_s14, 1  ;;  %s1960_s14 = sphi %s1986_s14, %s13_s14   ;;  %s1956_s13 = sphi %s1984_s13, %s2208_s13   ;;  %s1952_s12 = sphi %s1982_s12, %s2207_s12  }
   0x3   : > { %p27_p1 = scmp.ge.s32.totalorder %s25_s15, 2  ;;  %p169_p2 = scmp.lt.s32.totalorder %s1960_s14, 3 }
   0x5   : > { %s2210_s15 = smov (%p27_p1, %s25_s15), 0  ;;  %p170_p3 = pnand %p1367_p0, %p169_p2 }
   0x6   : > { %s1368_s18 = sshll.u32 (!%p170_p3), %s1952_s12, 6 }
   0x7   : > { %173 = sbr.rel (%p170_p3) target bundleno = 291 (0x123), region = 32  ;;  %p204_p4 = scmp.lt.s32.totalorder (!%p170_p3), %s1368_s18, 127 }
   0xc   : > { %v1902_v0 = vld [vmem:[%s2204_s1 + $0x18] sm:$0xff]   ;;  %v1903_v1 = vld [vmem:[%s2204_s1 + $0x10] sm:$0xff]   ;;  %s2212_s18 = smov (!%p204_p4, %s1368_s18), 127  ;;  %v1904_v2 = vld [vmem:[%s2204_s1 + $0x8] sm:$0xff]   ;;  %vm489_vm0 = vcmask 523264  }
   0xd   : > { %1798 = vmatprep.subr.bf16.mxu0 %v1902_v0  ;;  %1870 = vmatprep.subr.bf16.mxu1 %v1902_v0  ;;  %s1369_s23 = sshll.u32 %s2212_s18, 2  ;;  %v1905_v3 = vld [vmem:[%s2204_s1] sm:$0xff]  }
   0xe   : > { %1799 = vmatpush3.bf16.msra.mxu0 %v1902_v0  ;;  %1874 = vmatpush3.bf16.msra.mxu1 %v1902_v0  ;;  %s2020_s28 = scalar_lea.vmem %s2203_s0, %s1369_s23  ;;  %v2089_v36 = vld [vmem:[%s2205_s2] ss:$0 sm:$0xff]  ;;  %s2104_s6 = scalar_lea.vmem %s2206_s3, %s1369_s23 }
   0xf   : > { %1800 = vmatprep.subr.bf16.mxu0 %v1903_v1  ;;  %1871 = vmatprep.subr.bf16.mxu1 %v1903_v1  ;;  %v1906_v4 = vld [vmem:[%s2020_s28] sm:$0xff]   ;;  %v1908_v6 = vld [vmem:[%s2020_s28 + $0x8] sm:$0xff]   ;;  %v1910_v8 = vld [vmem:[%s2020_s28 + $0x10] sm:$0xff]  }
  0x10   : > { %v1907_v5 = vld [vmem:[%s2020_s28 + $0x80] sm:$0xff]   ;;  %1806 = vmatprep.mubr.msk.bf16.mxu0 %vm489_vm0, %v1906_v4  ;;  %v1909_v7 = vld [vmem:[%s2020_s28 + $0x88] sm:$0xff]   ;;  %v1911_v9 = vld [vmem:[%s2020_s28 + $0x90] sm:$0xff]  }
  0x11   : > { %1838 = vmatprep.mubr.msk.bf16.mxu1 %vm489_vm0, %v1907_v5  ;;  %v1912_v10 = vld [vmem:[%s2020_s28 + $0x18] sm:$0xff]   ;;  %v1914_v12 = vld [vmem:[%s2020_s28 + $0x20] sm:$0xff]   ;;  %v1916_v14 = vld [vmem:[%s2020_s28 + $0x28] sm:$0xff]  }
  0x12   : > { %1801 = vmatpush3.bf16.msra.mxu0 %v1903_v1  ;;  %1875 = vmatpush3.bf16.msra.mxu1 %v1903_v1  ;;  %v1913_v11 = vld [vmem:[%s2020_s28 + $0x98] sm:$0xff]   ;;  %v1915_v13 = vld [vmem:[%s2020_s28 + $0xa0] sm:$0xff]   ;;  %v1917_v15 = vld [vmem:[%s2020_s28 + $0xa8] sm:$0xff]  }
  0x13   : > { %1802 = vmatprep.subr.bf16.mxu0 %v1904_v2  ;;  %1872 = vmatprep.subr.bf16.mxu1 %v1904_v2  ;;  %v1918_v16 = vld [vmem:[%s2020_s28 + $0x30] sm:$0xff]   ;;  %v1920_v18 = vld [vmem:[%s2020_s28 + $0x38] sm:$0xff]   ;;  %v1922_v20 = vld [vmem:[%s2020_s28 + $0x40] sm:$0xff]  }
  0x14   : > { %v1919_v17 = vld [vmem:[%s2020_s28 + $0xb0] sm:$0xff]   ;;  %v1921_v19 = vld [vmem:[%s2020_s28 + $0xb8] sm:$0xff]   ;;  %v1923_v21 = vld [vmem:[%s2020_s28 + $0xc0] sm:$0xff]  }
  0x15   : > { %v1924_v22 = vld [vmem:[%s2020_s28 + $0x48] sm:$0xff]   ;;  %v1926_v24 = vld [vmem:[%s2020_s28 + $0x50] sm:$0xff]   ;;  %v1928_v26 = vld [vmem:[%s2020_s28 + $0x58] sm:$0xff]  }
  0x16   : > { %1803 = vmatpush3.bf16.msra.mxu0 %v1904_v2  ;;  %1876 = vmatpush3.bf16.msra.mxu1 %v1904_v2  ;;  %v1925_v23 = vld [vmem:[%s2020_s28 + $0xc8] sm:$0xff]   ;;  %v1927_v25 = vld [vmem:[%s2020_s28 + $0xd0] sm:$0xff]   ;;  %v1929_v27 = vld [vmem:[%s2020_s28 + $0xd8] sm:$0xff]  }
  0x17   : > { %1804 = vmatprep.subr.bf16.mxu0 %v1905_v3  ;;  %1873 = vmatprep.subr.bf16.mxu1 %v1905_v3  ;;  %v1930_v28 = vld [vmem:[%s2020_s28 + $0x60] sm:$0xff]   ;;  %v1932_v30 = vld [vmem:[%s2020_s28 + $0x68] sm:$0xff]   ;;  %v1934_v32 = vld [vmem:[%s2020_s28 + $0x70] sm:$0xff]  }
  0x18   : > { %v1931_v29 = vld [vmem:[%s2020_s28 + $0xe0] sm:$0xff]   ;;  %v1933_v31 = vld [vmem:[%s2020_s28 + $0xe8] sm:$0xff]   ;;  %v1935_v33 = vld [vmem:[%s2020_s28 + $0xf0] sm:$0xff]  }
  0x19   : > { %v1936_v34 = vld [vmem:[%s2020_s28 + $0x78] sm:$0xff]  }
  0x1a   : > { %1805 = vmatpush3.bf16.msra.mxu0 %v1905_v3  ;;  %1877 = vmatpush3.bf16.msra.mxu1 %v1905_v3  ;;  %v1937_v35 = vld [vmem:[%s2020_s28 + $0xf8] sm:$0xff]  }
  0x1d   : > { %1807 = vmatmul.mubr.msk.bf16.vlgmr.msra.gmra.mxu0 %vm489_vm0, %v1908_v6  ;;  %1839 = vmatmul.mubr.msk.bf16.vlgmr.msra.gmra.mxu1 %vm489_vm0, %v1909_v7 }
  0x1e   : > { %1810 = vmatprep.mubr.msk.bf16.mxu0 %vm489_vm0, %v1910_v8  ;;  %1842 = vmatprep.mubr.msk.bf16.mxu1 %vm489_vm0, %v1911_v9 }
  0x25   : > { %1811 = vmatmul.mubr.msk.bf16.gmra.mxu0 %vm489_vm0, %v1912_v10  ;;  %1843 = vmatmul.mubr.msk.bf16.gmra.mxu1 %vm489_vm0, %v1913_v11 }
  0x26   : > { %1814 = vmatprep.mubr.msk.bf16.mxu0 %vm489_vm0, %v1914_v12  ;;  %1846 = vmatprep.mubr.msk.bf16.mxu1 %vm489_vm0, %v1915_v13 }
  0x2d   : > { %1815 = vmatmul.mubr.msk.bf16.gmra.mxu0 %vm489_vm0, %v1916_v14  ;;  %1847 = vmatmul.mubr.msk.bf16.gmra.mxu1 %vm489_vm0, %v1917_v15 }
  0x2e   : > { %1818 = vmatprep.mubr.msk.bf16.mxu0 %vm489_vm0, %v1918_v16  ;;  %1850 = vmatprep.mubr.msk.bf16.mxu1 %vm489_vm0, %v1919_v17 }
  0x35   : > { %1819 = vmatmul.mubr.msk.bf16.gmra.mxu0 %vm489_vm0, %v1920_v18  ;;  %1851 = vmatmul.mubr.msk.bf16.gmra.mxu1 %vm489_vm0, %v1921_v19 }
  0x36   : > { %1822 = vmatprep.mubr.msk.bf16.mxu0 %vm489_vm0, %v1922_v20  ;;  %1854 = vmatprep.mubr.msk.bf16.mxu1 %vm489_vm0, %v1923_v21 }
  0x3d   : > { %1823 = vmatmul.mubr.msk.bf16.gmra.mxu0 %vm489_vm0, %v1924_v22  ;;  %1855 = vmatmul.mubr.msk.bf16.gmra.mxu1 %vm489_vm0, %v1925_v23 }
  0x3e   : > { %1826 = vmatprep.mubr.msk.bf16.mxu0 %vm489_vm0, %v1926_v24  ;;  %1858 = vmatprep.mubr.msk.bf16.mxu1 %vm489_vm0, %v1927_v25 }
  0x45   : > { %1827 = vmatmul.mubr.msk.bf16.gmra.mxu0 %vm489_vm0, %v1928_v26  ;;  %1859 = vmatmul.mubr.msk.bf16.gmra.mxu1 %vm489_vm0, %v1929_v27 }
  0x46   : > { %1830 = vmatprep.mubr.msk.bf16.mxu0 %vm489_vm0, %v1930_v28  ;;  %1862 = vmatprep.mubr.msk.bf16.mxu1 %vm489_vm0, %v1931_v29 }
  0x4d   : > { %1831 = vmatmul.mubr.msk.bf16.gmra.mxu0 %vm489_vm0, %v1932_v30  ;;  %1863 = vmatmul.mubr.msk.bf16.gmra.mxu1 %vm489_vm0, %v1933_v31 }
  0x4e   : > { %1834 = vmatprep.mubr.msk.bf16.mxu0 %vm489_vm0, %v1934_v32  ;;  %1866 = vmatprep.mubr.msk.bf16.mxu1 %vm489_vm0, %v1935_v33 }
  0x55   : > { %1835 = vmatmul.mubr.msk.bf16.gmra.mxu0 %vm489_vm0, %v1936_v34  ;;  %1867 = vmatmul.mubr.msk.bf16.gmra.mxu1 %vm489_vm0, %v1937_v35 }
  0xdd   : > { %v1808_v37 = vpop.f32.mrf.mxu0  ;;  %v1840_v38 = vpop.f32.mrf.mxu1 }
  0xde   : > { %v629_v39 = vadd.f32 %v1808_v37, %v2089_v36  ;;  %v757_v40 = vadd.f32 %v1840_v38, %v2089_v36 }
  0xdf   : > { %v620_v41 = vpop.f32.mrf.mxu0  ;;  %v748_v42 = vpop.f32.mrf.mxu1 }
  0xe0   : > { %v621_v43 = vadd.f32 %v2089_v36, %v620_v41  ;;  %v749_v44 = vadd.f32 %v2089_v36, %v748_v42  ;;  %v877_v49 = vmax.f32 %v629_v39, 0.0  ;;  %v909_v50 = vmax.f32 %v757_v40, 0.0 }
  0xe1   : > { %v1809_v45 = vpop.f32.mrf.mxu0  ;;  %v1841_v46 = vpop.f32.mrf.mxu1 }
  0xe2   : > { %v632_v47 = vadd.f32 %v1809_v45, %v2089_v36  ;;  %v760_v48 = vadd.f32 %v1841_v46, %v2089_v36  ;;  %v875_v57 = vmax.f32 %v621_v43, 0.0  ;;  %v907_v58 = vmax.f32 %v749_v44, 0.0 }
  0xe3   : > { %v623_v51 = vpop.f32.mrf.mxu0  ;;  %v751_v52 = vpop.f32.mrf.mxu1 }
  0xe4   : > { %v878_v53 = vmax.f32 %v632_v47, 0.0  ;;  %v910_v54 = vmax.f32 %v760_v48, 0.0  ;;  %v624_v55 = vadd.f32 %v2089_v36, %v623_v51  ;;  %v752_v56 = vadd.f32 %v2089_v36, %v751_v52 }
  0xe5   : > { %v1812_v59 = vpop.f32.mrf.mxu0  ;;  %v1844_v60 = vpop.f32.mrf.mxu1 }
  0xe6   : > { %v1579_v61 = vpack.c.bf16 %v878_v53, %v877_v49  ;;  %v1659_v62 = vpack.c.bf16 %v910_v54, %v909_v50  ;;  %v876_v63 = vmax.f32 %v624_v55, 0.0  ;;  %v908_v0 = vmax.f32 %v752_v56, 0.0 }
  0xe7   : > { %v645_v1 = vadd.f32 %v1812_v59, %v2089_v36  ;;  %v773_v2 = vadd.f32 %v1844_v60, %v2089_v36  ;;  %v636_v3 = vpop.f32.mrf.mxu0  ;;  %v764_v4 = vpop.f32.mrf.mxu1 }
  0xe8   : > { %1731 = vst [vmem:[%s2104_s6 + $0x8] sm:$0xff] %v1579_v61   ;;  %1747 = vst [vmem:[%s2104_s6 + $0x88] sm:$0xff] %v1659_v62   ;;  %v1574_v5 = vpack.c.bf16 %v876_v63, %v875_v57  ;;  %v1654_v6 = vpack.c.bf16 %v908_v0, %v907_v58  ;;  %v637_v7 = vadd.f32 %v2089_v36, %v636_v3 }
  0xe9   : > { %v765_v8 = vadd.f32 %v2089_v36, %v764_v4  ;;  %v1813_v9 = vpop.f32.mrf.mxu0  ;;  %v1845_v10 = vpop.f32.mrf.mxu1  ;;  %v881_v13 = vmax.f32 %v645_v1, 0.0  ;;  %v913_v14 = vmax.f32 %v773_v2, 0.0 }
  0xea   : > { %1575 = vst [vmem:[%s2104_s6] sm:$0xff] %v1574_v5   ;;  %1746 = vst [vmem:[%s2104_s6 + $0x80] sm:$0xff] %v1654_v6   ;;  %v648_v11 = vadd.f32 %v1813_v9, %v2089_v36  ;;  %v776_v12 = vadd.f32 %v1845_v10, %v2089_v36  ;;  %v879_v21 = vmax.f32 %v637_v7, 0.0 }
  0xeb   : > { %v639_v15 = vpop.f32.mrf.mxu0  ;;  %v767_v16 = vpop.f32.mrf.mxu1  ;;  %v911_v22 = vmax.f32 %v765_v8, 0.0 }
  0xec   : > { %v882_v17 = vmax.f32 %v648_v11, 0.0  ;;  %v914_v18 = vmax.f32 %v776_v12, 0.0  ;;  %v640_v19 = vadd.f32 %v2089_v36, %v639_v15  ;;  %v768_v20 = vadd.f32 %v2089_v36, %v767_v16 }
  0xed   : > { %v1816_v23 = vpop.f32.mrf.mxu0  ;;  %v1848_v24 = vpop.f32.mrf.mxu1 }
  0xee   : > { %v1589_v25 = vpack.c.bf16 %v882_v17, %v881_v13  ;;  %v1669_v26 = vpack.c.bf16 %v914_v18, %v913_v14  ;;  %v880_v27 = vmax.f32 %v640_v19, 0.0  ;;  %v912_v28 = vmax.f32 %v768_v20, 0.0 }
  0xef   : > { %v661_v29 = vadd.f32 %v1816_v23, %v2089_v36  ;;  %v789_v30 = vadd.f32 %v1848_v24, %v2089_v36  ;;  %v652_v31 = vpop.f32.mrf.mxu0  ;;  %v780_v32 = vpop.f32.mrf.mxu1 }
  0xf0   : > { %1733 = vst [vmem:[%s2104_s6 + $0x18] sm:$0xff] %v1589_v25   ;;  %1749 = vst [vmem:[%s2104_s6 + $0x98] sm:$0xff] %v1669_v26   ;;  %v1584_v33 = vpack.c.bf16 %v880_v27, %v879_v21  ;;  %v1664_v34 = vpack.c.bf16 %v912_v28, %v911_v22  ;;  %v653_v35 = vadd.f32 %v2089_v36, %v652_v31 }
  0xf1   : > { %v781_v37 = vadd.f32 %v2089_v36, %v780_v32  ;;  %v1817_v38 = vpop.f32.mrf.mxu0  ;;  %v1849_v39 = vpop.f32.mrf.mxu1  ;;  %v885_v42 = vmax.f32 %v661_v29, 0.0  ;;  %v917_v43 = vmax.f32 %v789_v30, 0.0 }
  0xf2   : > { %1732 = vst [vmem:[%s2104_s6 + $0x10] sm:$0xff] %v1584_v33   ;;  %1748 = vst [vmem:[%s2104_s6 + $0x90] sm:$0xff] %v1664_v34   ;;  %v664_v40 = vadd.f32 %v1817_v38, %v2089_v36  ;;  %v792_v41 = vadd.f32 %v1849_v39, %v2089_v36  ;;  %v883_v50 = vmax.f32 %v653_v35, 0.0 }
  0xf3   : > { %v655_v44 = vpop.f32.mrf.mxu0  ;;  %v783_v45 = vpop.f32.mrf.mxu1  ;;  %v915_v51 = vmax.f32 %v781_v37, 0.0 }
  0xf4   : > { %v886_v46 = vmax.f32 %v664_v40, 0.0  ;;  %v918_v47 = vmax.f32 %v792_v41, 0.0  ;;  %v656_v48 = vadd.f32 %v2089_v36, %v655_v44  ;;  %v784_v49 = vadd.f32 %v2089_v36, %v783_v45 }
  0xf5   : > { %v1820_v52 = vpop.f32.mrf.mxu0  ;;  %v1852_v53 = vpop.f32.mrf.mxu1 }
  0xf6   : > { %v1599_v54 = vpack.c.bf16 %v886_v46, %v885_v42  ;;  %v1679_v55 = vpack.c.bf16 %v918_v47, %v917_v43  ;;  %v884_v56 = vmax.f32 %v656_v48, 0.0  ;;  %v916_v57 = vmax.f32 %v784_v49, 0.0 }
  0xf7   : > { %v677_v58 = vadd.f32 %v1820_v52, %v2089_v36  ;;  %v805_v59 = vadd.f32 %v1852_v53, %v2089_v36  ;;  %v668_v60 = vpop.f32.mrf.mxu0  ;;  %v796_v61 = vpop.f32.mrf.mxu1 }
  0xf8   : > { %1735 = vst [vmem:[%s2104_s6 + $0x28] sm:$0xff] %v1599_v54   ;;  %1751 = vst [vmem:[%s2104_s6 + $0xa8] sm:$0xff] %v1679_v55   ;;  %v1594_v62 = vpack.c.bf16 %v884_v56, %v883_v50  ;;  %v1674_v63 = vpack.c.bf16 %v916_v57, %v915_v51  ;;  %v669_v0 = vadd.f32 %v2089_v36, %v668_v60 }
  0xf9   : > { %v797_v1 = vadd.f32 %v2089_v36, %v796_v61  ;;  %v1821_v2 = vpop.f32.mrf.mxu0  ;;  %v1853_v3 = vpop.f32.mrf.mxu1  ;;  %v889_v6 = vmax.f32 %v677_v58, 0.0  ;;  %v921_v7 = vmax.f32 %v805_v59, 0.0 }
  0xfa   : > { %1734 = vst [vmem:[%s2104_s6 + $0x20] sm:$0xff] %v1594_v62   ;;  %1750 = vst [vmem:[%s2104_s6 + $0xa0] sm:$0xff] %v1674_v63   ;;  %v680_v4 = vadd.f32 %v1821_v2, %v2089_v36  ;;  %v808_v5 = vadd.f32 %v1853_v3, %v2089_v36  ;;  %v887_v14 = vmax.f32 %v669_v0, 0.0 }
  0xfb   : > { %v671_v8 = vpop.f32.mrf.mxu0  ;;  %v799_v9 = vpop.f32.mrf.mxu1  ;;  %v919_v15 = vmax.f32 %v797_v1, 0.0 }
  0xfc   : > { %v890_v10 = vmax.f32 %v680_v4, 0.0  ;;  %v922_v11 = vmax.f32 %v808_v5, 0.0  ;;  %v672_v12 = vadd.f32 %v2089_v36, %v671_v8  ;;  %v800_v13 = vadd.f32 %v2089_v36, %v799_v9 }
  0xfd   : > { %v1824_v16 = vpop.f32.mrf.mxu0  ;;  %v1856_v17 = vpop.f32.mrf.mxu1 }
  0xfe   : > { %v1609_v18 = vpack.c.bf16 %v890_v10, %v889_v6  ;;  %v1689_v19 = vpack.c.bf16 %v922_v11, %v921_v7  ;;  %v888_v20 = vmax.f32 %v672_v12, 0.0  ;;  %v920_v21 = vmax.f32 %v800_v13, 0.0 }
  0xff   : > { %v693_v22 = vadd.f32 %v1824_v16, %v2089_v36  ;;  %v821_v23 = vadd.f32 %v1856_v17, %v2089_v36  ;;  %v684_v24 = vpop.f32.mrf.mxu0  ;;  %v812_v25 = vpop.f32.mrf.mxu1 }
 0x100   : > { %1737 = vst [vmem:[%s2104_s6 + $0x38] sm:$0xff] %v1609_v18   ;;  %1753 = vst [vmem:[%s2104_s6 + $0xb8] sm:$0xff] %v1689_v19   ;;  %v1604_v26 = vpack.c.bf16 %v888_v20, %v887_v14  ;;  %v1684_v27 = vpack.c.bf16 %v920_v21, %v919_v15  ;;  %v685_v28 = vadd.f32 %v2089_v36, %v684_v24 }
 0x101   : > { %v813_v29 = vadd.f32 %v2089_v36, %v812_v25  ;;  %v1825_v30 = vpop.f32.mrf.mxu0  ;;  %v1857_v31 = vpop.f32.mrf.mxu1  ;;  %v893_v34 = vmax.f32 %v693_v22, 0.0  ;;  %v925_v35 = vmax.f32 %v821_v23, 0.0 }
 0x102   : > { %1736 = vst [vmem:[%s2104_s6 + $0x30] sm:$0xff] %v1604_v26   ;;  %1752 = vst [vmem:[%s2104_s6 + $0xb0] sm:$0xff] %v1684_v27   ;;  %v696_v32 = vadd.f32 %v1825_v30, %v2089_v36  ;;  %v824_v33 = vadd.f32 %v1857_v31, %v2089_v36  ;;  %v891_v43 = vmax.f32 %v685_v28, 0.0 }
 0x103   : > { %v687_v37 = vpop.f32.mrf.mxu0  ;;  %v815_v38 = vpop.f32.mrf.mxu1  ;;  %v923_v44 = vmax.f32 %v813_v29, 0.0 }
 0x104   : > { %v894_v39 = vmax.f32 %v696_v32, 0.0  ;;  %v926_v40 = vmax.f32 %v824_v33, 0.0  ;;  %v688_v41 = vadd.f32 %v2089_v36, %v687_v37  ;;  %v816_v42 = vadd.f32 %v2089_v36, %v815_v38 }
 0x105   : > { %v1828_v45 = vpop.f32.mrf.mxu0  ;;  %v1860_v46 = vpop.f32.mrf.mxu1 }
 0x106   : > { %v1619_v47 = vpack.c.bf16 %v894_v39, %v893_v34  ;;  %v1699_v48 = vpack.c.bf16 %v926_v40, %v925_v35  ;;  %v892_v49 = vmax.f32 %v688_v41, 0.0  ;;  %v924_v50 = vmax.f32 %v816_v42, 0.0 }
 0x107   : > { %v709_v51 = vadd.f32 %v1828_v45, %v2089_v36  ;;  %v837_v52 = vadd.f32 %v1860_v46, %v2089_v36  ;;  %v700_v53 = vpop.f32.mrf.mxu0  ;;  %v828_v54 = vpop.f32.mrf.mxu1 }
 0x108   : > { %1739 = vst [vmem:[%s2104_s6 + $0x48] sm:$0xff] %v1619_v47   ;;  %1755 = vst [vmem:[%s2104_s6 + $0xc8] sm:$0xff] %v1699_v48   ;;  %v1614_v55 = vpack.c.bf16 %v892_v49, %v891_v43  ;;  %v1694_v56 = vpack.c.bf16 %v924_v50, %v923_v44  ;;  %v701_v57 = vadd.f32 %v2089_v36, %v700_v53 }
 0x109   : > { %v829_v58 = vadd.f32 %v2089_v36, %v828_v54  ;;  %v1829_v59 = vpop.f32.mrf.mxu0  ;;  %v1861_v60 = vpop.f32.mrf.mxu1  ;;  %v897_v63 = vmax.f32 %v709_v51, 0.0  ;;  %v929_v0 = vmax.f32 %v837_v52, 0.0 }
 0x10a   : > { %1738 = vst [vmem:[%s2104_s6 + $0x40] sm:$0xff] %v1614_v55   ;;  %1754 = vst [vmem:[%s2104_s6 + $0xc0] sm:$0xff] %v1694_v56   ;;  %v712_v61 = vadd.f32 %v1829_v59, %v2089_v36  ;;  %v840_v62 = vadd.f32 %v1861_v60, %v2089_v36  ;;  %v895_v7 = vmax.f32 %v701_v57, 0.0 }
 0x10b   : > { %v703_v1 = vpop.f32.mrf.mxu0  ;;  %v831_v2 = vpop.f32.mrf.mxu1  ;;  %v927_v8 = vmax.f32 %v829_v58, 0.0 }
 0x10c   : > { %v898_v3 = vmax.f32 %v712_v61, 0.0  ;;  %v930_v4 = vmax.f32 %v840_v62, 0.0  ;;  %v704_v5 = vadd.f32 %v2089_v36, %v703_v1  ;;  %v832_v6 = vadd.f32 %v2089_v36, %v831_v2 }
 0x10d   : > { %v1832_v9 = vpop.f32.mrf.mxu0  ;;  %v1864_v10 = vpop.f32.mrf.mxu1 }
 0x10e   : > { %v1629_v11 = vpack.c.bf16 %v898_v3, %v897_v63  ;;  %v1709_v12 = vpack.c.bf16 %v930_v4, %v929_v0  ;;  %v896_v13 = vmax.f32 %v704_v5, 0.0  ;;  %v928_v14 = vmax.f32 %v832_v6, 0.0 }
 0x10f   : > { %v725_v15 = vadd.f32 %v1832_v9, %v2089_v36  ;;  %v853_v16 = vadd.f32 %v1864_v10, %v2089_v36  ;;  %v716_v17 = vpop.f32.mrf.mxu0  ;;  %v844_v18 = vpop.f32.mrf.mxu1 }
 0x110   : > { %1741 = vst [vmem:[%s2104_s6 + $0x58] sm:$0xff] %v1629_v11   ;;  %1757 = vst [vmem:[%s2104_s6 + $0xd8] sm:$0xff] %v1709_v12   ;;  %v1624_v19 = vpack.c.bf16 %v896_v13, %v895_v7  ;;  %v1704_v20 = vpack.c.bf16 %v928_v14, %v927_v8  ;;  %v717_v21 = vadd.f32 %v2089_v36, %v716_v17 }
 0x111   : > { %v845_v22 = vadd.f32 %v2089_v36, %v844_v18  ;;  %v1833_v23 = vpop.f32.mrf.mxu0  ;;  %v1865_v24 = vpop.f32.mrf.mxu1  ;;  %v901_v27 = vmax.f32 %v725_v15, 0.0  ;;  %v933_v28 = vmax.f32 %v853_v16, 0.0 }
 0x112   : > { %1740 = vst [vmem:[%s2104_s6 + $0x50] sm:$0xff] %v1624_v19   ;;  %1756 = vst [vmem:[%s2104_s6 + $0xd0] sm:$0xff] %v1704_v20   ;;  %v728_v25 = vadd.f32 %v1833_v23, %v2089_v36  ;;  %v856_v26 = vadd.f32 %v1865_v24, %v2089_v36  ;;  %v899_v35 = vmax.f32 %v717_v21, 0.0 }
 0x113   : > { %v719_v29 = vpop.f32.mrf.mxu0  ;;  %v847_v30 = vpop.f32.mrf.mxu1  ;;  %v931_v37 = vmax.f32 %v845_v22, 0.0 }
 0x114   : > { %v902_v31 = vmax.f32 %v728_v25, 0.0  ;;  %v934_v32 = vmax.f32 %v856_v26, 0.0  ;;  %v720_v33 = vadd.f32 %v2089_v36, %v719_v29  ;;  %v848_v34 = vadd.f32 %v2089_v36, %v847_v30 }
 0x115   : > { %v1836_v38 = vpop.f32.mrf.mxu0  ;;  %v1868_v39 = vpop.f32.mrf.mxu1 }
 0x116   : > { %v1639_v40 = vpack.c.bf16 %v902_v31, %v901_v27  ;;  %v1719_v41 = vpack.c.bf16 %v934_v32, %v933_v28  ;;  %v900_v42 = vmax.f32 %v720_v33, 0.0  ;;  %v932_v43 = vmax.f32 %v848_v34, 0.0 }
 0x117   : > { %v741_v44 = vadd.f32 %v1836_v38, %v2089_v36  ;;  %v869_v45 = vadd.f32 %v1868_v39, %v2089_v36  ;;  %v732_v46 = vpop.f32.mrf.mxu0  ;;  %v860_v47 = vpop.f32.mrf.mxu1 }
 0x118   : > { %1743 = vst [vmem:[%s2104_s6 + $0x68] sm:$0xff] %v1639_v40   ;;  %1759 = vst [vmem:[%s2104_s6 + $0xe8] sm:$0xff] %v1719_v41   ;;  %v1634_v48 = vpack.c.bf16 %v900_v42, %v899_v35  ;;  %v1714_v49 = vpack.c.bf16 %v932_v43, %v931_v37  ;;  %v733_v50 = vadd.f32 %v2089_v36, %v732_v46 }
 0x119   : > { %v861_v51 = vadd.f32 %v2089_v36, %v860_v47  ;;  %v1837_v52 = vpop.f32.mrf.mxu0  ;;  %v1869_v53 = vpop.f32.mrf.mxu1  ;;  %v905_v56 = vmax.f32 %v741_v44, 0.0  ;;  %v937_v57 = vmax.f32 %v869_v45, 0.0 }
 0x11a   : > { %1742 = vst [vmem:[%s2104_s6 + $0x60] sm:$0xff] %v1634_v48   ;;  %1758 = vst [vmem:[%s2104_s6 + $0xe0] sm:$0xff] %v1714_v49   ;;  %v744_v54 = vadd.f32 %v1837_v52, %v2089_v36  ;;  %v872_v55 = vadd.f32 %v1869_v53, %v2089_v36  ;;  %v903_v0 = vmax.f32 %v733_v50, 0.0 }
 0x11b   : > { %v735_v58 = vpop.f32.mrf.mxu0  ;;  %v863_v59 = vpop.f32.mrf.mxu1  ;;  %v935_v1 = vmax.f32 %v861_v51, 0.0 }
 0x11c   : > { %v906_v60 = vmax.f32 %v744_v54, 0.0  ;;  %v938_v61 = vmax.f32 %v872_v55, 0.0  ;;  %v736_v62 = vadd.f32 %v2089_v36, %v735_v58  ;;  %v864_v63 = vadd.f32 %v2089_v36, %v863_v59 }
 0x11e   : > { %v1649_v2 = vpack.c.bf16 %v906_v60, %v905_v56  ;;  %v1729_v3 = vpack.c.bf16 %v938_v61, %v937_v57  ;;  %v904_v4 = vmax.f32 %v736_v62, 0.0  ;;  %v936_v5 = vmax.f32 %v864_v63, 0.0 }
 0x120   : > { %1745 = vst [vmem:[%s2104_s6 + $0x78] sm:$0xff] %v1649_v2   ;;  %1761 = vst [vmem:[%s2104_s6 + $0xf8] sm:$0xff] %v1729_v3   ;;  %v1644_v6 = vpack.c.bf16 %v904_v4, %v903_v0  ;;  %v1724_v7 = vpack.c.bf16 %v936_v5, %v935_v1 }
 0x122   : > { %1744 = vst [vmem:[%s2104_s6 + $0x70] sm:$0xff] %v1644_v6   ;;  %1760 = vst [vmem:[%s2104_s6 + $0xf0] sm:$0xff] %v1724_v7  }
 0x123 PF: > { %s13_s14 = sadd.s32 1, %s1960_s14   ;;  %s2207_s12 = smov %s1956_s13 }
 0x124   : > { %p10_p5 = scmp.ge.s32.totalorder %s13_s14, 4   ;;  %s2208_s13 = smov %s2210_s15 }
 0x126   :  { %12 = sbr.rel (!%p10_p5) target bundleno = 2 (0x2), region = 68 }

// kernel: forward.5
= control target key start
LH: loop header
LB: loop body
LE: loop exit
PB: predicated region body
PF: predicated region fallthrough
CT: control target
= control target key end

     0   :  { %s1644_s1 = inlined_call_operand.vmem [shape: bf16[512,128], index: 1, kind: input, shape index: {}]   ;;  %s1645_s0 = inlined_call_operand.vmem [shape: bf16[168,512], index: 0, kind: input, shape index: {}]   ;;  %s1646_s2 = inlined_call_operand.vmem [shape: f32[1,128], index: 2, kind: input, shape index: {}]   ;;  %s1647_s3 = inlined_call_operand.vmem [shape: bf16[168,128], index: 3, kind: output, shape index: {}]  }
   0x1   :  { %v1247_v0 = vld [vmem:[%s1644_s1 + $0x78] sm:$0xff]   ;;  %v1251_v4 = vld [vmem:[%s1644_s1 + $0x70] sm:$0xff]   ;;  %v1255_v8 = vld [vmem:[%s1644_s1 + $0x68] sm:$0xff]  }
   0x2   :  { %v1248_v1 = vld [vmem:[%s1644_s1 + $0xf8] sm:$0xff]   ;;  %1083 = vmatprep.subr.bf16.mxu0 %v1247_v0  ;;  %v1252_v5 = vld [vmem:[%s1644_s1 + $0xf0] sm:$0xff]   ;;  %v1256_v9 = vld [vmem:[%s1644_s1 + $0xe8] sm:$0xff]  }
   0x3   :  { %v1249_v2 = vld [vmem:[%s1644_s1 + $0x38] sm:$0xff]   ;;  %1165 = vmatprep.subr.bf16.mxu1 %v1248_v1  ;;  %v1253_v6 = vld [vmem:[%s1644_s1 + $0x30] sm:$0xff]   ;;  %v1257_v10 = vld [vmem:[%s1644_s1 + $0x28] sm:$0xff]  }
   0x4   :  { %v1250_v3 = vld [vmem:[%s1644_s1 + $0xb8] sm:$0xff]   ;;  %1084 = vmatpush3.bf16.msra.mxu0 %v1249_v2  ;;  %v1254_v7 = vld [vmem:[%s1644_s1 + $0xb0] sm:$0xff]   ;;  %v1258_v11 = vld [vmem:[%s1644_s1 + $0xa8] sm:$0xff]  }
   0x5   :  { %1166 = vmatpush3.bf16.msra.mxu1 %v1250_v3  ;;  %1085 = vmatprep.subr.bf16.mxu0 %v1251_v4  ;;  %v1259_v12 = vld [vmem:[%s1644_s1 + $0x60] sm:$0xff]   ;;  %v1263_v16 = vld [vmem:[%s1644_s1 + $0x58] sm:$0xff]   ;;  %v1267_v20 = vld [vmem:[%s1644_s1 + $0x50] sm:$0xff]  }
   0x6   :  { %1167 = vmatprep.subr.bf16.mxu1 %v1252_v5  ;;  %v1260_v13 = vld [vmem:[%s1644_s1 + $0xe0] sm:$0xff]   ;;  %v1264_v17 = vld [vmem:[%s1644_s1 + $0xd8] sm:$0xff]   ;;  %v1268_v21 = vld [vmem:[%s1644_s1 + $0xd0] sm:$0xff]  }
   0x7   :  { %v1261_v14 = vld [vmem:[%s1644_s1 + $0x20] sm:$0xff]   ;;  %v1265_v18 = vld [vmem:[%s1644_s1 + $0x18] sm:$0xff]   ;;  %v1269_v22 = vld [vmem:[%s1644_s1 + $0x10] sm:$0xff]  }
   0x8   :  { %1086 = vmatpush3.bf16.msra.mxu0 %v1253_v6  ;;  %v1262_v15 = vld [vmem:[%s1644_s1 + $0xa0] sm:$0xff]   ;;  %v1266_v19 = vld [vmem:[%s1644_s1 + $0x98] sm:$0xff]   ;;  %v1270_v23 = vld [vmem:[%s1644_s1 + $0x90] sm:$0xff]  }
   0x9   :  { %1168 = vmatpush3.bf16.msra.mxu1 %v1254_v7  ;;  %1087 = vmatprep.subr.bf16.mxu0 %v1255_v8  ;;  %v1271_v24 = vld [vmem:[%s1644_s1 + $0x48] sm:$0xff]   ;;  %v1275_v28 = vld [vmem:[%s1644_s1 + $0x40] sm:$0xff]  }
   0xa   :  { %1169 = vmatprep.subr.bf16.mxu1 %v1256_v9  ;;  %v1272_v25 = vld [vmem:[%s1644_s1 + $0xc8] sm:$0xff]   ;;  %v1276_v29 = vld [vmem:[%s1644_s1 + $0xc0] sm:$0xff]  }
   0xb   :  { %v1273_v26 = vld [vmem:[%s1644_s1 + $0x8] sm:$0xff]   ;;  %v1277_v30 = vld [vmem:[%s1644_s1] sm:$0xff]  }
   0xc   :  { %1088 = vmatpush3.bf16.msra.mxu0 %v1257_v10  ;;  %v1274_v27 = vld [vmem:[%s1644_s1 + $0x88] sm:$0xff]   ;;  %v1278_v31 = vld [vmem:[%s1644_s1 + $0x80] sm:$0xff]  }
   0xd   :  { %1170 = vmatpush3.bf16.msra.mxu1 %v1258_v11  ;;  %1089 = vmatprep.subr.bf16.mxu0 %v1259_v12  ;;  %v1279_v32 = vld [vmem:[%s1645_s0] ss:$16 sps:$4 sm:$0xff]   ;;  %v1281_v33 = vld [vmem:[%s1645_s0 + $0x4] ss:$16 sps:$4 sm:$0xff]   ;;  %v1282_v34 = vld [vmem:[%s1645_s0 + $0x8] ss:$16 sps:$4 sm:$0xff]  }
   0xe   :  { %1171 = vmatprep.subr.bf16.mxu1 %v1260_v13  ;;  %v1284_v35 = vld [vmem:[%s1645_s0 + $0xc] ss:$16 sps:$4 sm:$0xff]   ;;  %566 = vmatprep.mubr.bf16.mxu0 %v1281_v33  ;;  %v1285_v36 = vld [vmem:[%s1645_s0 + $0x24] ss:$16 sps:$4 sm:$0xff]   ;;  %v1289_v38 = vld [vmem:[%s1645_s0 + $0x20] ss:$16 sps:$4 sm:$0xff]  }
   0xf   :  { %686 = vmatprep.mubr.bf16.mxu1 %v1284_v35  ;;  %v1287_v37 = vld [vmem:[%s1645_s0 + $0x2c] ss:$16 sps:$4 sm:$0xff]   ;;  %v1290_v39 = vld [vmem:[%s1645_s0 + $0x28] ss:$16 sps:$4 sm:$0xff]   ;;  %v1291_v40 = vld [vmem:[%s1645_s0 + $0x44] ss:$16 sps:$4 sm:$0xff]  }
  0x10   :  { %1090 = vmatpush3.bf16.msra.mxu0 %v1261_v14  ;;  %v1293_v41 = vld [vmem:[%s1645_s0 + $0x4c] ss:$16 sps:$4 sm:$0xff]   ;;  %v1295_v42 = vld [vmem:[%s1645_s0 + $0x40] ss:$16 sps:$4 sm:$0xff]   ;;  %v1296_v43 = vld [vmem:[%s1645_s0 + $0x48] ss:$16 sps:$4 sm:$0xff]  }
  0x11   :  { %1172 = vmatpush3.bf16.msra.mxu1 %v1262_v15  ;;  %1091 = vmatprep.subr.bf16.mxu0 %v1263_v16  ;;  %v1297_v44 = vld [vmem:[%s1645_s0 + $0x64] ss:$16 sps:$4 sm:$0xff]   ;;  %v1299_v45 = vld [vmem:[%s1645_s0 + $0x6c] ss:$16 sps:$4 sm:$0xff]   ;;  %v1301_v46 = vld [vmem:[%s1645_s0 + $0x60] ss:$16 sps:$4 sm:$0xff]  }
  0x12   :  { %1173 = vmatprep.subr.bf16.mxu1 %v1264_v17  ;;  %v1302_v47 = vld [vmem:[%s1645_s0 + $0x68] ss:$16 sps:$4 sm:$0xff]   ;;  %v1303_v48 = vld [vmem:[%s1645_s0 + $0x84] ss:$16 sps:$4 sm:$0xff]   ;;  %v1305_v49 = vld [vmem:[%s1645_s0 + $0x8c] ss:$16 sps:$4 sm:$0xff]  }
  0x13   :  { %v1307_v50 = vld [vmem:[%s1645_s0 + $0x80] ss:$16 sps:$4 sm:$0xff]   ;;  %v1308_v51 = vld [vmem:[%s1645_s0 + $0x88] ss:$16 sps:$4 sm:$0xff]   ;;  %v1309_v52 = vld [vmem:[%s1645_s0 + $0xa4] ss:$16 sps:$4 sm:$0xff]  }
  0x14   :  { %1092 = vmatpush3.bf16.msra.mxu0 %v1265_v18  ;;  %v1311_v53 = vld [vmem:[%s1645_s0 + $0xac] ss:$16 sps:$4 sm:$0xff]   ;;  %v1313_v54 = vld [vmem:[%s1645_s0 + $0xa0] ss:$16 sps:$4 sm:$0xff]   ;;  %v1314_v55 = vld [vmem:[%s1645_s0 + $0xa8] ss:$16 sps:$4 sm:$0xff]  }
  0x15   :  { %1174 = vmatpush3.bf16.msra.mxu1 %v1266_v19  ;;  %1093 = vmatprep.subr.bf16.mxu0 %v1267_v20  ;;  %v1315_v56 = vld [vmem:[%s1645_s0 + $0xc4] ss:$16 sps:$4 sm:$0xff]   ;;  %v1317_v57 = vld [vmem:[%s1645_s0 + $0xcc] ss:$16 sps:$4 sm:$0xff]   ;;  %v1319_v58 = vld [vmem:[%s1645_s0 + $0xc0] ss:$16 sps:$4 sm:$0xff]  }
  0x16   :  { %1175 = vmatprep.subr.bf16.mxu1 %v1268_v21  ;;  %v1320_v59 = vld [vmem:[%s1645_s0 + $0xc8] ss:$16 sps:$4 sm:$0xff]   ;;  %v1321_v60 = vld [vmem:[%s1645_s0 + $0xe4] ss:$16 sps:$4 sm:$0xff]   ;;  %v1323_v61 = vld [vmem:[%s1645_s0 + $0xec] ss:$16 sps:$4 sm:$0xff]  }
  0x17   :  { %v1325_v62 = vld [vmem:[%s1645_s0 + $0xe0] ss:$16 sps:$4 sm:$0xff]   ;;  %v1326_v63 = vld [vmem:[%s1645_s0 + $0xe8] ss:$16 sps:$4 sm:$0xff]   ;;  %v1327_v0 = vld [vmem:[%s1645_s0 + $0x104] ss:$16 sps:$4 sm:$0xff]  }
  0x18   :  { %1094 = vmatpush3.bf16.msra.mxu0 %v1269_v22  ;;  %v1329_v1 = vld [vmem:[%s1645_s0 + $0x10c] ss:$16 sps:$4 sm:$0xff]   ;;  %v1331_v2 = vld [vmem:[%s1645_s0 + $0x100] ss:$16 sps:$4 sm:$0xff]   ;;  %v1332_v3 = vld [vmem:[%s1645_s0 + $0x108] ss:$16 sps:$4 sm:$0xff]  }
  0x19   :  { %1176 = vmatpush3.bf16.msra.mxu1 %v1270_v23  ;;  %1095 = vmatprep.subr.bf16.mxu0 %v1271_v24  ;;  %v1333_v4 = vld [vmem:[%s1645_s0 + $0x124] ss:$16 sps:$4 sm:$0xff]   ;;  %v1335_v5 = vld [vmem:[%s1645_s0 + $0x12c] ss:$16 sps:$4 sm:$0xff]   ;;  %v1337_v8 = vld [vmem:[%s1645_s0 + $0x120] ss:$16 sps:$4 sm:$0xff]  }
  0x1a   :  { %1177 = vmatprep.subr.bf16.mxu1 %v1272_v25  ;;  %v55_v6 = vld [vmem:[%s1645_s0 + $0x140] sm:$0xff]  ;;  %v56_v7 = vld [vmem:[%s1645_s0 + $0x148] sm:$0xff] }
  0x1b   :  { %v1338_v9 = vld [vmem:[%s1645_s0 + $0x128] ss:$16 sps:$4 sm:$0xff]   ;;  %v947_v10 = vcombine.high %v55_v6, %v55_v6  ;;  %v949_v11 = vcombine.high %v56_v7, %v56_v7  ;;  %v946_v12 = vcombine.low %v55_v6, %v55_v6  ;;  %v948_v13 = vcombine.low %v56_v7, %v56_v7  ;;  %v1588_v16 = vld [vmem:[%s1646_s2] ss:$0 sm:$0xff] }
  0x1c   :  { %1096 = vmatpush3.bf16.msra.mxu0 %v1273_v26 }
  0x1d   :  { %1178 = vmatpush3.bf16.msra.mxu1 %v1274_v27  ;;  %1097 = vmatprep.subr.bf16.mxu0 %v1275_v28 }
  0x1e   :  { %1179 = vmatprep.subr.bf16.mxu1 %v1276_v29 }
  0x20   :  { %1098 = vmatpush3.bf16.msra.mxu0 %v1277_v30 }
  0x21   :  { %1180 = vmatpush3.bf16.msra.mxu1 %v1278_v31 }
  0x23   :  { %567 = vmatmul.mubr.bf16.vlgmr.msra.gmra.mxu0 %v1279_v32 }
  0x24   :  { %687 = vmatmul.mubr.bf16.vlgmr.msra.gmra.mxu1 %v1282_v34  ;;  %574 = vmatprep.mubr.bf16.mxu0 %v1285_v36 }
  0x25   :  { %694 = vmatprep.mubr.bf16.mxu1 %v1287_v37 }
  0x2b   :  { %575 = vmatmul.mubr.bf16.gmra.mxu0 %v1289_v38 }
  0x2c   :  { %695 = vmatmul.mubr.bf16.gmra.mxu1 %v1290_v39  ;;  %582 = vmatprep.mubr.bf16.mxu0 %v1291_v40 }
  0x2d   :  { %702 = vmatprep.mubr.bf16.mxu1 %v1293_v41 }
  0x33   :  { %583 = vmatmul.mubr.bf16.gmra.mxu0 %v1295_v42 }
  0x34   :  { %703 = vmatmul.mubr.bf16.gmra.mxu1 %v1296_v43  ;;  %590 = vmatprep.mubr.bf16.mxu0 %v1297_v44 }
  0x35   :  { %710 = vmatprep.mubr.bf16.mxu1 %v1299_v45 }
  0x3b   :  { %591 = vmatmul.mubr.bf16.gmra.mxu0 %v1301_v46 }
  0x3c   :  { %711 = vmatmul.mubr.bf16.gmra.mxu1 %v1302_v47  ;;  %598 = vmatprep.mubr.bf16.mxu0 %v1303_v48 }
  0x3d   :  { %718 = vmatprep.mubr.bf16.mxu1 %v1305_v49 }
  0x43   :  { %599 = vmatmul.mubr.bf16.gmra.mxu0 %v1307_v50 }
  0x44   :  { %719 = vmatmul.mubr.bf16.gmra.mxu1 %v1308_v51  ;;  %606 = vmatprep.mubr.bf16.mxu0 %v1309_v52 }
  0x45   :  { %726 = vmatprep.mubr.bf16.mxu1 %v1311_v53 }
  0x4b   :  { %607 = vmatmul.mubr.bf16.gmra.mxu0 %v1313_v54 }
  0x4c   :  { %727 = vmatmul.mubr.bf16.gmra.mxu1 %v1314_v55  ;;  %614 = vmatprep.mubr.bf16.mxu0 %v1315_v56 }
  0x4d   :  { %734 = vmatprep.mubr.bf16.mxu1 %v1317_v57 }
  0x53   :  { %615 = vmatmul.mubr.bf16.gmra.mxu0 %v1319_v58 }
  0x54   :  { %735 = vmatmul.mubr.bf16.gmra.mxu1 %v1320_v59  ;;  %622 = vmatprep.mubr.bf16.mxu0 %v1321_v60 }
  0x55   :  { %742 = vmatprep.mubr.bf16.mxu1 %v1323_v61 }
  0x5b   :  { %623 = vmatmul.mubr.bf16.gmra.mxu0 %v1325_v62 }
  0x5c   :  { %743 = vmatmul.mubr.bf16.gmra.mxu1 %v1326_v63  ;;  %630 = vmatprep.mubr.bf16.mxu0 %v1327_v0 }
  0x5d   :  { %750 = vmatprep.mubr.bf16.mxu1 %v1329_v1 }
  0x63   :  { %631 = vmatmul.mubr.bf16.gmra.mxu0 %v1331_v2 }
  0x64   :  { %751 = vmatmul.mubr.bf16.gmra.mxu1 %v1332_v3  ;;  %638 = vmatprep.mubr.bf16.mxu0 %v1333_v4 }
  0x65   :  { %758 = vmatprep.mubr.bf16.mxu1 %v1335_v5 }
  0x6b   :  { %639 = vmatmul.mubr.bf16.gmra.mxu0 %v1337_v8 }
  0x6c   :  { %759 = vmatmul.mubr.bf16.gmra.mxu1 %v1338_v9  ;;  %646 = vmatprep.mubr.bf16.mxu0 %v947_v10 }
  0x6d   :  { %766 = vmatprep.mubr.bf16.mxu1 %v949_v11 }
  0x73   :  { %647 = vmatmul.mubr.bf16.gmra.mxu0 %v946_v12 }
  0x74   :  { %767 = vmatmul.mubr.bf16.gmra.mxu1 %v948_v13 }
  0xe3   :  { %v1099_v14 = vpop.f32.mrf.mxu0 }
  0xe4   :  { %v1181_v15 = vpop.f32.mrf.mxu1 }
  0xe5   :  { %v1100_v17 = vpop.f32.mrf.mxu0 }
  0xe6   :  { %v1101_v18 = vadd.f32 %v1100_v17, %v1099_v14  ;;  %v1182_v19 = vpop.f32.mrf.mxu1 }
  0xe7   :  { %v1102_v20 = vpop.f32.mrf.mxu0  ;;  %v1183_v24 = vadd.f32 %v1182_v19, %v1181_v15 }
  0xe8   :  { %v569_v21 = vadd.f32 %v1101_v18, %v1588_v16  ;;  %v1184_v22 = vpop.f32.mrf.mxu1 }
  0xe9   :  { %v1103_v23 = vpop.f32.mrf.mxu0 }
  0xea   :  { %v1104_v25 = vadd.f32 %v1103_v23, %v1102_v20  ;;  %v1185_v26 = vpop.f32.mrf.mxu1  ;;  %v689_v28 = vadd.f32 %v1183_v24, %v569_v21 }
  0xeb   :  { %v1105_v27 = vpop.f32.mrf.mxu0  ;;  %v1186_v30 = vadd.f32 %v1185_v26, %v1184_v22 }
  0xec   :  { %v572_v29 = vadd.f32 %v1104_v25, %v1588_v16  ;;  %v1187_v31 = vpop.f32.mrf.mxu1  ;;  %v774_v37 = vmax.f32 %v689_v28, 0.0 }
  0xed   :  { %v1106_v32 = vpop.f32.mrf.mxu0 }
  0xee   :  { %v692_v33 = vadd.f32 %v1186_v30, %v572_v29  ;;  %v1107_v34 = vadd.f32 %v1106_v32, %v1105_v27  ;;  %v1188_v35 = vpop.f32.mrf.mxu1 }
  0xef   :  { %v1108_v36 = vpop.f32.mrf.mxu0  ;;  %v1189_v43 = vadd.f32 %v1188_v35, %v1187_v31 }
  0xf0   :  { %v775_v38 = vmax.f32 %v692_v33, 0.0  ;;  %v577_v39 = vadd.f32 %v1107_v34, %v1588_v16  ;;  %v1190_v40 = vpop.f32.mrf.mxu1 }
  0xf1   :  { %v1109_v41 = vpop.f32.mrf.mxu0 }
  0xf2   :  { %v1027_v42 = vpack.c.bf16 %v775_v38, %v774_v37  ;;  %v1110_v44 = vadd.f32 %v1109_v41, %v1108_v36  ;;  %v1191_v45 = vpop.f32.mrf.mxu1  ;;  %v697_v47 = vadd.f32 %v1189_v43, %v577_v39 }
  0xf3   :  { %v1111_v46 = vpop.f32.mrf.mxu0  ;;  %v1192_v49 = vadd.f32 %v1191_v45, %v1190_v40 }
  0xf4   :  { %1028 = vst [vmem:[%s1647_s3] sm:$0xff] %v1027_v42   ;;  %v580_v48 = vadd.f32 %v1110_v44, %v1588_v16  ;;  %v1193_v50 = vpop.f32.mrf.mxu1  ;;  %v776_v56 = vmax.f32 %v697_v47, 0.0 }
  0xf5   :  { %v1112_v51 = vpop.f32.mrf.mxu0 }
  0xf6   :  { %v700_v52 = vadd.f32 %v1192_v49, %v580_v48  ;;  %v1113_v53 = vadd.f32 %v1112_v51, %v1111_v46  ;;  %v1194_v54 = vpop.f32.mrf.mxu1 }
  0xf7   :  { %v1114_v55 = vpop.f32.mrf.mxu0  ;;  %v1195_v62 = vadd.f32 %v1194_v54, %v1193_v50 }
  0xf8   :  { %v777_v57 = vmax.f32 %v700_v52, 0.0  ;;  %v585_v58 = vadd.f32 %v1113_v53, %v1588_v16  ;;  %v1196_v59 = vpop.f32.mrf.mxu1 }
  0xf9   :  { %v1115_v60 = vpop.f32.mrf.mxu0 }
  0xfa   :  { %v1032_v61 = vpack.c.bf16 %v777_v57, %v776_v56  ;;  %v1116_v63 = vadd.f32 %v1115_v60, %v1114_v55  ;;  %v1197_v0 = vpop.f32.mrf.mxu1  ;;  %v705_v2 = vadd.f32 %v1195_v62, %v585_v58 }
  0xfb   :  { %v1117_v1 = vpop.f32.mrf.mxu0  ;;  %v1198_v4 = vadd.f32 %v1197_v0, %v1196_v59 }
  0xfc   :  { %1074 = vst [vmem:[%s1647_s3 + $0x8] sm:$0xff] %v1032_v61   ;;  %v588_v3 = vadd.f32 %v1116_v63, %v1588_v16  ;;  %v1199_v5 = vpop.f32.mrf.mxu1  ;;  %v778_v11 = vmax.f32 %v705_v2, 0.0 }
  0xfd   :  { %v1118_v6 = vpop.f32.mrf.mxu0 }
  0xfe   :  { %v708_v7 = vadd.f32 %v1198_v4, %v588_v3  ;;  %v1119_v8 = vadd.f32 %v1118_v6, %v1117_v1  ;;  %v1200_v9 = vpop.f32.mrf.mxu1 }
  0xff   :  { %v1120_v10 = vpop.f32.mrf.mxu0  ;;  %v1201_v18 = vadd.f32 %v1200_v9, %v1199_v5 }
 0x100   :  { %v779_v12 = vmax.f32 %v708_v7, 0.0  ;;  %v593_v13 = vadd.f32 %v1119_v8, %v1588_v16  ;;  %v1202_v14 = vpop.f32.mrf.mxu1 }
 0x101   :  { %v1121_v15 = vpop.f32.mrf.mxu0 }
 0x102   :  { %v1037_v17 = vpack.c.bf16 %v779_v12, %v778_v11  ;;  %v1122_v19 = vadd.f32 %v1121_v15, %v1120_v10  ;;  %v1203_v20 = vpop.f32.mrf.mxu1  ;;  %v713_v22 = vadd.f32 %v1201_v18, %v593_v13 }
 0x103   :  { %v1123_v21 = vpop.f32.mrf.mxu0  ;;  %v1204_v24 = vadd.f32 %v1203_v20, %v1202_v14 }
 0x104   :  { %1075 = vst [vmem:[%s1647_s3 + $0x10] sm:$0xff] %v1037_v17   ;;  %v596_v23 = vadd.f32 %v1122_v19, %v1588_v16  ;;  %v1205_v25 = vpop.f32.mrf.mxu1  ;;  %v780_v31 = vmax.f32 %v713_v22, 0.0 }
 0x105   :  { %v1124_v26 = vpop.f32.mrf.mxu0 }
 0x106   :  { %v716_v27 = vadd.f32 %v1204_v24, %v596_v23  ;;  %v1125_v28 = vadd.f32 %v1124_v26, %v1123_v21  ;;  %v1206_v29 = vpop.f32.mrf.mxu1 }
 0x107   :  { %v1126_v30 = vpop.f32.mrf.mxu0  ;;  %v1207_v37 = vadd.f32 %v1206_v29, %v1205_v25 }
 0x108   :  { %v781_v32 = vmax.f32 %v716_v27, 0.0  ;;  %v601_v33 = vadd.f32 %v1125_v28, %v1588_v16  ;;  %v1208_v34 = vpop.f32.mrf.mxu1 }
 0x109   :  { %v1127_v35 = vpop.f32.mrf.mxu0 }
 0x10a   :  { %v1042_v36 = vpack.c.bf16 %v781_v32, %v780_v31  ;;  %v1128_v38 = vadd.f32 %v1127_v35, %v1126_v30  ;;  %v1209_v39 = vpop.f32.mrf.mxu1  ;;  %v721_v41 = vadd.f32 %v1207_v37, %v601_v33 }
 0x10b   :  { %v1129_v40 = vpop.f32.mrf.mxu0  ;;  %v1210_v43 = vadd.f32 %v1209_v39, %v1208_v34 }
 0x10c   :  { %1076 = vst [vmem:[%s1647_s3 + $0x18] sm:$0xff] %v1042_v36   ;;  %v604_v42 = vadd.f32 %v1128_v38, %v1588_v16  ;;  %v1211_v44 = vpop.f32.mrf.mxu1  ;;  %v782_v50 = vmax.f32 %v721_v41, 0.0 }
 0x10d   :  { %v1130_v45 = vpop.f32.mrf.mxu0 }
 0x10e   :  { %v724_v46 = vadd.f32 %v1210_v43, %v604_v42  ;;  %v1131_v47 = vadd.f32 %v1130_v45, %v1129_v40  ;;  %v1212_v48 = vpop.f32.mrf.mxu1 }
 0x10f   :  { %v1132_v49 = vpop.f32.mrf.mxu0  ;;  %v1213_v56 = vadd.f32 %v1212_v48, %v1211_v44 }
 0x110   :  { %v783_v51 = vmax.f32 %v724_v46, 0.0  ;;  %v609_v52 = vadd.f32 %v1131_v47, %v1588_v16  ;;  %v1214_v53 = vpop.f32.mrf.mxu1 }
 0x111   :  { %v1133_v54 = vpop.f32.mrf.mxu0 }
 0x112   :  { %v1047_v55 = vpack.c.bf16 %v783_v51, %v782_v50  ;;  %v1134_v57 = vadd.f32 %v1133_v54, %v1132_v49  ;;  %v1215_v58 = vpop.f32.mrf.mxu1  ;;  %v729_v60 = vadd.f32 %v1213_v56, %v609_v52 }
 0x113   :  { %v1135_v59 = vpop.f32.mrf.mxu0  ;;  %v1216_v62 = vadd.f32 %v1215_v58, %v1214_v53 }
 0x114   :  { %1077 = vst [vmem:[%s1647_s3 + $0x20] sm:$0xff] %v1047_v55   ;;  %v612_v61 = vadd.f32 %v1134_v57, %v1588_v16  ;;  %v1217_v63 = vpop.f32.mrf.mxu1  ;;  %v784_v5 = vmax.f32 %v729_v60, 0.0 }
 0x115   :  { %v1136_v0 = vpop.f32.mrf.mxu0 }
 0x116   :  { %v732_v1 = vadd.f32 %v1216_v62, %v612_v61  ;;  %v1137_v2 = vadd.f32 %v1136_v0, %v1135_v59  ;;  %v1218_v3 = vpop.f32.mrf.mxu1 }
 0x117   :  { %v1138_v4 = vpop.f32.mrf.mxu0  ;;  %v1219_v11 = vadd.f32 %v1218_v3, %v1217_v63 }
 0x118   :  { %v785_v6 = vmax.f32 %v732_v1, 0.0  ;;  %v617_v7 = vadd.f32 %v1137_v2, %v1588_v16  ;;  %v1220_v8 = vpop.f32.mrf.mxu1 }
 0x119   :  { %v1139_v9 = vpop.f32.mrf.mxu0 }
 0x11a   :  { %v1052_v10 = vpack.c.bf16 %v785_v6, %v784_v5  ;;  %v1140_v12 = vadd.f32 %v1139_v9, %v1138_v4  ;;  %v1221_v13 = vpop.f32.mrf.mxu1  ;;  %v737_v15 = vadd.f32 %v1219_v11, %v617_v7 }
 0x11b   :  { %v1141_v14 = vpop.f32.mrf.mxu0  ;;  %v1222_v18 = vadd.f32 %v1221_v13, %v1220_v8 }
 0x11c   :  { %1078 = vst [vmem:[%s1647_s3 + $0x28] sm:$0xff] %v1052_v10   ;;  %v620_v17 = vadd.f32 %v1140_v12, %v1588_v16  ;;  %v1223_v19 = vpop.f32.mrf.mxu1  ;;  %v786_v25 = vmax.f32 %v737_v15, 0.0 }
 0x11d   :  { %v1142_v20 = vpop.f32.mrf.mxu0 }
 0x11e   :  { %v740_v21 = vadd.f32 %v1222_v18, %v620_v17  ;;  %v1143_v22 = vadd.f32 %v1142_v20, %v1141_v14  ;;  %v1224_v23 = vpop.f32.mrf.mxu1 }
 0x11f   :  { %v1144_v24 = vpop.f32.mrf.mxu0  ;;  %v1225_v31 = vadd.f32 %v1224_v23, %v1223_v19 }
 0x120   :  { %v787_v26 = vmax.f32 %v740_v21, 0.0  ;;  %v625_v27 = vadd.f32 %v1143_v22, %v1588_v16  ;;  %v1226_v28 = vpop.f32.mrf.mxu1 }
 0x121   :  { %v1145_v29 = vpop.f32.mrf.mxu0 }
 0x122   :  { %v1057_v30 = vpack.c.bf16 %v787_v26, %v786_v25  ;;  %v1146_v32 = vadd.f32 %v1145_v29, %v1144_v24  ;;  %v1227_v33 = vpop.f32.mrf.mxu1  ;;  %v745_v35 = vadd.f32 %v1225_v31, %v625_v27 }
 0x123   :  { %v1147_v34 = vpop.f32.mrf.mxu0  ;;  %v1228_v37 = vadd.f32 %v1227_v33, %v1226_v28 }
 0x124   :  { %1079 = vst [vmem:[%s1647_s3 + $0x30] sm:$0xff] %v1057_v30   ;;  %v628_v36 = vadd.f32 %v1146_v32, %v1588_v16  ;;  %v1229_v38 = vpop.f32.mrf.mxu1  ;;  %v788_v44 = vmax.f32 %v745_v35, 0.0 }
 0x125   :  { %v1148_v39 = vpop.f32.mrf.mxu0 }
 0x126   :  { %v748_v40 = vadd.f32 %v1228_v37, %v628_v36  ;;  %v1149_v41 = vadd.f32 %v1148_v39, %v1147_v34  ;;  %v1230_v42 = vpop.f32.mrf.mxu1 }
 0x127   :  { %v1150_v43 = vpop.f32.mrf.mxu0  ;;  %v1231_v50 = vadd.f32 %v1230_v42, %v1229_v38 }
 0x128   :  { %v789_v45 = vmax.f32 %v748_v40, 0.0  ;;  %v633_v46 = vadd.f32 %v1149_v41, %v1588_v16  ;;  %v1232_v47 = vpop.f32.mrf.mxu1 }
 0x129   :  { %v1151_v48 = vpop.f32.mrf.mxu0 }
 0x12a   :  { %v1062_v49 = vpack.c.bf16 %v789_v45, %v788_v44  ;;  %v1152_v51 = vadd.f32 %v1151_v48, %v1150_v43  ;;  %v1233_v52 = vpop.f32.mrf.mxu1  ;;  %v753_v54 = vadd.f32 %v1231_v50, %v633_v46 }
 0x12b   :  { %v1153_v53 = vpop.f32.mrf.mxu0  ;;  %v1234_v56 = vadd.f32 %v1233_v52, %v1232_v47 }
 0x12c   :  { %1080 = vst [vmem:[%s1647_s3 + $0x38] sm:$0xff] %v1062_v49   ;;  %v636_v55 = vadd.f32 %v1152_v51, %v1588_v16  ;;  %v1235_v57 = vpop.f32.mrf.mxu1  ;;  %v790_v63 = vmax.f32 %v753_v54, 0.0 }
 0x12d   :  { %v1154_v58 = vpop.f32.mrf.mxu0 }
 0x12e   :  { %v756_v59 = vadd.f32 %v1234_v56, %v636_v55  ;;  %v1155_v60 = vadd.f32 %v1154_v58, %v1153_v53  ;;  %v1236_v61 = vpop.f32.mrf.mxu1 }
 0x12f   :  { %v1156_v62 = vpop.f32.mrf.mxu0  ;;  %v1237_v5 = vadd.f32 %v1236_v61, %v1235_v57 }
 0x130   :  { %v791_v0 = vmax.f32 %v756_v59, 0.0  ;;  %v641_v1 = vadd.f32 %v1155_v60, %v1588_v16  ;;  %v1238_v2 = vpop.f32.mrf.mxu1 }
 0x131   :  { %v1157_v3 = vpop.f32.mrf.mxu0 }
 0x132   :  { %v1067_v4 = vpack.c.bf16 %v791_v0, %v790_v63  ;;  %v1158_v6 = vadd.f32 %v1157_v3, %v1156_v62  ;;  %v1239_v7 = vpop.f32.mrf.mxu1  ;;  %v761_v9 = vadd.f32 %v1237_v5, %v641_v1 }
 0x133   :  { %v1159_v8 = vpop.f32.mrf.mxu0  ;;  %v1240_v11 = vadd.f32 %v1239_v7, %v1238_v2 }
 0x134   :  { %1081 = vst [vmem:[%s1647_s3 + $0x40] sm:$0xff] %v1067_v4   ;;  %v644_v10 = vadd.f32 %v1158_v6, %v1588_v16  ;;  %v1241_v12 = vpop.f32.mrf.mxu1  ;;  %v792_v19 = vmax.f32 %v761_v9, 0.0 }
 0x135   :  { %v1160_v13 = vpop.f32.mrf.mxu0 }
 0x136   :  { %v764_v14 = vadd.f32 %v1240_v11, %v644_v10  ;;  %v1161_v15 = vadd.f32 %v1160_v13, %v1159_v8  ;;  %v1242_v17 = vpop.f32.mrf.mxu1 }
 0x137   :  { %v1162_v18 = vpop.f32.mrf.mxu0  ;;  %v1243_v22 = vadd.f32 %v1242_v17, %v1241_v12 }
 0x138   :  { %v793_v20 = vmax.f32 %v764_v14, 0.0  ;;  %v649_v21 = vadd.f32 %v1161_v15, %v1588_v16  ;;  %v1244_v23 = vpop.f32.mrf.mxu1 }
 0x139   :  { %v1163_v24 = vpop.f32.mrf.mxu0 }
 0x13a   :  { %v1072_v25 = vpack.c.bf16 %v793_v20, %v792_v19  ;;  %v769_v26 = vadd.f32 %v1243_v22, %v649_v21  ;;  %v1245_v27 = vpop.f32.mrf.mxu1 }
 0x13c   :  { %1082 = vst [vmem:[%s1647_s3 + $0x48] sm:$0xff] %v1072_v25   ;;  %v794_v28 = vmax.f32 %v769_v26, 0.0 }
 0x13e   :  { %v1023_v29 = vpack.c.bf16 %v794_v28, %v794_v28 }
 0x140   :  { %900 = vst [vmem:[%s1647_s3 + $0x50] sm:$0xf] %v1023_v29 }

// kernel: forward.6
= control target key start
LH: loop header
LB: loop body
LE: loop exit
PB: predicated region body
PF: predicated region fallthrough
CT: control target
= control target key end

     0   :  { %v1281_v34 = vmov 0.0   ;;  %vm1282_vm0 = vmmov 0   ;;  %vm516_vm1 = vcmask 523264   ;;  %s1650_s1 = inlined_call_operand.vmem [shape: bf16[576,128], index: 1, kind: input, shape index: {}]   ;;  %s1651_s0 = inlined_call_operand.vmem [shape: bf16[104,576], index: 0, kind: input, shape index: {}]   ;;  %s1652_s2 = inlined_call_operand.vmem [shape: f32[1,128], index: 2, kind: input, shape index: {}]   ;;  %s1653_s3 = inlined_call_operand.vmem [shape: bf16[104,128], index: 3, kind: output, shape index: {}]  }
   0x1   :  { %v1198_v0 = vld [vmem:[%s1650_s1 + $0x78] sm:$0xff]   ;;  %v1202_v4 = vld [vmem:[%s1650_s1 + $0x70] sm:$0xff]   ;;  %v1206_v8 = vld [vmem:[%s1650_s1 + $0x68] sm:$0xff]  }
   0x2   :  { %v1199_v1 = vld [vmem:[%s1650_s1 + $0xf8] sm:$0xff]   ;;  %1025 = vmatprep.subr.bf16.mxu0 %v1198_v0  ;;  %v1203_v5 = vld [vmem:[%s1650_s1 + $0xf0] sm:$0xff]   ;;  %v1207_v9 = vld [vmem:[%s1650_s1 + $0xe8] sm:$0xff]  }
   0x3   :  { %v1200_v2 = vld [vmem:[%s1650_s1 + $0x38] sm:$0xff]   ;;  %1083 = vmatprep.subr.bf16.mxu1 %v1199_v1  ;;  %v1204_v6 = vld [vmem:[%s1650_s1 + $0x30] sm:$0xff]   ;;  %v1208_v10 = vld [vmem:[%s1650_s1 + $0x28] sm:$0xff]  }
   0x4   :  { %v1201_v3 = vld [vmem:[%s1650_s1 + $0xb8] sm:$0xff]   ;;  %1026 = vmatpush3.bf16.msra.mxu0 %v1200_v2  ;;  %v1205_v7 = vld [vmem:[%s1650_s1 + $0xb0] sm:$0xff]   ;;  %v1209_v11 = vld [vmem:[%s1650_s1 + $0xa8] sm:$0xff]  }
   0x5   :  { %1084 = vmatpush3.bf16.msra.mxu1 %v1201_v3  ;;  %1027 = vmatprep.subr.bf16.mxu0 %v1202_v4  ;;  %v1210_v12 = vld [vmem:[%s1650_s1 + $0x60] sm:$0xff]   ;;  %v1214_v16 = vld [vmem:[%s1650_s1 + $0x58] sm:$0xff]   ;;  %v1218_v20 = vld [vmem:[%s1650_s1 + $0x50] sm:$0xff]  }
   0x6   :  { %1085 = vmatprep.subr.bf16.mxu1 %v1203_v5  ;;  %v1211_v13 = vld [vmem:[%s1650_s1 + $0xe0] sm:$0xff]   ;;  %v1215_v17 = vld [vmem:[%s1650_s1 + $0xd8] sm:$0xff]   ;;  %v1219_v21 = vld [vmem:[%s1650_s1 + $0xd0] sm:$0xff]  }
   0x7   :  { %v1212_v14 = vld [vmem:[%s1650_s1 + $0x20] sm:$0xff]   ;;  %v1216_v18 = vld [vmem:[%s1650_s1 + $0x18] sm:$0xff]   ;;  %v1220_v22 = vld [vmem:[%s1650_s1 + $0x10] sm:$0xff]  }
   0x8   :  { %1028 = vmatpush3.bf16.msra.mxu0 %v1204_v6  ;;  %v1213_v15 = vld [vmem:[%s1650_s1 + $0xa0] sm:$0xff]   ;;  %v1217_v19 = vld [vmem:[%s1650_s1 + $0x98] sm:$0xff]   ;;  %v1221_v23 = vld [vmem:[%s1650_s1 + $0x90] sm:$0xff]  }
   0x9   :  { %1086 = vmatpush3.bf16.msra.mxu1 %v1205_v7  ;;  %1029 = vmatprep.subr.bf16.mxu0 %v1206_v8  ;;  %v1222_v24 = vld [vmem:[%s1650_s1 + $0x48] sm:$0xff]   ;;  %v1226_v28 = vld [vmem:[%s1650_s1 + $0x40] sm:$0xff]   ;;  %v1236_v37 = vld [vmem:[%s1650_s1 + $0x118] sm:$0xff]  }
   0xa   :  { %1087 = vmatprep.subr.bf16.mxu1 %v1207_v9  ;;  %v1223_v25 = vld [vmem:[%s1650_s1 + $0xc8] sm:$0xff]   ;;  %v1227_v29 = vld [vmem:[%s1650_s1 + $0xc0] sm:$0xff]   ;;  %v1247_v43 = vld [vmem:[%s1650_s1 + $0x110] sm:$0xff]  }
   0xb   :  { %v1224_v26 = vld [vmem:[%s1650_s1 + $0x8] sm:$0xff]   ;;  %v1228_v30 = vld [vmem:[%s1650_s1] sm:$0xff]   ;;  %v1245_v44 = vld [vmem:[%s1651_s0 + $0x5c] ss:$20 sps:$4 sm:$0xff]  }
   0xc   :  { %1030 = vmatpush3.bf16.msra.mxu0 %v1208_v10  ;;  %v1225_v27 = vld [vmem:[%s1650_s1 + $0x88] sm:$0xff]   ;;  %v1229_v31 = vld [vmem:[%s1650_s1 + $0x80] sm:$0xff]   ;;  %v1250_v48 = vld [vmem:[%s1651_s0 + $0x7c] ss:$20 sps:$4 sm:$0xff]  }
   0xd   :  { %1088 = vmatpush3.bf16.msra.mxu1 %v1209_v11  ;;  %1031 = vmatprep.subr.bf16.mxu0 %v1210_v12  ;;  %v1230_v32 = vld [vmem:[%s1651_s0] ss:$20 sps:$4 sm:$0xff]   ;;  %v1232_v33 = vld [vmem:[%s1651_s0 + $0x4] ss:$20 sps:$4 sm:$0xff]   ;;  %v1233_v35 = vld [vmem:[%s1651_s0 + $0x8] ss:$20 sps:$4 sm:$0xff]  }
   0xe   :  { %1089 = vmatprep.subr.bf16.mxu1 %v1211_v13  ;;  %v1235_v36 = vld [vmem:[%s1651_s0 + $0xc] ss:$20 sps:$4 sm:$0xff]   ;;  %570 = vmatprep.mubr.bf16.mxu0 %v1232_v33  ;;  %v1239_v39 = vld [vmem:[%s1651_s0 + $0x34] ss:$20 sps:$4 sm:$0xff]   ;;  %v1242_v41 = vld [vmem:[%s1651_s0 + $0x30] ss:$20 sps:$4 sm:$0xff]  }
   0xf   :  { %658 = vmatprep.mubr.bf16.mxu1 %v1235_v36  ;;  %v1237_v38 = vld [vmem:[%s1651_s0 + $0x2c] ss:$20 sps:$4 sm:$0xff]   ;;  %v1241_v40 = vld [vmem:[%s1651_s0 + $0x28] ss:$20 sps:$4 sm:$0xff]   ;;  %v1248_v46 = vld [vmem:[%s1651_s0 + $0x50] ss:$20 sps:$4 sm:$0xff]  }
  0x10   :  { %1032 = vmatpush3.bf16.msra.mxu0 %v1212_v14  ;;  %v1243_v42 = vld [vmem:[%s1651_s0 + $0x54] ss:$20 sps:$4 sm:$0xff]   ;;  %v1249_v47 = vld [vmem:[%s1651_s0 + $0x58] ss:$20 sps:$4 sm:$0xff]   ;;  %v1269_v50 = vld [vmem:[%s1650_s1 + $0x100] sm:$0xff]  }
  0x11   :  { %1090 = vmatpush3.bf16.msra.mxu1 %v1213_v15  ;;  %1033 = vmatprep.subr.bf16.mxu0 %v1214_v16  ;;  %v1256_v45 = vld [vmem:[%s1650_s1 + $0x108] sm:$0xff]   ;;  %v1252_v49 = vld [vmem:[%s1651_s0 + $0x84] ss:$20 sps:$4 sm:$0xff]   ;;  %v1255_v52 = vld [vmem:[%s1651_s0 + $0x80] ss:$20 sps:$4 sm:$0xff]  }
  0x12   :  { %1091 = vmatprep.subr.bf16.mxu1 %v1215_v17  ;;  %v1254_v51 = vld [vmem:[%s1651_s0 + $0x78] ss:$20 sps:$4 sm:$0xff]   ;;  %v1261_v55 = vld [vmem:[%s1651_s0 + $0xa0] ss:$20 sps:$4 sm:$0xff]   ;;  %v1262_v56 = vld [vmem:[%s1651_s0 + $0xa8] ss:$20 sps:$4 sm:$0xff]  }
  0x13   :  { %v1257_v53 = vld [vmem:[%s1651_s0 + $0xa4] ss:$20 sps:$4 sm:$0xff]   ;;  %v1259_v54 = vld [vmem:[%s1651_s0 + $0xac] ss:$20 sps:$4 sm:$0xff]   ;;  %v1265_v58 = vld [vmem:[%s1651_s0 + $0xd4] ss:$20 sps:$4 sm:$0xff]  }
  0x14   :  { %1034 = vmatpush3.bf16.msra.mxu0 %v1216_v18  ;;  %v1263_v57 = vld [vmem:[%s1651_s0 + $0xcc] ss:$20 sps:$4 sm:$0xff]   ;;  %v51_v59 = vld [vmem:[%s1651_s0 + $0xf0] sm:$0xff]  ;;  %v52_v60 = vld [vmem:[%s1651_s0 + $0xf8] sm:$0xff] }
  0x15   :  { %1092 = vmatpush3.bf16.msra.mxu1 %v1217_v19  ;;  %1035 = vmatprep.subr.bf16.mxu0 %v1218_v20  ;;  %v1267_v61 = vld [vmem:[%s1651_s0 + $0xc8] ss:$20 sps:$4 sm:$0xff]   ;;  %v1268_v62 = vld [vmem:[%s1651_s0 + $0xd0] ss:$20 sps:$4 sm:$0xff]   ;;  %v917_v63 = vcombine.high %v51_v59, %v51_v59  ;;  %v919_v0 = vcombine.high %v52_v60, %v52_v60  ;;  %v916_v1 = vcombine.low %v51_v59, %v51_v59  ;;  %v1276_v5 = vld [vmem:[%s1651_s0 + $0x38] ss:$20 sps:$4 sm:$0xff]  }
  0x16   :  { %1093 = vmatprep.subr.bf16.mxu1 %v1219_v21  ;;  %v918_v2 = vcombine.low %v52_v60, %v52_v60  ;;  %v1274_v3 = vld [vmem:[%s1651_s0 + $0x10] ss:$20 sps:$4 sm:$0xff]   ;;  %v1277_v6 = vld [vmem:[%s1651_s0 + $0xd8] ss:$20 sps:$4 sm:$0xff]   ;;  %v1278_v7 = vld [vmem:[%s1651_s0 + $0x60] ss:$20 sps:$4 sm:$0xff]  }
  0x17   :  { %v1275_v4 = vld [vmem:[%s1651_s0 + $0xb0] ss:$20 sps:$4 sm:$0xff]   ;;  %v1279_v8 = vld [vmem:[%s1651_s0 + $0x100] ss:$0 sps:$4 sm:$0xff]   ;;  %v1280_v9 = vld [vmem:[%s1651_s0 + $0x88] ss:$20 sps:$4 sm:$0xff]  }
  0x18   :  { %1036 = vmatpush3.bf16.msra.mxu0 %v1220_v22 }
  0x19   :  { %1094 = vmatpush3.bf16.msra.mxu1 %v1221_v23  ;;  %1037 = vmatprep.subr.bf16.mxu0 %v1222_v24 }
  0x1a   :  { %1095 = vmatprep.subr.bf16.mxu1 %v1223_v25 }
  0x1c   :  { %1038 = vmatpush3.bf16.msra.mxu0 %v1224_v26 }
  0x1d   :  { %1096 = vmatpush3.bf16.msra.mxu1 %v1225_v27  ;;  %1039 = vmatprep.subr.bf16.mxu0 %v1226_v28 }
  0x1e   :  { %1097 = vmatprep.subr.bf16.mxu1 %v1227_v29 }
  0x20   :  { %1040 = vmatpush3.bf16.msra.mxu0 %v1228_v30 }
  0x21   :  { %1098 = vmatpush3.bf16.msra.mxu1 %v1229_v31  ;;  %1152 = vmatprep.subr.bf16.mxu0 %v1281_v34 }
  0x22   :  { %1188 = vmatprep.subr.bf16.mxu1 %v1281_v34 }
  0x23   :  { %571 = vmatmul.mubr.bf16.vlgmr.msra.gmra.mxu0 %v1230_v32 }
  0x24   :  { %659 = vmatmul.mubr.bf16.vlgmr.msra.gmra.mxu1 %v1233_v35  ;;  %1153 = vmatpush3.bf16.msra.mxu0 %v1236_v37 }
  0x25   :  { %578 = vmatprep.mubr.bf16.mxu0 %v1237_v38  ;;  %1192 = vmatpush3.bf16.msra.mxu1 %v1236_v37 }
  0x26   :  { %666 = vmatprep.mubr.bf16.mxu1 %v1239_v39  ;;  %1154 = vmatprep.subr.bf16.mxu0 %v1281_v34 }
  0x27   :  { %1189 = vmatprep.subr.bf16.mxu1 %v1281_v34 }
  0x28   :  { %1155 = vmatpush3.bf16.msra.mxu0 %v1247_v43 }
  0x29   :  { %1193 = vmatpush3.bf16.msra.mxu1 %v1247_v43  ;;  %1156 = vmatprep.subr.bf16.mxu0 %v1281_v34 }
  0x2a   :  { %1190 = vmatprep.subr.bf16.mxu1 %v1281_v34 }
  0x2b   :  { %579 = vmatmul.mubr.bf16.gmra.mxu0 %v1241_v40 }
  0x2c   :  { %667 = vmatmul.mubr.bf16.gmra.mxu1 %v1242_v41  ;;  %586 = vmatprep.mubr.bf16.mxu0 %v1243_v42 }
  0x2d   :  { %674 = vmatprep.mubr.bf16.mxu1 %v1245_v44  ;;  %1157 = vmatpush3.bf16.msra.mxu0 %v1256_v45 }
  0x2e   :  { %1194 = vmatpush3.bf16.msra.mxu1 %v1256_v45  ;;  %1158 = vmatprep.subr.bf16.mxu0 %v1281_v34 }
  0x2f   :  { %1191 = vmatprep.subr.bf16.mxu1 %v1281_v34 }
  0x31   :  { %1159 = vmatpush3.bf16.msra.mxu0 %v1269_v50 }
  0x32   :  { %1195 = vmatpush3.bf16.msra.mxu1 %v1269_v50 }
  0x33   :  { %587 = vmatmul.mubr.bf16.gmra.mxu0 %v1248_v46 }
  0x34   :  { %675 = vmatmul.mubr.bf16.gmra.mxu1 %v1249_v47  ;;  %594 = vmatprep.mubr.bf16.mxu0 %v1250_v48 }
  0x35   :  { %682 = vmatprep.mubr.bf16.mxu1 %v1252_v49 }
  0x3b   :  { %595 = vmatmul.mubr.bf16.gmra.mxu0 %v1254_v51 }
  0x3c   :  { %683 = vmatmul.mubr.bf16.gmra.mxu1 %v1255_v52  ;;  %602 = vmatprep.mubr.bf16.mxu0 %v1257_v53 }
  0x3d   :  { %690 = vmatprep.mubr.bf16.mxu1 %v1259_v54 }
  0x43   :  { %603 = vmatmul.mubr.bf16.gmra.mxu0 %v1261_v55 }
  0x44   :  { %691 = vmatmul.mubr.bf16.gmra.mxu1 %v1262_v56  ;;  %610 = vmatprep.mubr.bf16.mxu0 %v1263_v57 }
  0x45   :  { %698 = vmatprep.mubr.bf16.mxu1 %v1265_v58 }
  0x4b   :  { %611 = vmatmul.mubr.bf16.gmra.mxu0 %v1267_v61  ;;  %v1590_v61 = vld [vmem:[%s1652_s2] ss:$0 sm:$0xff] }
  0x4c   :  { %699 = vmatmul.mubr.bf16.gmra.mxu1 %v1268_v62  ;;  %618 = vmatprep.mubr.bf16.mxu0 %v917_v63 }
  0x4d   :  { %706 = vmatprep.mubr.bf16.mxu1 %v919_v0 }
  0x53   :  { %619 = vmatmul.mubr.bf16.gmra.mxu0 %v916_v1 }
  0x54   :  { %707 = vmatmul.mubr.bf16.gmra.mxu1 %v918_v2  ;;  %1160 = vmatprep.mubr.msk.bf16.mxu0 %vm1282_vm0, %v1281_v34 }
  0x55   :  { %1176 = vmatprep.mubr.msk.bf16.mxu1 %vm1282_vm0, %v1281_v34 }
  0x5b   :  { %1161 = vmatmul.mubr.msk.bf16.vlgmr.msra.gmra.mxu0 %vm516_vm1, %v1274_v3 }
  0x5c   :  { %1177 = vmatmul.mubr.msk.bf16.vlgmr.msra.gmra.mxu1 %vm516_vm1, %v1275_v4  ;;  %1164 = vmatprep.mubr.msk.bf16.mxu0 %vm1282_vm0, %v1281_v34 }
  0x5d   :  { %1180 = vmatprep.mubr.msk.bf16.mxu1 %vm1282_vm0, %v1281_v34 }
  0x63   :  { %1165 = vmatmul.mubr.msk.bf16.gmra.mxu0 %vm516_vm1, %v1276_v5 }
  0x64   :  { %1181 = vmatmul.mubr.msk.bf16.gmra.mxu1 %vm516_vm1, %v1277_v6  ;;  %1168 = vmatprep.mubr.msk.bf16.mxu0 %vm1282_vm0, %v1281_v34 }
  0x65   :  { %1184 = vmatprep.mubr.msk.bf16.mxu1 %vm1282_vm0, %v1281_v34 }
  0x6b   :  { %1169 = vmatmul.mubr.msk.bf16.gmra.mxu0 %vm516_vm1, %v1278_v7 }
  0x6c   :  { %1185 = vmatmul.mubr.msk.bf16.gmra.mxu1 %vm516_vm1, %v1279_v8  ;;  %1172 = vmatprep.mubr.msk.bf16.mxu0 %vm1282_vm0, %v1281_v34 }
  0x73   :  { %1173 = vmatmul.mubr.msk.bf16.gmra.mxu0 %vm516_vm1, %v1280_v9 }
  0xe3   :  { %v1041_v10 = vpop.f32.mrf.mxu0 }
  0xe4   :  { %v1099_v11 = vpop.f32.mrf.mxu1 }
  0xe5   :  { %v1042_v12 = vpop.f32.mrf.mxu0 }
  0xe6   :  { %v1100_v13 = vpop.f32.mrf.mxu1  ;;  %v1043_v59 = vadd.f32 %v1042_v12, %v1041_v10 }
  0xe7   :  { %v1044_v14 = vpop.f32.mrf.mxu0  ;;  %v1101_v5 = vadd.f32 %v1100_v13, %v1099_v11 }
  0xe8   :  { %v1102_v15 = vpop.f32.mrf.mxu1  ;;  %v573_v4 = vadd.f32 %v1043_v59, %v1590_v61 }
  0xe9   :  { %v1045_v16 = vpop.f32.mrf.mxu0 }
  0xea   :  { %v1103_v17 = vpop.f32.mrf.mxu1  ;;  %v1046_v0 = vadd.f32 %v1045_v16, %v1044_v14  ;;  %v661_v16 = vadd.f32 %v1101_v5, %v573_v4 }
  0xeb   :  { %v1539_v18 = vpop.f32.mrf.mxu0  ;;  %v1104_v12 = vadd.f32 %v1103_v17, %v1102_v15 }
  0xec   :  { %v1541_v19 = vpop.f32.mrf.mxu1  ;;  %v576_v10 = vadd.f32 %v1046_v0, %v1590_v61 }
  0xed   :  { %v1048_v20 = vpop.f32.mrf.mxu0 }
  0xee   :  { %v1543_v21 = vpop.f32.mrf.mxu1  ;;  %v1049_v14 = vadd.f32 %v1048_v20, %v1539_v18 }
  0xef   :  { %v1545_v22 = vpop.f32.mrf.mxu0  ;;  %v1107_v18 = vadd.f32 %v1543_v21, %v1541_v19 }
  0xf0   :  { %v1547_v23 = vpop.f32.mrf.mxu1 }
  0xf1   :  { %v1549_v24 = vpop.f32.mrf.mxu0 }
  0xf2   :  { %v1551_v25 = vpop.f32.mrf.mxu1  ;;  %v1052_v13 = vadd.f32 %v1549_v24, %v1545_v22 }
  0xf3   :  { %v1553_v26 = vpop.f32.mrf.mxu0 }
  0xf4   :  { %v1555_v27 = vpop.f32.mrf.mxu1 }
  0xf5   :  { %v1557_v28 = vpop.f32.mrf.mxu0 }
  0xf6   :  { %v1559_v29 = vpop.f32.mrf.mxu1 }
  0xf7   :  { %v1561_v30 = vpop.f32.mrf.mxu0 }
  0xf8   :  { %v1563_v31 = vpop.f32.mrf.mxu1 }
  0xf9   :  { %v1565_v32 = vpop.f32.mrf.mxu0 }
  0xfa   :  { %v1567_v33 = vpop.f32.mrf.mxu1 }
  0xfb   :  { %v1569_v34 = vpop.f32.mrf.mxu0 }
  0xfc   :  { %v1571_v35 = vpop.f32.mrf.mxu1 }
  0xfd   :  { %v1573_v36 = vpop.f32.mrf.mxu0 }
  0xfe   :  { %v1575_v37 = vpop.f32.mrf.mxu1 }
  0xff   :  { %v1577_v38 = vpop.f32.mrf.mxu0 }
 0x100   :  { %v1579_v39 = vpop.f32.mrf.mxu1 }
 0x101   :  { %1654 = vst [vmem:[#allocation2_spill] sm:$0xff] %v1579_v39  ;;  %v1581_v40 = vpop.f32.mrf.mxu0 }
 0x102   :  { %v1583_v41 = vpop.f32.mrf.mxu1 }
 0x103   :  { %1655 = vst [vmem:[#allocation3_spill] sm:$0xff] %v1583_v41  ;;  %v1065_v42 = vpop.f32.mrf.mxu0 }
 0x104   :  { %v1123_v43 = vpop.f32.mrf.mxu1 }
 0x105   :  { %v1066_v44 = vpop.f32.mrf.mxu0 }
 0x106   :  { %v1124_v45 = vpop.f32.mrf.mxu1  ;;  %v1067_v62 = vadd.f32 %v1066_v44, %v1065_v42 }
 0x107   :  { %v1068_v46 = vpop.f32.mrf.mxu0  ;;  %v1125_v8 = vadd.f32 %v1124_v45, %v1123_v43 }
 0x108   :  { %v1126_v47 = vpop.f32.mrf.mxu1  ;;  %v605_v7 = vadd.f32 %v1067_v62, %v1590_v61  ;;  %v664_v62 = vadd.f32 %v1104_v12, %v576_v10 }
 0x109   :  { %v1069_v48 = vpop.f32.mrf.mxu0 }
 0x10a   :  { %v1127_v49 = vpop.f32.mrf.mxu1  ;;  %v1070_v2 = vadd.f32 %v1069_v48, %v1068_v46  ;;  %v693_v59 = vadd.f32 %v1125_v8, %v605_v7 }
 0x10b   :  { %v1071_v50 = vpop.f32.mrf.mxu0  ;;  %v1128_v42 = vadd.f32 %v1127_v49, %v1126_v47  ;;  %v581_v47 = vadd.f32 %v1049_v14, %v1590_v61 }
 0x10c   :  { %v1129_v51 = vpop.f32.mrf.mxu1  ;;  %v608_v39 = vadd.f32 %v1070_v2, %v1590_v61 }
 0x10d   :  { %v1072_v52 = vpop.f32.mrf.mxu0  ;;  %v669_v8 = vadd.f32 %v1107_v18, %v581_v47 }
 0x10e   :  { %v1130_v53 = vpop.f32.mrf.mxu1  ;;  %v1073_v48 = vadd.f32 %v1072_v52, %v1071_v50  ;;  %v1110_v50 = vadd.f32 %v1551_v25, %v1547_v23  ;;  %v1055_v23 = vadd.f32 %v1557_v28, %v1553_v26 }
 0x10f   :  { %v1074_v54 = vpop.f32.mrf.mxu0  ;;  %v1131_v22 = vadd.f32 %v1130_v53, %v1129_v51 }
 0x110   :  { %v1132_v55 = vpop.f32.mrf.mxu1  ;;  %v613_v52 = vadd.f32 %v1073_v48, %v1590_v61 }
 0x111   :  { %v1075_v56 = vpop.f32.mrf.mxu0 }
 0x112   :  { %v1133_v57 = vpop.f32.mrf.mxu1  ;;  %v1076_v0 = vadd.f32 %v1075_v56, %v1074_v54  ;;  %v584_v54 = vadd.f32 %v1052_v13, %v1590_v61 }
 0x113   :  { %v1077_v58 = vpop.f32.mrf.mxu0  ;;  %v1134_v56 = vadd.f32 %v1133_v57, %v1132_v55  ;;  %v1058_v55 = vadd.f32 %v1565_v32, %v1561_v30  ;;  %v589_v30 = vadd.f32 %v1055_v23, %v1590_v61  ;;  %v1113_v32 = vadd.f32 %v1559_v29, %v1555_v27 }
 0x114   :  { %v1585_v60 = vpop.f32.mrf.mxu1  ;;  %v616_v5 = vadd.f32 %v1076_v0, %v1590_v61 }
 0x115   :  { %v1078_v63 = vpop.f32.mrf.mxu0  ;;  %v677_v29 = vadd.f32 %v1113_v32, %v589_v30 }
 0x116   :  { %v1136_v1 = vpop.f32.mrf.mxu1 }
 0x117   :  { %v1080_v3 = vpop.f32.mrf.mxu0  ;;  %v1137_v26 = vadd.f32 %v1136_v1, %v1585_v60  ;;  %v1116_v60 = vadd.f32 %v1567_v33, %v1563_v31 }
 0x118   :  { %v1138_v6 = vpop.f32.mrf.mxu1 }
 0x119   :  { %v1081_v9 = vpop.f32.mrf.mxu0  ;;  %v1079_v6 = vadd.f32 %v1078_v63, %v1077_v58  ;;  %v672_v63 = vadd.f32 %v1110_v50, %v584_v54  ;;  %v1656_v54 = vld [vmem:[#allocation2_spill] sm:$0xff] }
 0x11a   :  { %v1139_v41 = vpop.f32.mrf.mxu1  ;;  %v701_v9 = vadd.f32 %v1131_v22, %v613_v52  ;;  %v1119_v52 = vadd.f32 %v1575_v37, %v1571_v35 }
 0x11b   :  { %v748_v44 = vpop.f32.mrf.mxu0  ;;  %v696_v41 = vadd.f32 %v1128_v42, %v608_v39  ;;  %v621_v12 = vadd.f32 %v1079_v6, %v1590_v61 }
 0x11c   :  { %v780_v46 = vpop.f32.mrf.mxu1  ;;  %v749_v43 = vadd.f32 %v748_v44, %v661_v16  ;;  %v704_v44 = vadd.f32 %v1134_v56, %v616_v5  ;;  %v1657_v56 = vld [vmem:[#allocation3_spill] sm:$0xff] }
 0x11d   :  { %v1162_v11 = vpop.f32.mrf.mxu0  ;;  %v781_v15 = vadd.f32 %v780_v46, %v693_v59  ;;  %v592_v59 = vadd.f32 %v1058_v55, %v1590_v61  ;;  %v709_v0 = vadd.f32 %v1137_v26, %v621_v12 }
 0x11e   :  { %v1178_v45 = vpop.f32.mrf.mxu1  ;;  %v802_v3 = vmax.f32 %v749_v43, 0.0 }
 0x11f   :  { %v751_v17 = vpop.f32.mrf.mxu0  ;;  %v810_v19 = vmax.f32 %v781_v15, 0.0  ;;  %v1061_v15 = vadd.f32 %v1573_v36, %v1569_v34  ;;  %v680_v33 = vadd.f32 %v1116_v60, %v592_v59 }
 0x120   :  { %v752_v20 = vadd.f32 %v751_v17, %v664_v62  ;;  %v783_v49 = vpop.f32.mrf.mxu1 }
 0x121   :  { %v784_v24 = vadd.f32 %v783_v49, %v696_v41  ;;  %v1163_v2 = vpop.f32.mrf.mxu0  ;;  %v597_v50 = vadd.f32 %v1061_v15, %v1590_v61 }
 0x122   :  { %v803_v39 = vmax.f32 %v752_v20, 0.0  ;;  %v1179_v4 = vpop.f32.mrf.mxu1  ;;  %v1064_v20 = vadd.f32 %v1581_v40, %v1577_v38 }
 0x123   :  { %v811_v21 = vmax.f32 %v784_v24, 0.0  ;;  %v756_v7 = vpop.f32.mrf.mxu0 }
 0x124   :  { %v993_v25 = vpack.c.bf16 %v803_v39, %v802_v3  ;;  %v788_v51 = vpop.f32.mrf.mxu1  ;;  %v757_v57 = vadd.f32 %v756_v7, %v669_v8  ;;  %v600_v2 = vadd.f32 %v1064_v20, %v1590_v61  ;;  %v1122_v3 = vadd.f32 %v1657_v56, %v1656_v54 }
 0x125   :  { %v1013_v53 = vpack.c.bf16 %v811_v21, %v810_v19  ;;  %v1166_v10 = vpop.f32.mrf.mxu0  ;;  %v789_v28 = vadd.f32 %v788_v51, %v701_v9  ;;  %v685_v21 = vadd.f32 %v1119_v52, %v597_v50 }
 0x126   :  { %994 = vst [vmem:[%s1653_s3] sm:$0xff] %v993_v25   ;;  %v1182_v58 = vpop.f32.mrf.mxu1  ;;  %v804_v1 = vmax.f32 %v757_v57, 0.0  ;;  %v688_v61 = vadd.f32 %v1122_v3, %v600_v2 }
 0x127   :  { %1023 = vst [vmem:[%s1653_s3 + $0x20] sm:$0xff] %v1013_v53   ;;  %v759_v42 = vpop.f32.mrf.mxu0  ;;  %v812_v43 = vmax.f32 %v789_v28, 0.0 }
 0x128   :  { %v760_v14 = vadd.f32 %v759_v42, %v672_v63  ;;  %v791_v16 = vpop.f32.mrf.mxu1 }
 0x129   :  { %v792_v46 = vadd.f32 %v791_v16, %v704_v44  ;;  %v1167_v48 = vpop.f32.mrf.mxu0 }
 0x12a   :  { %v805_v11 = vmax.f32 %v760_v14, 0.0  ;;  %v1183_v13 = vpop.f32.mrf.mxu1 }
 0x12b   :  { %v813_v45 = vmax.f32 %v792_v46, 0.0  ;;  %v764_v62 = vpop.f32.mrf.mxu0 }
 0x12c   :  { %v998_v27 = vpack.c.bf16 %v805_v11, %v804_v1  ;;  %v796_v17 = vpop.f32.mrf.mxu1  ;;  %v765_v31 = vadd.f32 %v764_v62, %v677_v29 }
 0x12d   :  { %v1018_v41 = vpack.c.bf16 %v813_v45, %v812_v43  ;;  %v797_v47 = vadd.f32 %v796_v17, %v709_v0  ;;  %v1170_v18 = vpop.f32.mrf.mxu0 }
 0x12e   :  { %1020 = vst [vmem:[%s1653_s3 + $0x8] sm:$0xff] %v998_v27   ;;  %v1186_v49 = vpop.f32.mrf.mxu1  ;;  %v806_v39 = vmax.f32 %v765_v31, 0.0 }
 0x12f   :  { %1024 = vst [vmem:[%s1653_s3 + $0x28] sm:$0xff] %v1018_v41   ;;  %v814_v34 = vmax.f32 %v797_v47, 0.0  ;;  %v767_v36 = vpop.f32.mrf.mxu0 }
 0x130   :  { %v768_v22 = vadd.f32 %v767_v36, %v680_v33  ;;  %v799_v38 = vpop.f32.mrf.mxu1 }
 0x131   :  { %v989_v40 = vpack.c.bf16 %v814_v34, %v814_v34  ;;  %v1171_v24 = vpop.f32.mrf.mxu0 }
 0x132   :  { %v807_v4 = vmax.f32 %v768_v22, 0.0  ;;  %v1187_v5 = vpop.f32.mrf.mxu1 }
 0x133   :  { %880 = vst [vmem:[%s1653_s3 + $0x30] sm:$0xf] %v989_v40  ;;  %v772_v6 = vpop.f32.mrf.mxu0 }
 0x134   :  { %v1003_v19 = vpack.c.bf16 %v807_v4, %v806_v39  ;;  %v773_v37 = vadd.f32 %v772_v6, %v685_v21 }
 0x135   :  { %v1174_v35 = vpop.f32.mrf.mxu0 }
 0x136   :  { %1021 = vst [vmem:[%s1653_s3 + $0x10] sm:$0xff] %v1003_v19   ;;  %v808_v8 = vmax.f32 %v773_v37, 0.0 }
 0x137   :  { %v775_v7 = vpop.f32.mrf.mxu0 }
 0x138   :  { %v776_v23 = vadd.f32 %v775_v7, %v688_v61 }
 0x139   :  { %v1175_v25 = vpop.f32.mrf.mxu0 }
 0x13a   :  { %v809_v51 = vmax.f32 %v776_v23, 0.0 }
 0x13c   :  { %v1008_v53 = vpack.c.bf16 %v809_v51, %v808_v8 }
 0x13e   :  { %1022 = vst [vmem:[%s1653_s3 + $0x18] sm:$0xff] %v1008_v53  }

// kernel: forward.7
= control target key start
LH: loop header
LB: loop body
LE: loop exit
PB: predicated region body
PF: predicated region fallthrough
CT: control target
= control target key end

     0   :  { %v8441_v8 = vmov 0   ;;  %vm4864_vm0 = vcmask 523264   ;;  %s11233_s2 = inlined_call_operand.vmem [shape: bf16[3136,512], index: 2, kind: input, shape index: {}]   ;;  %s11234_s0 = inlined_call_operand.vmem [shape: bf16[8,3136], index: 0, kind: input, shape index: {}]   ;;  %s11235_s1 = inlined_call_operand.vmem [shape: bf16[8,1], index: 1, kind: input, shape index: {}]   ;;  %s11236_s3 = inlined_call_operand.vmem [shape: f32[1,512], index: 3, kind: input, shape index: {}]   ;;  %s11237_s5 = inlined_call_operand.vmem [shape: bf16[512,128], index: 5, kind: input, shape index: {}]   ;;  %s11238_s4 = inlined_call_operand.vmem [shape: f32[1,512], index: 4, kind: input, shape index: {}]   ;;  %s11239_s6 = inlined_call_operand.vmem [shape: f32[1,128], index: 6, kind: input, shape index: {}]   ;;  %s11240_s7 = inlined_call_operand.vmem [shape: f32[8,128], index: 7, kind: output, shape index: {}]  }
   0x1   :  { %v7206_v0 = vld [vmem:[%s11233_s2 + $0xe4] ss:$16 sps:$4 sm:$0xff]   ;;  %v7210_v2 = vld [vmem:[%s11233_s2 + $0xe0] ss:$16 sps:$4 sm:$0xff]   ;;  %7205 = vset.pattern.permute.xlu0 %v8441_v8  ;;  %v28_v49 = vld [vmem:[%s11234_s0 + $0x8] sm:$0xff] }
   0x2   :  { %v7208_v1 = vld [vmem:[%s11233_s2 + $0x2e4] ss:$16 sps:$4 sm:$0xff]   ;;  %4868 = vmatprep.subr.bf16.mxu0 %v7206_v0  ;;  %v7211_v3 = vld [vmem:[%s11233_s2 + $0x2e0] ss:$16 sps:$4 sm:$0xff]   ;;  %v8635_v52 = vcombine.high %v28_v49, %v28_v49 }
   0x3   :  { %4909 = vmatprep.subr.bf16.mxu1 %v7208_v1  ;;  %v7212_v4 = vld [vmem:[%s11233_s2 + $0xc4] ss:$16 sps:$4 sm:$0xff]   ;;  %4869 = vmatpush1.bf16.msra.mxu0 %v7210_v2  ;;  %v7216_v6 = vld [vmem:[%s11233_s2 + $0xc0] ss:$16 sps:$4 sm:$0xff]  }
   0x4   :  { %4910 = vmatpush1.bf16.msra.mxu1 %v7211_v3  ;;  %v7214_v5 = vld [vmem:[%s11233_s2 + $0x2c4] ss:$16 sps:$4 sm:$0xff]   ;;  %4870 = vmatprep.subr.bf16.mxu0 %v7212_v4  ;;  %v7217_v7 = vld [vmem:[%s11233_s2 + $0x2c0] ss:$16 sps:$4 sm:$0xff]  }
   0x5   :  { %4911 = vmatprep.subr.bf16.mxu1 %v7214_v5  ;;  %v7218_v9 = vld [vmem:[%s11233_s2 + $0xa4] ss:$16 sps:$4 sm:$0xff]   ;;  %v7222_v11 = vld [vmem:[%s11233_s2 + $0xa0] ss:$16 sps:$4 sm:$0xff]   ;;  %4941 = vmatprep.mubr.bf16.mxu1 %v8635_v52 }
   0x6   :  { %v7220_v10 = vld [vmem:[%s11233_s2 + $0x2a4] ss:$16 sps:$4 sm:$0xff]   ;;  %v7223_v12 = vld [vmem:[%s11233_s2 + $0x2a0] ss:$16 sps:$4 sm:$0xff]  }
   0x7   :  { %4871 = vmatpush1.bf16.msra.mxu0 %v7216_v6  ;;  %v7224_v13 = vld [vmem:[%s11233_s2 + $0x84] ss:$16 sps:$4 sm:$0xff]   ;;  %v7228_v15 = vld [vmem:[%s11233_s2 + $0x80] ss:$16 sps:$4 sm:$0xff]  }
   0x8   :  { %4912 = vmatpush1.bf16.msra.mxu1 %v7217_v7  ;;  %4872 = vmatprep.subr.bf16.mxu0 %v7218_v9  ;;  %v7226_v14 = vld [vmem:[%s11233_s2 + $0x284] ss:$16 sps:$4 sm:$0xff]   ;;  %v7229_v16 = vld [vmem:[%s11233_s2 + $0x280] ss:$16 sps:$4 sm:$0xff]   ;;  %v8695_v9 = vcombine.low %v28_v49, %v28_v49 }
   0x9   :  { %4913 = vmatprep.subr.bf16.mxu1 %v7220_v10  ;;  %v7230_v17 = vld [vmem:[%s11233_s2 + $0x64] ss:$16 sps:$4 sm:$0xff]   ;;  %v7234_v19 = vld [vmem:[%s11233_s2 + $0x60] ss:$16 sps:$4 sm:$0xff]  }
   0xa   :  { %v7232_v18 = vld [vmem:[%s11233_s2 + $0x264] ss:$16 sps:$4 sm:$0xff]   ;;  %v7235_v20 = vld [vmem:[%s11233_s2 + $0x260] ss:$16 sps:$4 sm:$0xff]  }
   0xb   :  { %4873 = vmatpush1.bf16.msra.mxu0 %v7222_v11  ;;  %v7236_v21 = vld [vmem:[%s11233_s2 + $0x44] ss:$16 sps:$4 sm:$0xff]   ;;  %v7240_v23 = vld [vmem:[%s11233_s2 + $0x40] ss:$16 sps:$4 sm:$0xff]  }
   0xc   :  { %4914 = vmatpush1.bf16.msra.mxu1 %v7223_v12  ;;  %4874 = vmatprep.subr.bf16.mxu0 %v7224_v13  ;;  %v7238_v22 = vld [vmem:[%s11233_s2 + $0x244] ss:$16 sps:$4 sm:$0xff]   ;;  %v7241_v24 = vld [vmem:[%s11233_s2 + $0x240] ss:$16 sps:$4 sm:$0xff]  }
   0xd   :  { %4915 = vmatprep.subr.bf16.mxu1 %v7226_v14  ;;  %v7242_v25 = vld [vmem:[%s11233_s2 + $0x24] ss:$16 sps:$4 sm:$0xff]   ;;  %v7246_v27 = vld [vmem:[%s11233_s2 + $0x20] ss:$16 sps:$4 sm:$0xff]  }
   0xe   :  { %v7244_v26 = vld [vmem:[%s11233_s2 + $0x224] ss:$16 sps:$4 sm:$0xff]   ;;  %v7247_v28 = vld [vmem:[%s11233_s2 + $0x220] ss:$16 sps:$4 sm:$0xff]  }
   0xf   :  { %4875 = vmatpush1.bf16.msra.mxu0 %v7228_v15  ;;  %v7248_v29 = vld [vmem:[%s11233_s2 + $0x4] ss:$16 sps:$4 sm:$0xff]   ;;  %v7252_v31 = vld [vmem:[%s11233_s2] ss:$16 sps:$4 sm:$0xff]  }
  0x10   :  { %4916 = vmatpush1.bf16.msra.mxu1 %v7229_v16  ;;  %4876 = vmatprep.subr.bf16.mxu0 %v7230_v17  ;;  %v7250_v30 = vld [vmem:[%s11233_s2 + $0x204] ss:$16 sps:$4 sm:$0xff]   ;;  %v7253_v32 = vld [vmem:[%s11233_s2 + $0x200] ss:$16 sps:$4 sm:$0xff]  }
  0x11   :  { %4917 = vmatprep.subr.bf16.mxu1 %v7232_v18  ;;  %v7254_v33 = vld [vmem:[%s11233_s2 + $0x1e4] ss:$16 sps:$4 sm:$0xff]   ;;  %v7258_v35 = vld [vmem:[%s11233_s2 + $0x1e0] ss:$16 sps:$4 sm:$0xff]  }
  0x12   :  { %v7256_v34 = vld [vmem:[%s11233_s2 + $0x3e4] ss:$16 sps:$4 sm:$0xff]   ;;  %v7259_v36 = vld [vmem:[%s11233_s2 + $0x3e0] ss:$16 sps:$4 sm:$0xff]  }
  0x13   :  { %4877 = vmatpush1.bf16.msra.mxu0 %v7234_v19  ;;  %v7260_v37 = vld [vmem:[%s11233_s2 + $0x1c4] ss:$16 sps:$4 sm:$0xff]   ;;  %v7264_v39 = vld [vmem:[%s11233_s2 + $0x1c0] ss:$16 sps:$4 sm:$0xff]  }
  0x14   :  { %4918 = vmatpush1.bf16.msra.mxu1 %v7235_v20  ;;  %4878 = vmatprep.subr.bf16.mxu0 %v7236_v21  ;;  %v7262_v38 = vld [vmem:[%s11233_s2 + $0x3c4] ss:$16 sps:$4 sm:$0xff]   ;;  %v7265_v40 = vld [vmem:[%s11233_s2 + $0x3c0] ss:$16 sps:$4 sm:$0xff]  }
  0x15   :  { %4919 = vmatprep.subr.bf16.mxu1 %v7238_v22  ;;  %v7266_v41 = vld [vmem:[%s11233_s2 + $0x1a4] ss:$16 sps:$4 sm:$0xff]   ;;  %v7270_v43 = vld [vmem:[%s11233_s2 + $0x1a0] ss:$16 sps:$4 sm:$0xff]  }
  0x16   :  { %v7268_v42 = vld [vmem:[%s11233_s2 + $0x3a4] ss:$16 sps:$4 sm:$0xff]   ;;  %v7271_v44 = vld [vmem:[%s11233_s2 + $0x3a0] ss:$16 sps:$4 sm:$0xff]  }
  0x17   :  { %4879 = vmatpush1.bf16.msra.mxu0 %v7240_v23  ;;  %v7272_v45 = vld [vmem:[%s11233_s2 + $0x184] ss:$16 sps:$4 sm:$0xff]   ;;  %v7276_v50 = vld [vmem:[%s11233_s2 + $0x180] ss:$16 sps:$4 sm:$0xff]  }
  0x18   :  { %4920 = vmatpush1.bf16.msra.mxu1 %v7241_v24  ;;  %4880 = vmatprep.subr.bf16.mxu0 %v7242_v25  ;;  %v7274_v46 = vld [vmem:[%s11233_s2 + $0x384] ss:$16 sps:$4 sm:$0xff]   ;;  %v7277_v51 = vld [vmem:[%s11233_s2 + $0x380] ss:$16 sps:$4 sm:$0xff]  }
  0x19   :  { %4921 = vmatprep.subr.bf16.mxu1 %v7244_v26  ;;  %v27_v47 = vld [vmem:[%s11234_s0] sm:$0xff] }
  0x1a   :  { %v8624_v48 = vcombine.high %v27_v47, %v27_v47  ;;  %v7278_v53 = vld [vmem:[%s11233_s2 + $0x164] ss:$16 sps:$4 sm:$0xff]   ;;  %v7282_v55 = vld [vmem:[%s11233_s2 + $0x160] ss:$16 sps:$4 sm:$0xff]   ;;  %v8693_v7 = vcombine.low %v27_v47, %v27_v47 }
  0x1b   :  { %4881 = vmatpush1.bf16.msra.mxu0 %v7246_v27  ;;  %v7280_v54 = vld [vmem:[%s11233_s2 + $0x364] ss:$16 sps:$4 sm:$0xff]   ;;  %v7283_v56 = vld [vmem:[%s11233_s2 + $0x360] ss:$16 sps:$4 sm:$0xff]  }
  0x1c   :  { %4922 = vmatpush1.bf16.msra.mxu1 %v7247_v28  ;;  %4882 = vmatprep.subr.bf16.mxu0 %v7248_v29  ;;  %v7284_v57 = vld [vmem:[%s11233_s2 + $0x144] ss:$16 sps:$4 sm:$0xff]   ;;  %v7288_v59 = vld [vmem:[%s11233_s2 + $0x140] ss:$16 sps:$4 sm:$0xff]  }
  0x1d   :  { %4923 = vmatprep.subr.bf16.mxu1 %v7250_v30  ;;  %4900 = vmatprep.mubr.bf16.mxu0 %v8624_v48  ;;  %v7286_v58 = vld [vmem:[%s11233_s2 + $0x344] ss:$16 sps:$4 sm:$0xff]   ;;  %v7289_v60 = vld [vmem:[%s11233_s2 + $0x340] ss:$16 sps:$4 sm:$0xff]  }
  0x1e   :  { %v7290_v61 = vld [vmem:[%s11233_s2 + $0x124] ss:$16 sps:$4 sm:$0xff]   ;;  %v7294_v63 = vld [vmem:[%s11233_s2 + $0x120] ss:$16 sps:$4 sm:$0xff]  }
  0x1f   :  { %4883 = vmatpush1.bf16.msra.mxu0 %v7252_v31  ;;  %v7292_v62 = vld [vmem:[%s11233_s2 + $0x324] ss:$16 sps:$4 sm:$0xff]   ;;  %v7295_v0 = vld [vmem:[%s11233_s2 + $0x320] ss:$16 sps:$4 sm:$0xff]  }
  0x20   :  { %4924 = vmatpush1.bf16.msra.mxu1 %v7253_v32  ;;  %4884 = vmatprep.subr.bf16.mxu0 %v7254_v33  ;;  %v7296_v1 = vld [vmem:[%s11233_s2 + $0x104] ss:$16 sps:$4 sm:$0xff]   ;;  %v7300_v3 = vld [vmem:[%s11233_s2 + $0x100] ss:$16 sps:$4 sm:$0xff]  }
  0x21   :  { %4925 = vmatprep.subr.bf16.mxu1 %v7256_v34  ;;  %v7298_v2 = vld [vmem:[%s11233_s2 + $0x304] ss:$16 sps:$4 sm:$0xff]   ;;  %v7301_v4 = vld [vmem:[%s11233_s2 + $0x300] ss:$16 sps:$4 sm:$0xff]  }
  0x22   :  { %v7308_v5 = vld [vmem:[%s11233_s2 + $0x4e4] ss:$16 sps:$4 sm:$0xff]   ;;  %v7306_v10 = vld [vmem:[%s11233_s2 + $0x4e0] ss:$16 sps:$4 sm:$0xff]  }
  0x23   :  { %4885 = vmatpush2.bf16.msra.mxu0 %v7258_v35  ;;  %v7311_v6 = vld [vmem:[%s11233_s2 + $0x6e4] ss:$16 sps:$4 sm:$0xff]   ;;  %v7309_v11 = vld [vmem:[%s11233_s2 + $0x6e0] ss:$16 sps:$4 sm:$0xff]   ;;  %v8779_v35 = vld [vmem:[%s11234_s0 + $0x18] sm:$0xff] }
  0x24   :  { %4926 = vmatpush2.bf16.msra.mxu1 %v7259_v36  ;;  %4886 = vmatprep.subr.bf16.mxu0 %v7260_v37  ;;  %v7314_v12 = vld [vmem:[%s11233_s2 + $0x4c4] ss:$16 sps:$4 sm:$0xff]   ;;  %v7312_v14 = vld [vmem:[%s11233_s2 + $0x4c0] ss:$16 sps:$4 sm:$0xff]  }
  0x25   :  { %4927 = vmatprep.subr.bf16.mxu1 %v7262_v38  ;;  %v7317_v13 = vld [vmem:[%s11233_s2 + $0x6c4] ss:$16 sps:$4 sm:$0xff]   ;;  %v7315_v15 = vld [vmem:[%s11233_s2 + $0x6c0] ss:$16 sps:$4 sm:$0xff]  }
  0x26   :  { %v7320_v16 = vld [vmem:[%s11233_s2 + $0x4a4] ss:$16 sps:$4 sm:$0xff]   ;;  %v7318_v18 = vld [vmem:[%s11233_s2 + $0x4a0] ss:$16 sps:$4 sm:$0xff]  }
  0x27   :  { %4887 = vmatpush2.bf16.msra.mxu0 %v7264_v39  ;;  %v7323_v17 = vld [vmem:[%s11233_s2 + $0x6a4] ss:$16 sps:$4 sm:$0xff]   ;;  %v7321_v19 = vld [vmem:[%s11233_s2 + $0x6a0] ss:$16 sps:$4 sm:$0xff]   ;;  %v8793_v39 = vcombine.high %v8779_v35, %v8779_v35 }
  0x28   :  { %4928 = vmatpush2.bf16.msra.mxu1 %v7265_v40  ;;  %4888 = vmatprep.subr.bf16.mxu0 %v7266_v41  ;;  %v7326_v20 = vld [vmem:[%s11233_s2 + $0x484] ss:$16 sps:$4 sm:$0xff]   ;;  %v7324_v22 = vld [vmem:[%s11233_s2 + $0x480] ss:$16 sps:$4 sm:$0xff]  }
  0x29   :  { %4929 = vmatprep.subr.bf16.mxu1 %v7268_v42  ;;  %v7329_v21 = vld [vmem:[%s11233_s2 + $0x684] ss:$16 sps:$4 sm:$0xff]   ;;  %v7327_v23 = vld [vmem:[%s11233_s2 + $0x680] ss:$16 sps:$4 sm:$0xff]  }
  0x2a   :  { %v7332_v24 = vld [vmem:[%s11233_s2 + $0x464] ss:$16 sps:$4 sm:$0xff]   ;;  %v7330_v26 = vld [vmem:[%s11233_s2 + $0x460] ss:$16 sps:$4 sm:$0xff]  }
  0x2b   :  { %4889 = vmatpush2.bf16.msra.mxu0 %v7270_v43  ;;  %v7335_v25 = vld [vmem:[%s11233_s2 + $0x664] ss:$16 sps:$4 sm:$0xff]   ;;  %v7333_v27 = vld [vmem:[%s11233_s2 + $0x660] ss:$16 sps:$4 sm:$0xff]  }
  0x2c   :  { %4930 = vmatpush2.bf16.msra.mxu1 %v7271_v44  ;;  %4890 = vmatprep.subr.bf16.mxu0 %v7272_v45  ;;  %v7338_v28 = vld [vmem:[%s11233_s2 + $0x444] ss:$16 sps:$4 sm:$0xff]   ;;  %v7336_v30 = vld [vmem:[%s11233_s2 + $0x440] ss:$16 sps:$4 sm:$0xff]  }
  0x2d   :  { %4931 = vmatprep.subr.bf16.mxu1 %v7274_v46  ;;  %v7341_v29 = vld [vmem:[%s11233_s2 + $0x644] ss:$16 sps:$4 sm:$0xff]   ;;  %v7339_v31 = vld [vmem:[%s11233_s2 + $0x640] ss:$16 sps:$4 sm:$0xff]  }
  0x2e   :  { %v7344_v32 = vld [vmem:[%s11233_s2 + $0x424] ss:$16 sps:$4 sm:$0xff]   ;;  %v7342_v36 = vld [vmem:[%s11233_s2 + $0x420] ss:$16 sps:$4 sm:$0xff]  }
  0x2f   :  { %4891 = vmatpush2.bf16.msra.mxu0 %v7276_v50  ;;  %v7347_v33 = vld [vmem:[%s11233_s2 + $0x624] ss:$16 sps:$4 sm:$0xff]   ;;  %v7345_v37 = vld [vmem:[%s11233_s2 + $0x620] ss:$16 sps:$4 sm:$0xff]  }
  0x30   :  { %4932 = vmatpush2.bf16.msra.mxu1 %v7277_v51  ;;  %4892 = vmatprep.subr.bf16.mxu0 %v7278_v53  ;;  %v8774_v34 = vld [vmem:[%s11234_s0 + $0x10] sm:$0xff]  ;;  %v824_v42 = vld [vmem:[%s11235_s1] sm:$0xf] }
  0x31   :  { %4933 = vmatprep.subr.bf16.mxu1 %v7280_v54  ;;  %v8789_v38 = vcombine.high %v8774_v34, %v8774_v34  ;;  %v7350_v40 = vld [vmem:[%s11233_s2 + $0x404] ss:$16 sps:$4 sm:$0xff]   ;;  %v825_v43 = vunpack.c.l.bf16 %v824_v42  ;;  %v7348_v44 = vld [vmem:[%s11233_s2 + $0x400] ss:$16 sps:$4 sm:$0xff]  }
  0x32   :  { %v7353_v41 = vld [vmem:[%s11233_s2 + $0x604] ss:$16 sps:$4 sm:$0xff]   ;;  %v7351_v45 = vld [vmem:[%s11233_s2 + $0x600] ss:$16 sps:$4 sm:$0xff]  }
  0x33   :  { %4893 = vmatpush2.bf16.msra.mxu0 %v7282_v55  ;;  %v7356_v46 = vld [vmem:[%s11233_s2 + $0x5e4] ss:$16 sps:$4 sm:$0xff]   ;;  %829 = vperm.xlu0 %7205, %v825_v43   ;;  %v7354_v49 = vld [vmem:[%s11233_s2 + $0x5e0] ss:$16 sps:$4 sm:$0xff]  }
  0x34   :  { %4934 = vmatpush2.bf16.msra.mxu1 %v7283_v56  ;;  %4894 = vmatprep.subr.bf16.mxu0 %v7284_v57  ;;  %v7359_v47 = vld [vmem:[%s11233_s2 + $0x7e4] ss:$16 sps:$4 sm:$0xff]   ;;  %v7357_v50 = vld [vmem:[%s11233_s2 + $0x7e0] ss:$16 sps:$4 sm:$0xff]  }
  0x35   :  { %4935 = vmatprep.subr.bf16.mxu1 %v7286_v58  ;;  %v7362_v51 = vld [vmem:[%s11233_s2 + $0x5c4] ss:$16 sps:$4 sm:$0xff]   ;;  %v7360_v54 = vld [vmem:[%s11233_s2 + $0x5c0] ss:$16 sps:$4 sm:$0xff]  }
  0x36   :  { %v7365_v53 = vld [vmem:[%s11233_s2 + $0x7c4] ss:$16 sps:$4 sm:$0xff]   ;;  %v7363_v55 = vld [vmem:[%s11233_s2 + $0x7c0] ss:$16 sps:$4 sm:$0xff]  }
  0x37   :  { %4895 = vmatpush2.bf16.msra.mxu0 %v7288_v59  ;;  %v7368_v56 = vld [vmem:[%s11233_s2 + $0x5a4] ss:$16 sps:$4 sm:$0xff]   ;;  %v7366_v58 = vld [vmem:[%s11233_s2 + $0x5a0] ss:$16 sps:$4 sm:$0xff]  }
  0x38   :  { %4936 = vmatpush2.bf16.msra.mxu1 %v7289_v60  ;;  %4896 = vmatprep.subr.bf16.mxu0 %v7290_v61  ;;  %v7371_v57 = vld [vmem:[%s11233_s2 + $0x7a4] ss:$16 sps:$4 sm:$0xff]   ;;  %v7369_v59 = vld [vmem:[%s11233_s2 + $0x7a0] ss:$16 sps:$4 sm:$0xff]  }
  0x39   :  { %4937 = vmatprep.subr.bf16.mxu1 %v7292_v62  ;;  %v7374_v60 = vld [vmem:[%s11233_s2 + $0x584] ss:$16 sps:$4 sm:$0xff]   ;;  %v7372_v62 = vld [vmem:[%s11233_s2 + $0x580] ss:$16 sps:$4 sm:$0xff]  }
  0x3a   :  { %v7377_v61 = vld [vmem:[%s11233_s2 + $0x784] ss:$16 sps:$4 sm:$0xff]   ;;  %v7427_v42 = vld [vmem:[%s11233_s2 + $0xa80] ss:$16 sps:$4 sm:$0xff]  }
  0x3b   :  { %4897 = vmatpush2.bf16.msra.mxu0 %v7294_v63  ;;  %v7375_v63 = vld [vmem:[%s11233_s2 + $0x780] ss:$16 sps:$4 sm:$0xff]   ;;  %v7432_v43 = vld [vmem:[%s11233_s2 + $0x864] ss:$16 sps:$4 sm:$0xff]  }
  0x3c   :  { %4938 = vmatpush2.bf16.msra.mxu1 %v7295_v0  ;;  %4898 = vmatprep.subr.bf16.mxu0 %v7296_v1  ;;  %v7380_v0 = vld [vmem:[%s11233_s2 + $0x564] ss:$16 sps:$4 sm:$0xff]  }
  0x3d   :  { %4939 = vmatprep.subr.bf16.mxu1 %v7298_v2  ;;  %v7383_v1 = vld [vmem:[%s11233_s2 + $0x764] ss:$16 sps:$4 sm:$0xff]   ;;  %v7378_v2 = vld [vmem:[%s11233_s2 + $0x560] ss:$16 sps:$4 sm:$0xff]  }
  0x3f   :  { %4899 = vmatpush2.bf16.msra.mxu0 %v7300_v3  ;;  %v7381_v3 = vld [vmem:[%s11233_s2 + $0x760] ss:$16 sps:$4 sm:$0xff]  }
  0x40   :  { %4940 = vmatpush2.bf16.msra.mxu1 %v7301_v4  ;;  %4950 = vmatprep.subr.bf16.mxu0 %v7308_v5  ;;  %v7386_v4 = vld [vmem:[%s11233_s2 + $0x544] ss:$16 sps:$4 sm:$0xff]  }
  0x41   :  { %4991 = vmatprep.subr.bf16.mxu1 %v7311_v6  ;;  %v7389_v5 = vld [vmem:[%s11233_s2 + $0x744] ss:$16 sps:$4 sm:$0xff]   ;;  %v7384_v6 = vld [vmem:[%s11233_s2 + $0x540] ss:$16 sps:$4 sm:$0xff]  }
  0x42   :  { %4901 = vmatmul.mubr.bf16.vlgmr.msra.gmra.mxu0 %v8693_v7 }
  0x43   :  { %4942 = vmatmul.mubr.bf16.vlgmr.msra.gmra.mxu1 %v8695_v9  ;;  %4951 = vmatpush1.bf16.msra.mxu0 %v7306_v10  ;;  %v7387_v10 = vld [vmem:[%s11233_s2 + $0x740] ss:$16 sps:$4 sm:$0xff]  }
  0x44   :  { %4992 = vmatpush1.bf16.msra.mxu1 %v7309_v11  ;;  %4952 = vmatprep.subr.bf16.mxu0 %v7314_v12  ;;  %v7392_v11 = vld [vmem:[%s11233_s2 + $0x524] ss:$16 sps:$4 sm:$0xff]  }
  0x45   :  { %4993 = vmatprep.subr.bf16.mxu1 %v7317_v13  ;;  %4982 = vmatprep.mubr.bf16.mxu0 %v8789_v38  ;;  %v7395_v12 = vld [vmem:[%s11233_s2 + $0x724] ss:$16 sps:$4 sm:$0xff]   ;;  %v7390_v13 = vld [vmem:[%s11233_s2 + $0x520] ss:$16 sps:$4 sm:$0xff]  }
  0x46   :  { %5023 = vmatprep.mubr.bf16.mxu1 %v8793_v39 }
  0x47   :  { %4953 = vmatpush1.bf16.msra.mxu0 %v7312_v14  ;;  %v7393_v14 = vld [vmem:[%s11233_s2 + $0x720] ss:$16 sps:$4 sm:$0xff]  }
  0x48   :  { %4994 = vmatpush1.bf16.msra.mxu1 %v7315_v15  ;;  %4954 = vmatprep.subr.bf16.mxu0 %v7320_v16  ;;  %v7398_v15 = vld [vmem:[%s11233_s2 + $0x504] ss:$16 sps:$4 sm:$0xff]  }
  0x49   :  { %4995 = vmatprep.subr.bf16.mxu1 %v7323_v17  ;;  %v7401_v16 = vld [vmem:[%s11233_s2 + $0x704] ss:$16 sps:$4 sm:$0xff]   ;;  %v7396_v17 = vld [vmem:[%s11233_s2 + $0x500] ss:$16 sps:$4 sm:$0xff]  }
  0x4b   :  { %4955 = vmatpush1.bf16.msra.mxu0 %v7318_v18  ;;  %v7399_v18 = vld [vmem:[%s11233_s2 + $0x700] ss:$16 sps:$4 sm:$0xff]  }
  0x4c   :  { %4996 = vmatpush1.bf16.msra.mxu1 %v7321_v19  ;;  %4956 = vmatprep.subr.bf16.mxu0 %v7326_v20  ;;  %v7408_v19 = vld [vmem:[%s11233_s2 + $0x8e4] ss:$16 sps:$4 sm:$0xff]  }
  0x4d   :  { %4997 = vmatprep.subr.bf16.mxu1 %v7329_v21  ;;  %v7411_v20 = vld [vmem:[%s11233_s2 + $0xae4] ss:$16 sps:$4 sm:$0xff]   ;;  %v8916_v21 = vcombine.low %v8774_v34, %v8774_v34 }
  0x4e   :  { %v7423_v34 = vld [vmem:[%s11233_s2 + $0xaa4] ss:$16 sps:$4 sm:$0xff]  }
  0x4f   :  { %4957 = vmatpush1.bf16.msra.mxu0 %v7324_v22  ;;  %v8920_v22 = vcombine.low %v8779_v35, %v8779_v35  ;;  %v7418_v35 = vld [vmem:[%s11233_s2 + $0x8a0] ss:$16 sps:$4 sm:$0xff]  }
  0x50   :  { %4998 = vmatpush1.bf16.msra.mxu1 %v7327_v23  ;;  %4958 = vmatprep.subr.bf16.mxu0 %v7332_v24  ;;  %v7406_v23 = vld [vmem:[%s11233_s2 + $0x8e0] ss:$16 sps:$4 sm:$0xff]  }
  0x51   :  { %4999 = vmatprep.subr.bf16.mxu1 %v7335_v25  ;;  %v7409_v24 = vld [vmem:[%s11233_s2 + $0xae0] ss:$16 sps:$4 sm:$0xff]   ;;  %v7414_v25 = vld [vmem:[%s11233_s2 + $0x8c4] ss:$16 sps:$4 sm:$0xff]  }
  0x53   :  { %4959 = vmatpush1.bf16.msra.mxu0 %v7330_v26  ;;  %v7417_v26 = vld [vmem:[%s11233_s2 + $0xac4] ss:$16 sps:$4 sm:$0xff]  }
  0x54   :  { %5000 = vmatpush1.bf16.msra.mxu1 %v7333_v27  ;;  %4960 = vmatprep.subr.bf16.mxu0 %v7338_v28  ;;  %v8937_v27 = vld [vmem:[%s11234_s0 + $0x20] sm:$0xff] }
  0x55   :  { %5001 = vmatprep.subr.bf16.mxu1 %v7341_v29  ;;  %v8941_v28 = vcombine.high %v8937_v27, %v8937_v27  ;;  %v8946_v29 = vld [vmem:[%s11234_s0 + $0x28] sm:$0xff] }
  0x57   :  { %4961 = vmatpush1.bf16.msra.mxu0 %v7336_v30  ;;  %v7412_v30 = vld [vmem:[%s11233_s2 + $0x8c0] ss:$16 sps:$4 sm:$0xff]  }
  0x58   :  { %5002 = vmatpush1.bf16.msra.mxu1 %v7339_v31  ;;  %4962 = vmatprep.subr.bf16.mxu0 %v7344_v32  ;;  %v8955_v31 = vcombine.high %v8946_v29, %v8946_v29  ;;  %v7415_v32 = vld [vmem:[%s11233_s2 + $0xac0] ss:$16 sps:$4 sm:$0xff]  }
  0x59   :  { %5003 = vmatprep.subr.bf16.mxu1 %v7347_v33  ;;  %v7420_v33 = vld [vmem:[%s11233_s2 + $0x8a4] ss:$16 sps:$4 sm:$0xff]  }
  0x5b   :  { %4963 = vmatpush1.bf16.msra.mxu0 %v7342_v36  ;;  %v7421_v36 = vld [vmem:[%s11233_s2 + $0xaa0] ss:$16 sps:$4 sm:$0xff]  }
  0x5c   :  { %5004 = vmatpush1.bf16.msra.mxu1 %v7345_v37  ;;  %4964 = vmatprep.subr.bf16.mxu0 %v7350_v40  ;;  %v7426_v37 = vld [vmem:[%s11233_s2 + $0x884] ss:$16 sps:$4 sm:$0xff]  }
  0x5d   :  { %5005 = vmatprep.subr.bf16.mxu1 %v7353_v41  ;;  %v7429_v40 = vld [vmem:[%s11233_s2 + $0xa84] ss:$16 sps:$4 sm:$0xff]   ;;  %v7424_v41 = vld [vmem:[%s11233_s2 + $0x880] ss:$16 sps:$4 sm:$0xff]  }
  0x5f   :  { %4965 = vmatpush1.bf16.msra.mxu0 %v7348_v44  ;;  %v7435_v44 = vld [vmem:[%s11233_s2 + $0xa64] ss:$16 sps:$4 sm:$0xff]  }
  0x60   :  { %5006 = vmatpush1.bf16.msra.mxu1 %v7351_v45  ;;  %4966 = vmatprep.subr.bf16.mxu0 %v7356_v46  ;;  %v7430_v45 = vld [vmem:[%s11233_s2 + $0x860] ss:$16 sps:$4 sm:$0xff]  }
  0x61   :  { %5007 = vmatprep.subr.bf16.mxu1 %v7359_v47  ;;  %v7433_v46 = vld [vmem:[%s11233_s2 + $0xa60] ss:$16 sps:$4 sm:$0xff]   ;;  %v7438_v47 = vld [vmem:[%s11233_s2 + $0x844] ss:$16 sps:$4 sm:$0xff]  }
  0x63   :  { %4967 = vmatpush2.bf16.msra.mxu0 %v7354_v49  ;;  %v7441_v49 = vld [vmem:[%s11233_s2 + $0xa44] ss:$16 sps:$4 sm:$0xff]  }
  0x64   :  { %5008 = vmatpush2.bf16.msra.mxu1 %v7357_v50  ;;  %4968 = vmatprep.subr.bf16.mxu0 %v7362_v51  ;;  %v7436_v50 = vld [vmem:[%s11233_s2 + $0x840] ss:$16 sps:$4 sm:$0xff]  }
  0x65   :  { %5009 = vmatprep.subr.bf16.mxu1 %v7365_v53  ;;  %v7439_v51 = vld [vmem:[%s11233_s2 + $0xa40] ss:$16 sps:$4 sm:$0xff]   ;;  %v7444_v53 = vld [vmem:[%s11233_s2 + $0x824] ss:$16 sps:$4 sm:$0xff]  }
  0x67   :  { %4969 = vmatpush2.bf16.msra.mxu0 %v7360_v54  ;;  %v7447_v54 = vld [vmem:[%s11233_s2 + $0xa24] ss:$16 sps:$4 sm:$0xff]  }
  0x68   :  { %5010 = vmatpush2.bf16.msra.mxu1 %v7363_v55  ;;  %4970 = vmatprep.subr.bf16.mxu0 %v7368_v56  ;;  %v7442_v55 = vld [vmem:[%s11233_s2 + $0x820] ss:$16 sps:$4 sm:$0xff]  }
  0x69   :  { %5011 = vmatprep.subr.bf16.mxu1 %v7371_v57  ;;  %v7445_v56 = vld [vmem:[%s11233_s2 + $0xa20] ss:$16 sps:$4 sm:$0xff]   ;;  %v7450_v57 = vld [vmem:[%s11233_s2 + $0x804] ss:$16 sps:$4 sm:$0xff]  }
  0x6b   :  { %4971 = vmatpush2.bf16.msra.mxu0 %v7366_v58  ;;  %v7453_v58 = vld [vmem:[%s11233_s2 + $0xa04] ss:$16 sps:$4 sm:$0xff]  }
  0x6c   :  { %5012 = vmatpush2.bf16.msra.mxu1 %v7369_v59  ;;  %4972 = vmatprep.subr.bf16.mxu0 %v7374_v60  ;;  %v7448_v59 = vld [vmem:[%s11233_s2 + $0x800] ss:$16 sps:$4 sm:$0xff]  }
  0x6d   :  { %5013 = vmatprep.subr.bf16.mxu1 %v7377_v61  ;;  %v7451_v60 = vld [vmem:[%s11233_s2 + $0xa00] ss:$16 sps:$4 sm:$0xff]   ;;  %v7456_v61 = vld [vmem:[%s11233_s2 + $0x9e4] ss:$16 sps:$4 sm:$0xff]  }
  0x6f   :  { %4973 = vmatpush2.bf16.msra.mxu0 %v7372_v62  ;;  %v7459_v62 = vld [vmem:[%s11233_s2 + $0xbe4] ss:$16 sps:$4 sm:$0xff]  }
  0x70   :  { %5014 = vmatpush2.bf16.msra.mxu1 %v7375_v63  ;;  %4974 = vmatprep.subr.bf16.mxu0 %v7380_v0  ;;  %v7454_v63 = vld [vmem:[%s11233_s2 + $0x9e0] ss:$16 sps:$4 sm:$0xff]  }
  0x71   :  { %5015 = vmatprep.subr.bf16.mxu1 %v7383_v1  ;;  %v7457_v0 = vld [vmem:[%s11233_s2 + $0xbe0] ss:$16 sps:$4 sm:$0xff]   ;;  %v7462_v1 = vld [vmem:[%s11233_s2 + $0x9c4] ss:$16 sps:$4 sm:$0xff]  }
  0x73   :  { %4975 = vmatpush2.bf16.msra.mxu0 %v7378_v2  ;;  %v7465_v2 = vld [vmem:[%s11233_s2 + $0xbc4] ss:$16 sps:$4 sm:$0xff]  }
  0x74   :  { %5016 = vmatpush2.bf16.msra.mxu1 %v7381_v3  ;;  %4976 = vmatprep.subr.bf16.mxu0 %v7386_v4  ;;  %v7460_v3 = vld [vmem:[%s11233_s2 + $0x9c0] ss:$16 sps:$4 sm:$0xff]  }
  0x75   :  { %5017 = vmatprep.subr.bf16.mxu1 %v7389_v5  ;;  %v7463_v4 = vld [vmem:[%s11233_s2 + $0xbc0] ss:$16 sps:$4 sm:$0xff]   ;;  %v7468_v5 = vld [vmem:[%s11233_s2 + $0x9a4] ss:$16 sps:$4 sm:$0xff]  }
  0x77   :  { %4977 = vmatpush2.bf16.msra.mxu0 %v7384_v6  ;;  %v7471_v6 = vld [vmem:[%s11233_s2 + $0xba4] ss:$16 sps:$4 sm:$0xff]  }
  0x78   :  { %5018 = vmatpush2.bf16.msra.mxu1 %v7387_v10  ;;  %4978 = vmatprep.subr.bf16.mxu0 %v7392_v11  ;;  %v7466_v10 = vld [vmem:[%s11233_s2 + $0x9a0] ss:$16 sps:$4 sm:$0xff]  }
  0x79   :  { %5019 = vmatprep.subr.bf16.mxu1 %v7395_v12  ;;  %v7469_v11 = vld [vmem:[%s11233_s2 + $0xba0] ss:$16 sps:$4 sm:$0xff]   ;;  %v7474_v12 = vld [vmem:[%s11233_s2 + $0x984] ss:$16 sps:$4 sm:$0xff]  }
  0x7b   :  { %4979 = vmatpush2.bf16.msra.mxu0 %v7390_v13  ;;  %v7477_v13 = vld [vmem:[%s11233_s2 + $0xb84] ss:$16 sps:$4 sm:$0xff]  }
  0x7c   :  { %5020 = vmatpush2.bf16.msra.mxu1 %v7393_v14  ;;  %4980 = vmatprep.subr.bf16.mxu0 %v7398_v15  ;;  %v7472_v14 = vld [vmem:[%s11233_s2 + $0x980] ss:$16 sps:$4 sm:$0xff]  }
  0x7d   :  { %5021 = vmatprep.subr.bf16.mxu1 %v7401_v16  ;;  %v7475_v15 = vld [vmem:[%s11233_s2 + $0xb80] ss:$16 sps:$4 sm:$0xff]   ;;  %v7480_v16 = vld [vmem:[%s11233_s2 + $0x964] ss:$16 sps:$4 sm:$0xff]  }
  0x7f   :  { %4981 = vmatpush2.bf16.msra.mxu0 %v7396_v17  ;;  %v7483_v17 = vld [vmem:[%s11233_s2 + $0xb64] ss:$16 sps:$4 sm:$0xff]  }
  0x80   :  { %5022 = vmatpush2.bf16.msra.mxu1 %v7399_v18  ;;  %5032 = vmatprep.subr.bf16.mxu0 %v7408_v19  ;;  %v7478_v18 = vld [vmem:[%s11233_s2 + $0x960] ss:$16 sps:$4 sm:$0xff]  }
  0x81   :  { %5073 = vmatprep.subr.bf16.mxu1 %v7411_v20  ;;  %v7481_v19 = vld [vmem:[%s11233_s2 + $0xb60] ss:$16 sps:$4 sm:$0xff]   ;;  %v7486_v20 = vld [vmem:[%s11233_s2 + $0x944] ss:$16 sps:$4 sm:$0xff]  }
  0x82   :  { %4983 = vmatmul.mubr.bf16.vlgmr.msra.gmra.mxu0 %v8916_v21 }
  0x83   :  { %5024 = vmatmul.mubr.bf16.vlgmr.msra.gmra.mxu1 %v8920_v22  ;;  %5033 = vmatpush1.bf16.msra.mxu0 %v7406_v23  ;;  %v7489_v23 = vld [vmem:[%s11233_s2 + $0xb44] ss:$16 sps:$4 sm:$0xff]  }
  0x84   :  { %5074 = vmatpush1.bf16.msra.mxu1 %v7409_v24  ;;  %5034 = vmatprep.subr.bf16.mxu0 %v7414_v25  ;;  %v7484_v24 = vld [vmem:[%s11233_s2 + $0x940] ss:$16 sps:$4 sm:$0xff]  }
  0x85   :  { %5075 = vmatprep.subr.bf16.mxu1 %v7417_v26  ;;  %5064 = vmatprep.mubr.bf16.mxu0 %v8941_v28  ;;  %v7487_v25 = vld [vmem:[%s11233_s2 + $0xb40] ss:$16 sps:$4 sm:$0xff]   ;;  %v7492_v26 = vld [vmem:[%s11233_s2 + $0x924] ss:$16 sps:$4 sm:$0xff]  }
  0x86   :  { %5105 = vmatprep.mubr.bf16.mxu1 %v8955_v31 }
  0x87   :  { %5035 = vmatpush1.bf16.msra.mxu0 %v7412_v30  ;;  %v7495_v30 = vld [vmem:[%s11233_s2 + $0xb24] ss:$16 sps:$4 sm:$0xff]  }
  0x88   :  { %5076 = vmatpush1.bf16.msra.mxu1 %v7415_v32  ;;  %5036 = vmatprep.subr.bf16.mxu0 %v7420_v33  ;;  %v7490_v32 = vld [vmem:[%s11233_s2 + $0x920] ss:$16 sps:$4 sm:$0xff]  }
  0x89   :  { %5077 = vmatprep.subr.bf16.mxu1 %v7423_v34  ;;  %v7493_v33 = vld [vmem:[%s11233_s2 + $0xb20] ss:$16 sps:$4 sm:$0xff]   ;;  %v7498_v34 = vld [vmem:[%s11233_s2 + $0x904] ss:$16 sps:$4 sm:$0xff]  }
  0x8b   :  { %5037 = vmatpush1.bf16.msra.mxu0 %v7418_v35  ;;  %v7501_v35 = vld [vmem:[%s11233_s2 + $0xb04] ss:$16 sps:$4 sm:$0xff]  }
  0x8c   :  { %5078 = vmatpush1.bf16.msra.mxu1 %v7421_v36  ;;  %5038 = vmatprep.subr.bf16.mxu0 %v7426_v37  ;;  %v7496_v36 = vld [vmem:[%s11233_s2 + $0x900] ss:$16 sps:$4 sm:$0xff]  }
  0x8d   :  { %5079 = vmatprep.subr.bf16.mxu1 %v7429_v40  ;;  %v7499_v37 = vld [vmem:[%s11233_s2 + $0xb00] ss:$16 sps:$4 sm:$0xff]   ;;  %v7508_v40 = vld [vmem:[%s11233_s2 + $0xce4] ss:$16 sps:$4 sm:$0xff]  }
  0x8f   :  { %5039 = vmatpush1.bf16.msra.mxu0 %v7424_v41  ;;  %v7511_v41 = vld [vmem:[%s11233_s2 + $0xee4] ss:$16 sps:$4 sm:$0xff]  }
  0x90   :  { %5080 = vmatpush1.bf16.msra.mxu1 %v7427_v42  ;;  %5040 = vmatprep.subr.bf16.mxu0 %v7432_v43  ;;  %v9139_v42 = vld [vmem:[%s11234_s0 + $0x30] sm:$0xff]  ;;  %v9143_v43 = vcombine.low %v8937_v27, %v8937_v27 }
  0x91   :  { %5081 = vmatprep.subr.bf16.mxu1 %v7435_v44  ;;  %v9147_v44 = vcombine.low %v8946_v29, %v8946_v29  ;;  %v7509_v27 = vld [vmem:[%s11233_s2 + $0xee0] ss:$16 sps:$4 sm:$0xff]   ;;  %v7514_v29 = vld [vmem:[%s11233_s2 + $0xcc4] ss:$16 sps:$4 sm:$0xff]  }
  0x93   :  { %5041 = vmatpush1.bf16.msra.mxu0 %v7430_v45  ;;  %v9152_v45 = vld [vmem:[%s11234_s0 + $0x38] sm:$0xff] }
  0x94   :  { %5082 = vmatpush1.bf16.msra.mxu1 %v7433_v46  ;;  %5042 = vmatprep.subr.bf16.mxu0 %v7438_v47  ;;  %v7506_v46 = vld [vmem:[%s11233_s2 + $0xce0] ss:$16 sps:$4 sm:$0xff]   ;;  %v7517_v47 = vld [vmem:[%s11233_s2 + $0xec4] ss:$16 sps:$4 sm:$0xff]  }
  0x95   :  { %5083 = vmatprep.subr.bf16.mxu1 %v7441_v49  ;;  %v9168_v49 = vcombine.high %v9139_v42, %v9139_v42 }
  0x97   :  { %5043 = vmatpush1.bf16.msra.mxu0 %v7436_v50  ;;  %v9172_v50 = vcombine.high %v9152_v45, %v9152_v45 }
  0x98   :  { %5084 = vmatpush1.bf16.msra.mxu1 %v7439_v51  ;;  %5044 = vmatprep.subr.bf16.mxu0 %v7444_v53  ;;  %v7512_v51 = vld [vmem:[%s11233_s2 + $0xcc0] ss:$16 sps:$4 sm:$0xff]  }
  0x99   :  { %5085 = vmatprep.subr.bf16.mxu1 %v7447_v54  ;;  %v7515_v53 = vld [vmem:[%s11233_s2 + $0xec0] ss:$16 sps:$4 sm:$0xff]   ;;  %v7520_v54 = vld [vmem:[%s11233_s2 + $0xca4] ss:$16 sps:$4 sm:$0xff]  }
  0x9b   :  { %5045 = vmatpush1.bf16.msra.mxu0 %v7442_v55  ;;  %v7523_v55 = vld [vmem:[%s11233_s2 + $0xea4] ss:$16 sps:$4 sm:$0xff]  }
  0x9c   :  { %5086 = vmatpush1.bf16.msra.mxu1 %v7445_v56  ;;  %5046 = vmatprep.subr.bf16.mxu0 %v7450_v57  ;;  %v7518_v56 = vld [vmem:[%s11233_s2 + $0xca0] ss:$16 sps:$4 sm:$0xff]  }
  0x9d   :  { %5087 = vmatprep.subr.bf16.mxu1 %v7453_v58  ;;  %v7521_v57 = vld [vmem:[%s11233_s2 + $0xea0] ss:$16 sps:$4 sm:$0xff]   ;;  %v7526_v58 = vld [vmem:[%s11233_s2 + $0xc84] ss:$16 sps:$4 sm:$0xff]  }
  0x9f   :  { %5047 = vmatpush1.bf16.msra.mxu0 %v7448_v59  ;;  %v7529_v59 = vld [vmem:[%s11233_s2 + $0xe84] ss:$16 sps:$4 sm:$0xff]  }
  0xa0   :  { %5088 = vmatpush1.bf16.msra.mxu1 %v7451_v60  ;;  %5048 = vmatprep.subr.bf16.mxu0 %v7456_v61  ;;  %v7524_v60 = vld [vmem:[%s11233_s2 + $0xc80] ss:$16 sps:$4 sm:$0xff]  }
  0xa1   :  { %5089 = vmatprep.subr.bf16.mxu1 %v7459_v62  ;;  %v7527_v61 = vld [vmem:[%s11233_s2 + $0xe80] ss:$16 sps:$4 sm:$0xff]   ;;  %v7532_v62 = vld [vmem:[%s11233_s2 + $0xc64] ss:$16 sps:$4 sm:$0xff]  }
  0xa3   :  { %5049 = vmatpush2.bf16.msra.mxu0 %v7454_v63  ;;  %v7535_v63 = vld [vmem:[%s11233_s2 + $0xe64] ss:$16 sps:$4 sm:$0xff]  }
  0xa4   :  { %5090 = vmatpush2.bf16.msra.mxu1 %v7457_v0  ;;  %5050 = vmatprep.subr.bf16.mxu0 %v7462_v1  ;;  %v7530_v0 = vld [vmem:[%s11233_s2 + $0xc60] ss:$16 sps:$4 sm:$0xff]  }
  0xa5   :  { %5091 = vmatprep.subr.bf16.mxu1 %v7465_v2  ;;  %v7533_v1 = vld [vmem:[%s11233_s2 + $0xe60] ss:$16 sps:$4 sm:$0xff]   ;;  %v7538_v2 = vld [vmem:[%s11233_s2 + $0xc44] ss:$16 sps:$4 sm:$0xff]  }
  0xa7   :  { %5051 = vmatpush2.bf16.msra.mxu0 %v7460_v3  ;;  %v7541_v3 = vld [vmem:[%s11233_s2 + $0xe44] ss:$16 sps:$4 sm:$0xff]  }
  0xa8   :  { %5092 = vmatpush2.bf16.msra.mxu1 %v7463_v4  ;;  %5052 = vmatprep.subr.bf16.mxu0 %v7468_v5  ;;  %v7536_v4 = vld [vmem:[%s11233_s2 + $0xc40] ss:$16 sps:$4 sm:$0xff]  }
  0xa9   :  { %5093 = vmatprep.subr.bf16.mxu1 %v7471_v6  ;;  %v7539_v5 = vld [vmem:[%s11233_s2 + $0xe40] ss:$16 sps:$4 sm:$0xff]   ;;  %v7544_v6 = vld [vmem:[%s11233_s2 + $0xc24] ss:$16 sps:$4 sm:$0xff]  }
  0xab   :  { %5053 = vmatpush2.bf16.msra.mxu0 %v7466_v10  ;;  %v7547_v10 = vld [vmem:[%s11233_s2 + $0xe24] ss:$16 sps:$4 sm:$0xff]  }
  0xac   :  { %5094 = vmatpush2.bf16.msra.mxu1 %v7469_v11  ;;  %5054 = vmatprep.subr.bf16.mxu0 %v7474_v12  ;;  %v7542_v11 = vld [vmem:[%s11233_s2 + $0xc20] ss:$16 sps:$4 sm:$0xff]  }
  0xad   :  { %5095 = vmatprep.subr.bf16.mxu1 %v7477_v13  ;;  %v7545_v12 = vld [vmem:[%s11233_s2 + $0xe20] ss:$16 sps:$4 sm:$0xff]   ;;  %v7550_v13 = vld [vmem:[%s11233_s2 + $0xc04] ss:$16 sps:$4 sm:$0xff]  }
  0xaf   :  { %5055 = vmatpush2.bf16.msra.mxu0 %v7472_v14  ;;  %v7553_v14 = vld [vmem:[%s11233_s2 + $0xe04] ss:$16 sps:$4 sm:$0xff]  }
  0xb0   :  { %5096 = vmatpush2.bf16.msra.mxu1 %v7475_v15  ;;  %5056 = vmatprep.subr.bf16.mxu0 %v7480_v16  ;;  %v7548_v15 = vld [vmem:[%s11233_s2 + $0xc00] ss:$16 sps:$4 sm:$0xff]  }
  0xb1   :  { %5097 = vmatprep.subr.bf16.mxu1 %v7483_v17  ;;  %v7551_v16 = vld [vmem:[%s11233_s2 + $0xe00] ss:$16 sps:$4 sm:$0xff]   ;;  %v7556_v17 = vld [vmem:[%s11233_s2 + $0xde4] ss:$16 sps:$4 sm:$0xff]  }
  0xb3   :  { %5057 = vmatpush2.bf16.msra.mxu0 %v7478_v18  ;;  %v7559_v18 = vld [vmem:[%s11233_s2 + $0xfe4] ss:$16 sps:$4 sm:$0xff]  }
  0xb4   :  { %5098 = vmatpush2.bf16.msra.mxu1 %v7481_v19  ;;  %5058 = vmatprep.subr.bf16.mxu0 %v7486_v20  ;;  %v7554_v19 = vld [vmem:[%s11233_s2 + $0xde0] ss:$16 sps:$4 sm:$0xff]  }
  0xb5   :  { %5099 = vmatprep.subr.bf16.mxu1 %v7489_v23  ;;  %v7557_v20 = vld [vmem:[%s11233_s2 + $0xfe0] ss:$16 sps:$4 sm:$0xff]   ;;  %v7562_v23 = vld [vmem:[%s11233_s2 + $0xdc4] ss:$16 sps:$4 sm:$0xff]  }
  0xb7   :  { %5059 = vmatpush2.bf16.msra.mxu0 %v7484_v24  ;;  %v7565_v24 = vld [vmem:[%s11233_s2 + $0xfc4] ss:$16 sps:$4 sm:$0xff]  }
  0xb8   :  { %5100 = vmatpush2.bf16.msra.mxu1 %v7487_v25  ;;  %5060 = vmatprep.subr.bf16.mxu0 %v7492_v26  ;;  %v7560_v25 = vld [vmem:[%s11233_s2 + $0xdc0] ss:$16 sps:$4 sm:$0xff]  }
  0xb9   :  { %5101 = vmatprep.subr.bf16.mxu1 %v7495_v30  ;;  %v7563_v26 = vld [vmem:[%s11233_s2 + $0xfc0] ss:$16 sps:$4 sm:$0xff]   ;;  %v7568_v30 = vld [vmem:[%s11233_s2 + $0xda4] ss:$16 sps:$4 sm:$0xff]  }
  0xbb   :  { %5061 = vmatpush2.bf16.msra.mxu0 %v7490_v32  ;;  %v7571_v32 = vld [vmem:[%s11233_s2 + $0xfa4] ss:$16 sps:$4 sm:$0xff]  }
  0xbc   :  { %5102 = vmatpush2.bf16.msra.mxu1 %v7493_v33  ;;  %5062 = vmatprep.subr.bf16.mxu0 %v7498_v34  ;;  %v7566_v33 = vld [vmem:[%s11233_s2 + $0xda0] ss:$16 sps:$4 sm:$0xff]  }
  0xbd   :  { %5103 = vmatprep.subr.bf16.mxu1 %v7501_v35  ;;  %v7569_v34 = vld [vmem:[%s11233_s2 + $0xfa0] ss:$16 sps:$4 sm:$0xff]   ;;  %v7574_v35 = vld [vmem:[%s11233_s2 + $0xd84] ss:$16 sps:$4 sm:$0xff]  }
  0xbf   :  { %5063 = vmatpush2.bf16.msra.mxu0 %v7496_v36  ;;  %v7577_v36 = vld [vmem:[%s11233_s2 + $0xf84] ss:$16 sps:$4 sm:$0xff]  }
  0xc0   :  { %5104 = vmatpush2.bf16.msra.mxu1 %v7499_v37  ;;  %5114 = vmatprep.subr.bf16.mxu0 %v7508_v40  ;;  %v7572_v37 = vld [vmem:[%s11233_s2 + $0xd80] ss:$16 sps:$4 sm:$0xff]  }
  0xc1   :  { %5155 = vmatprep.subr.bf16.mxu1 %v7511_v41  ;;  %v7575_v40 = vld [vmem:[%s11233_s2 + $0xf80] ss:$16 sps:$4 sm:$0xff]   ;;  %v7580_v41 = vld [vmem:[%s11233_s2 + $0xd64] ss:$16 sps:$4 sm:$0xff]  }
  0xc2   :  { %5065 = vmatmul.mubr.bf16.vlgmr.msra.gmra.mxu0 %v9143_v43 }
  0xc3   :  { %5106 = vmatmul.mubr.bf16.vlgmr.msra.gmra.mxu1 %v9147_v44  ;;  %5115 = vmatpush1.bf16.msra.mxu0 %v7506_v46  ;;  %v7583_v46 = vld [vmem:[%s11233_s2 + $0xf64] ss:$16 sps:$4 sm:$0xff]  }
  0xc4   :  { %5156 = vmatpush1.bf16.msra.mxu1 %v7509_v27  ;;  %5116 = vmatprep.subr.bf16.mxu0 %v7514_v29  ;;  %v7578_v27 = vld [vmem:[%s11233_s2 + $0xd60] ss:$16 sps:$4 sm:$0xff]  }
  0xc5   :  { %5157 = vmatprep.subr.bf16.mxu1 %v7517_v47  ;;  %5146 = vmatprep.mubr.bf16.mxu0 %v9168_v49  ;;  %v7581_v29 = vld [vmem:[%s11233_s2 + $0xf60] ss:$16 sps:$4 sm:$0xff]   ;;  %v7586_v47 = vld [vmem:[%s11233_s2 + $0xd44] ss:$16 sps:$4 sm:$0xff]  }
  0xc6   :  { %5187 = vmatprep.mubr.bf16.mxu1 %v9172_v50 }
  0xc7   :  { %5117 = vmatpush1.bf16.msra.mxu0 %v7512_v51  ;;  %v833_v51 = vlaneseq }
  0xc8   :  { %5158 = vmatpush1.bf16.msra.mxu1 %v7515_v53  ;;  %5118 = vmatprep.subr.bf16.mxu0 %v7520_v54  ;;  %v7589_v53 = vld [vmem:[%s11233_s2 + $0xf44] ss:$16 sps:$4 sm:$0xff]   ;;  %v7584_v54 = vld [vmem:[%s11233_s2 + $0xd40] ss:$16 sps:$4 sm:$0xff]  }
  0xc9   :  { %5159 = vmatprep.subr.bf16.mxu1 %v7523_v55  ;;  %v7587_v55 = vld [vmem:[%s11233_s2 + $0xf40] ss:$16 sps:$4 sm:$0xff]  }
  0xcb   :  { %5119 = vmatpush1.bf16.msra.mxu0 %v7518_v56  ;;  %v7592_v56 = vld [vmem:[%s11233_s2 + $0xd24] ss:$16 sps:$4 sm:$0xff]  }
  0xcc   :  { %5160 = vmatpush1.bf16.msra.mxu1 %v7521_v57  ;;  %5120 = vmatprep.subr.bf16.mxu0 %v7526_v58  ;;  %v9331_v57 = vshrl.u32 %v833_v51, 7  ;;  %v7595_v58 = vld [vmem:[%s11233_s2 + $0xf24] ss:$16 sps:$4 sm:$0xff]  }
  0xcd   :  { %5161 = vmatprep.subr.bf16.mxu1 %v7529_v59  ;;  %v7590_v59 = vld [vmem:[%s11233_s2 + $0xd20] ss:$16 sps:$4 sm:$0xff]  }
  0xcf   :  { %5121 = vmatpush1.bf16.msra.mxu0 %v7524_v60  ;;  %v7593_v60 = vld [vmem:[%s11233_s2 + $0xf20] ss:$16 sps:$4 sm:$0xff]  }
  0xd0   :  { %5162 = vmatpush1.bf16.msra.mxu1 %v7527_v61  ;;  %5122 = vmatprep.subr.bf16.mxu0 %v7532_v62  ;;  %v7598_v61 = vld [vmem:[%s11233_s2 + $0xd04] ss:$16 sps:$4 sm:$0xff]  }
  0xd1   :  { %5163 = vmatprep.subr.bf16.mxu1 %v7535_v63  ;;  %v7601_v62 = vld [vmem:[%s11233_s2 + $0xf04] ss:$16 sps:$4 sm:$0xff]   ;;  %v835_v63 = vsub.s32 0, %v9331_v57 }
  0xd3   :  { %5123 = vmatpush1.bf16.msra.mxu0 %v7530_v0  ;;  %v826_v0 = vld [vmem:[%s11236_s3] sm:$0xf] }
  0xd4   :  { %5164 = vmatpush1.bf16.msra.mxu1 %v7533_v1  ;;  %5124 = vmatprep.subr.bf16.mxu0 %v7538_v2  ;;  %v839_v1 = vsub.s32 1, %v9331_v57  ;;  %v7596_v2 = vld [vmem:[%s11233_s2 + $0xd00] ss:$16 sps:$4 sm:$0xff]  }
  0xd5   :  { %5165 = vmatprep.subr.bf16.mxu1 %v7541_v3  ;;  %v7599_v3 = vld [vmem:[%s11233_s2 + $0xf00] ss:$16 sps:$4 sm:$0xff]  }
  0xd7   :  { %5125 = vmatpush1.bf16.msra.mxu0 %v7536_v4  ;;  %v836_v4 = vrot.slane %v826_v0, %v835_v63 }
  0xd8   :  { %5166 = vmatpush1.bf16.msra.mxu1 %v7539_v5  ;;  %5126 = vmatprep.subr.bf16.mxu0 %v7544_v6  ;;  %v7608_v5 = vld [vmem:[%s11233_s2 + $0x10e4] ss:$16 sps:$4 sm:$0xff]   ;;  %v9364_v6 = vpop.permute.xlu0 %829 }
  0xd9   :  { %5167 = vmatprep.subr.bf16.mxu1 %v7547_v10  ;;  %v7611_v10 = vld [vmem:[%s11233_s2 + $0x12e4] ss:$16 sps:$4 sm:$0xff]  }
  0xdb   :  { %5127 = vmatpush1.bf16.msra.mxu0 %v7542_v11  ;;  %v7606_v11 = vld [vmem:[%s11233_s2 + $0x10e0] ss:$16 sps:$4 sm:$0xff]  }
  0xdc   :  { %5168 = vmatpush1.bf16.msra.mxu1 %v7545_v12  ;;  %5128 = vmatprep.subr.bf16.mxu0 %v7550_v13  ;;  %v7609_v12 = vld [vmem:[%s11233_s2 + $0x12e0] ss:$16 sps:$4 sm:$0xff]   ;;  %v840_v13 = vrot.slane %v826_v0, %v839_v1  ;;  %v7638_v0 = vld [vmem:[%s11233_s2 + $0x1044] ss:$16 sps:$4 sm:$0xff]  }
  0xdd   :  { %5169 = vmatprep.subr.bf16.mxu1 %v7553_v14  ;;  %v9379_v14 = vcombine.low %v9139_v42, %v9139_v42  ;;  %v7614_v42 = vld [vmem:[%s11233_s2 + $0x10c4] ss:$16 sps:$4 sm:$0xff]  }
  0xdf   :  { %5129 = vmatpush1.bf16.msra.mxu0 %v7548_v15  ;;  %v9383_v15 = vcombine.low %v9152_v45, %v9152_v45  ;;  %v7617_v45 = vld [vmem:[%s11233_s2 + $0x12c4] ss:$16 sps:$4 sm:$0xff]  }
  0xe0   :  { %5170 = vmatpush1.bf16.msra.mxu1 %v7551_v16  ;;  %5130 = vmatprep.subr.bf16.mxu0 %v7556_v17  ;;  %v9388_v16 = vld [vmem:[%s11234_s0 + $0x40] sm:$0xff]  ;;  %v9393_v17 = vld [vmem:[%s11234_s0 + $0x48] sm:$0xff] }
  0xe1   :  { %5171 = vmatprep.subr.bf16.mxu1 %v7559_v18  ;;  %v853_v18 = vmul.f32 %v836_v4, %v9364_v6  ;;  %v7639_v4 = vld [vmem:[%s11233_s2 + $0x1240] ss:$16 sps:$4 sm:$0xff]  }
  0xe3   :  { %5131 = vmatpush2.bf16.msra.mxu0 %v7554_v19  ;;  %v854_v19 = vmul.f32 %v840_v13, %v9364_v6  ;;  %v7650_v13 = vld [vmem:[%s11233_s2 + $0x1004] ss:$16 sps:$4 sm:$0xff]  }
  0xe4   :  { %5172 = vmatpush2.bf16.msra.mxu1 %v7557_v20  ;;  %5132 = vmatprep.subr.bf16.mxu0 %v7562_v23  ;;  %v9405_v20 = vcombine.high %v9388_v16, %v9388_v16  ;;  %v9409_v23 = vcombine.high %v9393_v17, %v9393_v17 }
  0xe5   :  { %5173 = vmatprep.subr.bf16.mxu1 %v7565_v24 }
  0xe7   :  { %5133 = vmatpush2.bf16.msra.mxu0 %v7560_v25 }
  0xe8   :  { %5174 = vmatpush2.bf16.msra.mxu1 %v7563_v26  ;;  %5134 = vmatprep.subr.bf16.mxu0 %v7568_v30  ;;  %v7612_v30 = vld [vmem:[%s11233_s2 + $0x10c0] ss:$16 sps:$4 sm:$0xff]  }
  0xe9   :  { %5175 = vmatprep.subr.bf16.mxu1 %v7571_v32  ;;  %v7615_v32 = vld [vmem:[%s11233_s2 + $0x12c0] ss:$16 sps:$4 sm:$0xff]  }
  0xeb   :  { %5135 = vmatpush2.bf16.msra.mxu0 %v7566_v33 }
  0xec   :  { %5176 = vmatpush2.bf16.msra.mxu1 %v7569_v34  ;;  %5136 = vmatprep.subr.bf16.mxu0 %v7574_v35  ;;  %v7620_v35 = vld [vmem:[%s11233_s2 + $0x10a4] ss:$16 sps:$4 sm:$0xff]  }
  0xed   :  { %5177 = vmatprep.subr.bf16.mxu1 %v7577_v36  ;;  %v7623_v36 = vld [vmem:[%s11233_s2 + $0x12a4] ss:$16 sps:$4 sm:$0xff]  }
  0xef   :  { %5137 = vmatpush2.bf16.msra.mxu0 %v7572_v37 }
  0xf0   :  { %5178 = vmatpush2.bf16.msra.mxu1 %v7575_v40  ;;  %5138 = vmatprep.subr.bf16.mxu0 %v7580_v41 }
  0xf1   :  { %5179 = vmatprep.subr.bf16.mxu1 %v7583_v46 }
  0xf3   :  { %5139 = vmatpush2.bf16.msra.mxu0 %v7578_v27 }
  0xf4   :  { %5180 = vmatpush2.bf16.msra.mxu1 %v7581_v29  ;;  %5140 = vmatprep.subr.bf16.mxu0 %v7586_v47  ;;  %v7618_v29 = vld [vmem:[%s11233_s2 + $0x10a0] ss:$16 sps:$4 sm:$0xff]  }
  0xf5   :  { %5181 = vmatprep.subr.bf16.mxu1 %v7589_v53  ;;  %v7621_v47 = vld [vmem:[%s11233_s2 + $0x12a0] ss:$16 sps:$4 sm:$0xff]  }
  0xf7   :  { %5141 = vmatpush2.bf16.msra.mxu0 %v7584_v54  ;;  %v7626_v54 = vld [vmem:[%s11233_s2 + $0x1084] ss:$16 sps:$4 sm:$0xff]  }
  0xf8   :  { %5182 = vmatpush2.bf16.msra.mxu1 %v7587_v55  ;;  %5142 = vmatprep.subr.bf16.mxu0 %v7592_v56  ;;  %v7629_v55 = vld [vmem:[%s11233_s2 + $0x1284] ss:$16 sps:$4 sm:$0xff]   ;;  %v7624_v56 = vld [vmem:[%s11233_s2 + $0x1080] ss:$16 sps:$4 sm:$0xff]  }
  0xf9   :  { %5183 = vmatprep.subr.bf16.mxu1 %v7595_v58  ;;  %v7627_v58 = vld [vmem:[%s11233_s2 + $0x1280] ss:$16 sps:$4 sm:$0xff]  }
  0xfb   :  { %5143 = vmatpush2.bf16.msra.mxu0 %v7590_v59  ;;  %v7632_v59 = vld [vmem:[%s11233_s2 + $0x1064] ss:$16 sps:$4 sm:$0xff]  }
  0xfc   :  { %5184 = vmatpush2.bf16.msra.mxu1 %v7593_v60  ;;  %5144 = vmatprep.subr.bf16.mxu0 %v7598_v61  ;;  %v7635_v60 = vld [vmem:[%s11233_s2 + $0x1264] ss:$16 sps:$4 sm:$0xff]   ;;  %v7630_v61 = vld [vmem:[%s11233_s2 + $0x1060] ss:$16 sps:$4 sm:$0xff]  }
  0xfd   :  { %5185 = vmatprep.subr.bf16.mxu1 %v7601_v62  ;;  %v7633_v62 = vld [vmem:[%s11233_s2 + $0x1260] ss:$16 sps:$4 sm:$0xff]  }
  0xff   :  { %5145 = vmatpush2.bf16.msra.mxu0 %v7596_v2  ;;  %v7641_v2 = vld [vmem:[%s11233_s2 + $0x1244] ss:$16 sps:$4 sm:$0xff]  }
 0x100   :  { %5186 = vmatpush2.bf16.msra.mxu1 %v7599_v3  ;;  %5196 = vmatprep.subr.bf16.mxu0 %v7608_v5  ;;  %v7636_v3 = vld [vmem:[%s11233_s2 + $0x1040] ss:$16 sps:$4 sm:$0xff]   ;;  %v7644_v5 = vld [vmem:[%s11233_s2 + $0x1024] ss:$16 sps:$4 sm:$0xff]  }
 0x101   :  { %5237 = vmatprep.subr.bf16.mxu1 %v7611_v10  ;;  %v7647_v10 = vld [vmem:[%s11233_s2 + $0x1224] ss:$16 sps:$4 sm:$0xff]  }
 0x102   :  { %v4902_v24 = vpop.f32.mrf.mxu0  ;;  %5147 = vmatmul.mubr.bf16.vlgmr.msra.gmra.mxu0 %v9379_v14 }
 0x103   :  { %v4943_v25 = vpop.f32.mrf.mxu1  ;;  %5188 = vmatmul.mubr.bf16.vlgmr.msra.gmra.mxu1 %v9383_v15  ;;  %v4903_v26 = vadd.f32 %v4902_v24, %v853_v18  ;;  %5197 = vmatpush1.bf16.msra.mxu0 %v7606_v11  ;;  %v7642_v11 = vld [vmem:[%s11233_s2 + $0x1020] ss:$16 sps:$4 sm:$0xff]   ;;  %v7653_v18 = vld [vmem:[%s11233_s2 + $0x1204] ss:$16 sps:$4 sm:$0xff]  }
 0x104   :  { %5238 = vmatpush1.bf16.msra.mxu1 %v7609_v12  ;;  %v4904_v33 = vpop.f32.mrf.mxu0  ;;  %5198 = vmatprep.subr.bf16.mxu0 %v7614_v42  ;;  %v7645_v12 = vld [vmem:[%s11233_s2 + $0x1220] ss:$16 sps:$4 sm:$0xff]   ;;  %v7659_v24 = vld [vmem:[%s11233_s2 + $0x13e4] ss:$16 sps:$4 sm:$0xff]  }
 0x105   :  { %v4945_v34 = vpop.f32.mrf.mxu1  ;;  %5239 = vmatprep.subr.bf16.mxu1 %v7617_v45  ;;  %v9425_v37 = vadd.f32 %v4943_v25, %v4903_v26  ;;  %v4905_v40 = vadd.f32 %v4904_v33, %v854_v19  ;;  %5228 = vmatprep.mubr.bf16.mxu0 %v9405_v20  ;;  %v7648_v42 = vld [vmem:[%s11233_s2 + $0x1000] ss:$16 sps:$4 sm:$0xff]   ;;  %v7656_v19 = vld [vmem:[%s11233_s2 + $0x11e4] ss:$16 sps:$4 sm:$0xff]  }
 0x106   :  { %5269 = vmatprep.mubr.bf16.mxu1 %v9409_v23  ;;  %v4906_v41 = vpop.f32.mrf.mxu0  ;;  %v7651_v45 = vld [vmem:[%s11233_s2 + $0x1200] ss:$16 sps:$4 sm:$0xff]  }
 0x107   :  { %v4947_v46 = vpop.f32.mrf.mxu1  ;;  %v9429_v27 = vadd.f32 %v4945_v34, %v4905_v40  ;;  %5199 = vmatpush1.bf16.msra.mxu0 %v7612_v30  ;;  %v7654_v25 = vld [vmem:[%s11233_s2 + $0x11e0] ss:$16 sps:$4 sm:$0xff]   ;;  %v7662_v30 = vld [vmem:[%s11233_s2 + $0x11c4] ss:$16 sps:$4 sm:$0xff]  }
 0x108   :  { %5240 = vmatpush1.bf16.msra.mxu1 %v7615_v32  ;;  %v4907_v51 = vpop.f32.mrf.mxu0  ;;  %5200 = vmatprep.subr.bf16.mxu0 %v7620_v35  ;;  %v7657_v26 = vld [vmem:[%s11233_s2 + $0x13e0] ss:$16 sps:$4 sm:$0xff]   ;;  %v7665_v32 = vld [vmem:[%s11233_s2 + $0x13c4] ss:$16 sps:$4 sm:$0xff]  }
 0x109   :  { %v4948_v53 = vpop.f32.mrf.mxu1  ;;  %5241 = vmatprep.subr.bf16.mxu1 %v7623_v36  ;;  %v7660_v33 = vld [vmem:[%s11233_s2 + $0x11c0] ss:$16 sps:$4 sm:$0xff]   ;;  %v7668_v35 = vld [vmem:[%s11233_s2 + $0x11a4] ss:$16 sps:$4 sm:$0xff]  }
 0x10a   :  { %v7663_v34 = vld [vmem:[%s11233_s2 + $0x13c0] ss:$16 sps:$4 sm:$0xff]   ;;  %v7671_v36 = vld [vmem:[%s11233_s2 + $0x13a4] ss:$16 sps:$4 sm:$0xff]  }
 0x10b   :  { %5201 = vmatpush1.bf16.msra.mxu0 %v7618_v29  ;;  %v7666_v40 = vld [vmem:[%s11233_s2 + $0x11a0] ss:$16 sps:$4 sm:$0xff]   ;;  %v7674_v46 = vld [vmem:[%s11233_s2 + $0x1184] ss:$16 sps:$4 sm:$0xff]  }
 0x10c   :  { %5242 = vmatpush1.bf16.msra.mxu1 %v7621_v47  ;;  %5202 = vmatprep.subr.bf16.mxu0 %v7626_v54  ;;  %v7669_v41 = vld [vmem:[%s11233_s2 + $0x13a0] ss:$16 sps:$4 sm:$0xff]   ;;  %v7677_v29 = vld [vmem:[%s11233_s2 + $0x1384] ss:$16 sps:$4 sm:$0xff]  }
 0x10d   :  { %5243 = vmatprep.subr.bf16.mxu1 %v7629_v55  ;;  %v7672_v47 = vld [vmem:[%s11233_s2 + $0x1180] ss:$16 sps:$4 sm:$0xff]   ;;  %v7680_v53 = vld [vmem:[%s11233_s2 + $0x1164] ss:$16 sps:$4 sm:$0xff]  }
 0x10e   :  { %v7675_v51 = vld [vmem:[%s11233_s2 + $0x1380] ss:$16 sps:$4 sm:$0xff]   ;;  %v7683_v54 = vld [vmem:[%s11233_s2 + $0x1364] ss:$16 sps:$4 sm:$0xff]  }
 0x10f   :  { %5203 = vmatpush1.bf16.msra.mxu0 %v7624_v56  ;;  %v7678_v55 = vld [vmem:[%s11233_s2 + $0x1160] ss:$16 sps:$4 sm:$0xff]  }
 0x110   :  { %5244 = vmatpush1.bf16.msra.mxu1 %v7627_v58  ;;  %5204 = vmatprep.subr.bf16.mxu0 %v7632_v59  ;;  %v7681_v56 = vld [vmem:[%s11233_s2 + $0x1360] ss:$16 sps:$4 sm:$0xff]   ;;  %v7686_v58 = vld [vmem:[%s11233_s2 + $0x1144] ss:$16 sps:$4 sm:$0xff]  }
 0x111   :  { %5245 = vmatprep.subr.bf16.mxu1 %v7635_v60  ;;  %v7689_v59 = vld [vmem:[%s11233_s2 + $0x1344] ss:$16 sps:$4 sm:$0xff]   ;;  %v7684_v60 = vld [vmem:[%s11233_s2 + $0x1140] ss:$16 sps:$4 sm:$0xff]  }
 0x113   :  { %5205 = vmatpush1.bf16.msra.mxu0 %v7630_v61  ;;  %v7687_v61 = vld [vmem:[%s11233_s2 + $0x1340] ss:$16 sps:$4 sm:$0xff]  }
 0x114   :  { %5246 = vmatpush1.bf16.msra.mxu1 %v7633_v62  ;;  %5206 = vmatprep.subr.bf16.mxu0 %v7638_v0  ;;  %v7692_v62 = vld [vmem:[%s11233_s2 + $0x1124] ss:$16 sps:$4 sm:$0xff]  }
 0x115   :  { %5247 = vmatprep.subr.bf16.mxu1 %v7641_v2  ;;  %v7695_v0 = vld [vmem:[%s11233_s2 + $0x1324] ss:$16 sps:$4 sm:$0xff]   ;;  %v7690_v2 = vld [vmem:[%s11233_s2 + $0x1120] ss:$16 sps:$4 sm:$0xff]  }
 0x117   :  { %5207 = vmatpush1.bf16.msra.mxu0 %v7636_v3  ;;  %v7693_v3 = vld [vmem:[%s11233_s2 + $0x1320] ss:$16 sps:$4 sm:$0xff]  }
 0x118   :  { %5248 = vmatpush1.bf16.msra.mxu1 %v7639_v4  ;;  %5208 = vmatprep.subr.bf16.mxu0 %v7644_v5  ;;  %v7698_v4 = vld [vmem:[%s11233_s2 + $0x1104] ss:$16 sps:$4 sm:$0xff]  }
 0x119   :  { %5249 = vmatprep.subr.bf16.mxu1 %v7647_v10  ;;  %v7701_v5 = vld [vmem:[%s11233_s2 + $0x1304] ss:$16 sps:$4 sm:$0xff]   ;;  %v7696_v10 = vld [vmem:[%s11233_s2 + $0x1100] ss:$16 sps:$4 sm:$0xff]  }
 0x11b   :  { %5209 = vmatpush1.bf16.msra.mxu0 %v7642_v11  ;;  %v7699_v11 = vld [vmem:[%s11233_s2 + $0x1300] ss:$16 sps:$4 sm:$0xff]  }
 0x11c   :  { %5250 = vmatpush1.bf16.msra.mxu1 %v7645_v12  ;;  %5210 = vmatprep.subr.bf16.mxu0 %v7650_v13  ;;  %v7708_v12 = vld [vmem:[%s11233_s2 + $0x14e4] ss:$16 sps:$4 sm:$0xff]  }
 0x11d   :  { %5251 = vmatprep.subr.bf16.mxu1 %v7653_v18  ;;  %v7711_v13 = vld [vmem:[%s11233_s2 + $0x16e4] ss:$16 sps:$4 sm:$0xff]  }
 0x11e   :  { %v9602_v18 = vld [vmem:[%s11234_s0 + $0x50] sm:$0xff] }
 0x11f   :  { %5211 = vmatpush1.bf16.msra.mxu0 %v7648_v42  ;;  %v9607_v42 = vld [vmem:[%s11234_s0 + $0x58] sm:$0xff] }
 0x120   :  { %5252 = vmatpush1.bf16.msra.mxu1 %v7651_v45  ;;  %5212 = vmatprep.subr.bf16.mxu0 %v7656_v19  ;;  %v7706_v45 = vld [vmem:[%s11233_s2 + $0x14e0] ss:$16 sps:$4 sm:$0xff]  }
 0x121   :  { %5253 = vmatprep.subr.bf16.mxu1 %v7659_v24  ;;  %v7709_v19 = vld [vmem:[%s11233_s2 + $0x16e0] ss:$16 sps:$4 sm:$0xff]   ;;  %v9617_v24 = vcombine.low %v9388_v16, %v9388_v16 }
 0x122   :  { %v7712_v16 = vld [vmem:[%s11233_s2 + $0x14c0] ss:$16 sps:$4 sm:$0xff]  }
 0x123   :  { %5213 = vmatpush2.bf16.msra.mxu0 %v7654_v25  ;;  %v9621_v25 = vcombine.low %v9393_v17, %v9393_v17  ;;  %v7715_v17 = vld [vmem:[%s11233_s2 + $0x16c0] ss:$16 sps:$4 sm:$0xff]  }
 0x124   :  { %5254 = vmatpush2.bf16.msra.mxu1 %v7657_v26  ;;  %5214 = vmatprep.subr.bf16.mxu0 %v7662_v30  ;;  %v7714_v26 = vld [vmem:[%s11233_s2 + $0x14c4] ss:$16 sps:$4 sm:$0xff]  }
 0x125   :  { %5255 = vmatprep.subr.bf16.mxu1 %v7665_v32  ;;  %v7717_v30 = vld [vmem:[%s11233_s2 + $0x16c4] ss:$16 sps:$4 sm:$0xff]   ;;  %v9637_v32 = vcombine.high %v9602_v18, %v9602_v18 }
 0x127   :  { %5215 = vmatpush2.bf16.msra.mxu0 %v7660_v33  ;;  %v9641_v33 = vcombine.high %v9607_v42, %v9607_v42 }
 0x128   :  { %5256 = vmatpush2.bf16.msra.mxu1 %v7663_v34  ;;  %5216 = vmatprep.subr.bf16.mxu0 %v7668_v35 }
 0x129   :  { %5257 = vmatprep.subr.bf16.mxu1 %v7671_v36 }
 0x12b   :  { %5217 = vmatpush2.bf16.msra.mxu0 %v7666_v40 }
 0x12c   :  { %5258 = vmatpush2.bf16.msra.mxu1 %v7669_v41  ;;  %5218 = vmatprep.subr.bf16.mxu0 %v7674_v46  ;;  %v7720_v46 = vld [vmem:[%s11233_s2 + $0x14a4] ss:$16 sps:$4 sm:$0xff]  }
 0x12d   :  { %5259 = vmatprep.subr.bf16.mxu1 %v7677_v29  ;;  %v7723_v29 = vld [vmem:[%s11233_s2 + $0x16a4] ss:$16 sps:$4 sm:$0xff]  }
 0x12f   :  { %5219 = vmatpush2.bf16.msra.mxu0 %v7672_v47 }
 0x130   :  { %5260 = vmatpush2.bf16.msra.mxu1 %v7675_v51  ;;  %5220 = vmatprep.subr.bf16.mxu0 %v7680_v53  ;;  %v7721_v53 = vld [vmem:[%s11233_s2 + $0x16a0] ss:$16 sps:$4 sm:$0xff]  }
 0x131   :  { %5261 = vmatprep.subr.bf16.mxu1 %v7683_v54 }
 0x133   :  { %5221 = vmatpush2.bf16.msra.mxu0 %v7678_v55 }
 0x134   :  { %5262 = vmatpush2.bf16.msra.mxu1 %v7681_v56  ;;  %5222 = vmatprep.subr.bf16.mxu0 %v7686_v58 }
 0x135   :  { %5263 = vmatprep.subr.bf16.mxu1 %v7689_v59  ;;  %v7726_v59 = vld [vmem:[%s11233_s2 + $0x1484] ss:$16 sps:$4 sm:$0xff]  }
 0x137   :  { %5223 = vmatpush2.bf16.msra.mxu0 %v7684_v60  ;;  %v7729_v60 = vld [vmem:[%s11233_s2 + $0x1684] ss:$16 sps:$4 sm:$0xff]  }
 0x138   :  { %5264 = vmatpush2.bf16.msra.mxu1 %v7687_v61  ;;  %5224 = vmatprep.subr.bf16.mxu0 %v7692_v62  ;;  %v7724_v61 = vld [vmem:[%s11233_s2 + $0x1480] ss:$16 sps:$4 sm:$0xff]  }
 0x139   :  { %5265 = vmatprep.subr.bf16.mxu1 %v7695_v0  ;;  %v7727_v62 = vld [vmem:[%s11233_s2 + $0x1680] ss:$16 sps:$4 sm:$0xff]   ;;  %v7732_v0 = vld [vmem:[%s11233_s2 + $0x1464] ss:$16 sps:$4 sm:$0xff]  }
 0x13b   :  { %5225 = vmatpush2.bf16.msra.mxu0 %v7690_v2  ;;  %v7735_v2 = vld [vmem:[%s11233_s2 + $0x1664] ss:$16 sps:$4 sm:$0xff]  }
 0x13c   :  { %5266 = vmatpush2.bf16.msra.mxu1 %v7693_v3  ;;  %5226 = vmatprep.subr.bf16.mxu0 %v7698_v4  ;;  %v7730_v3 = vld [vmem:[%s11233_s2 + $0x1460] ss:$16 sps:$4 sm:$0xff]  }
 0x13d   :  { %5267 = vmatprep.subr.bf16.mxu1 %v7701_v5  ;;  %v7733_v4 = vld [vmem:[%s11233_s2 + $0x1660] ss:$16 sps:$4 sm:$0xff]   ;;  %v7738_v5 = vld [vmem:[%s11233_s2 + $0x1444] ss:$16 sps:$4 sm:$0xff]  }
 0x13f   :  { %5227 = vmatpush2.bf16.msra.mxu0 %v7696_v10  ;;  %v7741_v10 = vld [vmem:[%s11233_s2 + $0x1644] ss:$16 sps:$4 sm:$0xff]  }
 0x140   :  { %5268 = vmatpush2.bf16.msra.mxu1 %v7699_v11  ;;  %5278 = vmatprep.subr.bf16.mxu0 %v7708_v12  ;;  %v7736_v11 = vld [vmem:[%s11233_s2 + $0x1440] ss:$16 sps:$4 sm:$0xff]  }
 0x141   :  { %5319 = vmatprep.subr.bf16.mxu1 %v7711_v13  ;;  %v7739_v12 = vld [vmem:[%s11233_s2 + $0x1640] ss:$16 sps:$4 sm:$0xff]   ;;  %v7744_v13 = vld [vmem:[%s11233_s2 + $0x1424] ss:$16 sps:$4 sm:$0xff]  }
 0x142   :  { %v4984_v34 = vpop.f32.mrf.mxu0  ;;  %5229 = vmatmul.mubr.bf16.vlgmr.msra.gmra.mxu0 %v9617_v24 }
 0x143   :  { %v5025_v35 = vpop.f32.mrf.mxu1  ;;  %5270 = vmatmul.mubr.bf16.vlgmr.msra.gmra.mxu1 %v9621_v25  ;;  %v4985_v36 = vadd.f32 %v4984_v34, %v9425_v37  ;;  %5279 = vmatpush1.bf16.msra.mxu0 %v7706_v45  ;;  %v7718_v37 = vld [vmem:[%s11233_s2 + $0x14a0] ss:$16 sps:$4 sm:$0xff]   ;;  %v7747_v45 = vld [vmem:[%s11233_s2 + $0x1624] ss:$16 sps:$4 sm:$0xff]  }
 0x144   :  { %5320 = vmatpush1.bf16.msra.mxu1 %v7709_v19  ;;  %v4986_v40 = vpop.f32.mrf.mxu0  ;;  %5280 = vmatprep.subr.bf16.mxu0 %v7714_v26  ;;  %v7742_v19 = vld [vmem:[%s11233_s2 + $0x1420] ss:$16 sps:$4 sm:$0xff]  }
 0x145   :  { %v5027_v41 = vpop.f32.mrf.mxu1  ;;  %5321 = vmatprep.subr.bf16.mxu1 %v7717_v30  ;;  %v9652_v47 = vadd.f32 %v5025_v35, %v4985_v36  ;;  %v4987_v51 = vadd.f32 %v4986_v40, %v9429_v27  ;;  %5310 = vmatprep.mubr.bf16.mxu0 %v9637_v32  ;;  %v7745_v26 = vld [vmem:[%s11233_s2 + $0x1620] ss:$16 sps:$4 sm:$0xff]   ;;  %v7750_v30 = vld [vmem:[%s11233_s2 + $0x1404] ss:$16 sps:$4 sm:$0xff]  }
 0x146   :  { %5351 = vmatprep.mubr.bf16.mxu1 %v9641_v33  ;;  %v4988_v54 = vpop.f32.mrf.mxu0  ;;  %v7751_v34 = vld [vmem:[%s11233_s2 + $0x1600] ss:$16 sps:$4 sm:$0xff]   ;;  %v7756_v35 = vld [vmem:[%s11233_s2 + $0x15e4] ss:$16 sps:$4 sm:$0xff]  }
 0x147   :  { %v5029_v55 = vpop.f32.mrf.mxu1  ;;  %v9663_v56 = vadd.f32 %v5027_v41, %v4987_v51  ;;  %5281 = vmatpush1.bf16.msra.mxu0 %v7712_v16  ;;  %v7753_v16 = vld [vmem:[%s11233_s2 + $0x1604] ss:$16 sps:$4 sm:$0xff]   ;;  %v7754_v40 = vld [vmem:[%s11233_s2 + $0x15e0] ss:$16 sps:$4 sm:$0xff]  }
 0x148   :  { %5322 = vmatpush1.bf16.msra.mxu1 %v7715_v17  ;;  %v4989_v58 = vpop.f32.mrf.mxu0  ;;  %5282 = vmatprep.subr.bf16.mxu0 %v7720_v46  ;;  %v7748_v17 = vld [vmem:[%s11233_s2 + $0x1400] ss:$16 sps:$4 sm:$0xff]   ;;  %v7759_v36 = vld [vmem:[%s11233_s2 + $0x17e4] ss:$16 sps:$4 sm:$0xff]  }
 0x149   :  { %v5030_v27 = vpop.f32.mrf.mxu1  ;;  %5323 = vmatprep.subr.bf16.mxu1 %v7723_v29  ;;  %v7757_v41 = vld [vmem:[%s11233_s2 + $0x17e0] ss:$16 sps:$4 sm:$0xff]   ;;  %v7762_v46 = vld [vmem:[%s11233_s2 + $0x15c4] ss:$16 sps:$4 sm:$0xff]  }
 0x14a   :  { %v7765_v29 = vld [vmem:[%s11233_s2 + $0x17c4] ss:$16 sps:$4 sm:$0xff]   ;;  %v7760_v51 = vld [vmem:[%s11233_s2 + $0x15c0] ss:$16 sps:$4 sm:$0xff]  }
 0x14b   :  { %5283 = vmatpush1.bf16.msra.mxu0 %v7718_v37  ;;  %v7763_v37 = vld [vmem:[%s11233_s2 + $0x17c0] ss:$16 sps:$4 sm:$0xff]   ;;  %v7771_v54 = vld [vmem:[%s11233_s2 + $0x17a4] ss:$16 sps:$4 sm:$0xff]  }
 0x14c   :  { %5324 = vmatpush1.bf16.msra.mxu1 %v7721_v53  ;;  %5284 = vmatprep.subr.bf16.mxu0 %v7726_v59  ;;  %v7768_v53 = vld [vmem:[%s11233_s2 + $0x15a4] ss:$16 sps:$4 sm:$0xff]   ;;  %v7766_v55 = vld [vmem:[%s11233_s2 + $0x15a0] ss:$16 sps:$4 sm:$0xff]  }
 0x14d   :  { %5325 = vmatprep.subr.bf16.mxu1 %v7729_v60  ;;  %v7769_v58 = vld [vmem:[%s11233_s2 + $0x17a0] ss:$16 sps:$4 sm:$0xff]   ;;  %v7774_v27 = vld [vmem:[%s11233_s2 + $0x1584] ss:$16 sps:$4 sm:$0xff]  }
 0x14e   :  { %v7777_v59 = vld [vmem:[%s11233_s2 + $0x1784] ss:$16 sps:$4 sm:$0xff]   ;;  %v7772_v60 = vld [vmem:[%s11233_s2 + $0x1580] ss:$16 sps:$4 sm:$0xff]  }
 0x14f   :  { %5285 = vmatpush1.bf16.msra.mxu0 %v7724_v61  ;;  %v7775_v61 = vld [vmem:[%s11233_s2 + $0x1780] ss:$16 sps:$4 sm:$0xff]  }
 0x150   :  { %5326 = vmatpush1.bf16.msra.mxu1 %v7727_v62  ;;  %5286 = vmatprep.subr.bf16.mxu0 %v7732_v0  ;;  %v7780_v62 = vld [vmem:[%s11233_s2 + $0x1564] ss:$16 sps:$4 sm:$0xff]  }
 0x151   :  { %5327 = vmatprep.subr.bf16.mxu1 %v7735_v2  ;;  %v7783_v0 = vld [vmem:[%s11233_s2 + $0x1764] ss:$16 sps:$4 sm:$0xff]   ;;  %v7778_v2 = vld [vmem:[%s11233_s2 + $0x1560] ss:$16 sps:$4 sm:$0xff]  }
 0x153   :  { %5287 = vmatpush1.bf16.msra.mxu0 %v7730_v3  ;;  %v7781_v3 = vld [vmem:[%s11233_s2 + $0x1760] ss:$16 sps:$4 sm:$0xff]  }
 0x154   :  { %5328 = vmatpush1.bf16.msra.mxu1 %v7733_v4  ;;  %5288 = vmatprep.subr.bf16.mxu0 %v7738_v5  ;;  %v7786_v4 = vld [vmem:[%s11233_s2 + $0x1544] ss:$16 sps:$4 sm:$0xff]  }
 0x155   :  { %5329 = vmatprep.subr.bf16.mxu1 %v7741_v10  ;;  %v7789_v5 = vld [vmem:[%s11233_s2 + $0x1744] ss:$16 sps:$4 sm:$0xff]   ;;  %v7784_v10 = vld [vmem:[%s11233_s2 + $0x1540] ss:$16 sps:$4 sm:$0xff]  }
 0x157   :  { %5289 = vmatpush1.bf16.msra.mxu0 %v7736_v11  ;;  %v7787_v11 = vld [vmem:[%s11233_s2 + $0x1740] ss:$16 sps:$4 sm:$0xff]  }
 0x158   :  { %5330 = vmatpush1.bf16.msra.mxu1 %v7739_v12  ;;  %5290 = vmatprep.subr.bf16.mxu0 %v7744_v13  ;;  %v7792_v12 = vld [vmem:[%s11233_s2 + $0x1524] ss:$16 sps:$4 sm:$0xff]  }
 0x159   :  { %5331 = vmatprep.subr.bf16.mxu1 %v7747_v45  ;;  %v7795_v13 = vld [vmem:[%s11233_s2 + $0x1724] ss:$16 sps:$4 sm:$0xff]   ;;  %v7790_v45 = vld [vmem:[%s11233_s2 + $0x1520] ss:$16 sps:$4 sm:$0xff]  }
 0x15b   :  { %5291 = vmatpush1.bf16.msra.mxu0 %v7742_v19  ;;  %v7793_v19 = vld [vmem:[%s11233_s2 + $0x1720] ss:$16 sps:$4 sm:$0xff]  }
 0x15c   :  { %5332 = vmatpush1.bf16.msra.mxu1 %v7745_v26  ;;  %5292 = vmatprep.subr.bf16.mxu0 %v7750_v30  ;;  %v7798_v26 = vld [vmem:[%s11233_s2 + $0x1504] ss:$16 sps:$4 sm:$0xff]  }
 0x15d   :  { %5333 = vmatprep.subr.bf16.mxu1 %v7753_v16  ;;  %v7801_v30 = vld [vmem:[%s11233_s2 + $0x1704] ss:$16 sps:$4 sm:$0xff]   ;;  %v7796_v16 = vld [vmem:[%s11233_s2 + $0x1500] ss:$16 sps:$4 sm:$0xff]  }
 0x15f   :  { %5293 = vmatpush1.bf16.msra.mxu0 %v7748_v17  ;;  %v7799_v17 = vld [vmem:[%s11233_s2 + $0x1700] ss:$16 sps:$4 sm:$0xff]  }
 0x160   :  { %5334 = vmatpush1.bf16.msra.mxu1 %v7751_v34  ;;  %5294 = vmatprep.subr.bf16.mxu0 %v7756_v35  ;;  %v7808_v34 = vld [vmem:[%s11233_s2 + $0x1864] ss:$16 sps:$4 sm:$0xff]   ;;  %v7811_v35 = vld [vmem:[%s11233_s2 + $0xec] ss:$16 sps:$4 sm:$0xff]  }
 0x161   :  { %5335 = vmatprep.subr.bf16.mxu1 %v7759_v36  ;;  %v7806_v36 = vld [vmem:[%s11233_s2 + $0x1860] ss:$16 sps:$4 sm:$0xff]  }
 0x163   :  { %5295 = vmatpush2.bf16.msra.mxu0 %v7754_v40  ;;  %v7809_v40 = vld [vmem:[%s11233_s2 + $0xe8] ss:$16 sps:$4 sm:$0xff]  }
 0x164   :  { %5336 = vmatpush2.bf16.msra.mxu1 %v7757_v41  ;;  %5296 = vmatprep.subr.bf16.mxu0 %v7762_v46  ;;  %v9835_v41 = vcombine.low %v9602_v18, %v9602_v18  ;;  %v9839_v46 = vcombine.low %v9607_v42, %v9607_v42  ;;  %v7812_v18 = vld [vmem:[%s11233_s2 + $0x1840] ss:$16 sps:$4 sm:$0xff]   ;;  %v7815_v42 = vld [vmem:[%s11233_s2 + $0xc8] ss:$16 sps:$4 sm:$0xff]  }
 0x165   :  { %5337 = vmatprep.subr.bf16.mxu1 %v7765_v29  ;;  %v7814_v29 = vld [vmem:[%s11233_s2 + $0x1844] ss:$16 sps:$4 sm:$0xff]  }
 0x167   :  { %5297 = vmatpush2.bf16.msra.mxu0 %v7760_v51  ;;  %v7817_v51 = vld [vmem:[%s11233_s2 + $0xcc] ss:$16 sps:$4 sm:$0xff]  }
 0x168   :  { %5338 = vmatpush2.bf16.msra.mxu1 %v7763_v37  ;;  %5298 = vmatprep.subr.bf16.mxu0 %v7768_v53 }
 0x169   :  { %5339 = vmatprep.subr.bf16.mxu1 %v7771_v54 }
 0x16b   :  { %5299 = vmatpush2.bf16.msra.mxu0 %v7766_v55 }
 0x16c   :  { %5340 = vmatpush2.bf16.msra.mxu1 %v7769_v58  ;;  %5300 = vmatprep.subr.bf16.mxu0 %v7774_v27  ;;  %v7820_v27 = vld [vmem:[%s11233_s2 + $0x1824] ss:$16 sps:$4 sm:$0xff]  }
 0x16d   :  { %5341 = vmatprep.subr.bf16.mxu1 %v7777_v59  ;;  %v7823_v59 = vld [vmem:[%s11233_s2 + $0xac] ss:$16 sps:$4 sm:$0xff]  }
 0x16f   :  { %5301 = vmatpush2.bf16.msra.mxu0 %v7772_v60 }
 0x170   :  { %5342 = vmatpush2.bf16.msra.mxu1 %v7775_v61  ;;  %5302 = vmatprep.subr.bf16.mxu0 %v7780_v62  ;;  %v7821_v62 = vld [vmem:[%s11233_s2 + $0xa8] ss:$16 sps:$4 sm:$0xff]  }
 0x171   :  { %5343 = vmatprep.subr.bf16.mxu1 %v7783_v0 }
 0x173   :  { %5303 = vmatpush2.bf16.msra.mxu0 %v7778_v2 }
 0x174   :  { %5344 = vmatpush2.bf16.msra.mxu1 %v7781_v3  ;;  %5304 = vmatprep.subr.bf16.mxu0 %v7786_v4 }
 0x175   :  { %5345 = vmatprep.subr.bf16.mxu1 %v7789_v5  ;;  %v7826_v5 = vld [vmem:[%s11233_s2 + $0x1804] ss:$16 sps:$4 sm:$0xff]  }
 0x177   :  { %5305 = vmatpush2.bf16.msra.mxu0 %v7784_v10  ;;  %v7829_v10 = vld [vmem:[%s11233_s2 + $0x8c] ss:$16 sps:$4 sm:$0xff]  }
 0x178   :  { %5346 = vmatpush2.bf16.msra.mxu1 %v7787_v11  ;;  %5306 = vmatprep.subr.bf16.mxu0 %v7792_v12  ;;  %v7827_v11 = vld [vmem:[%s11233_s2 + $0x88] ss:$16 sps:$4 sm:$0xff]   ;;  %v7830_v12 = vld [vmem:[%s11234_s0 + $0x60] ss:$0 sps:$4 sm:$0xff]  }
 0x179   :  { %5347 = vmatprep.subr.bf16.mxu1 %v7795_v13  ;;  %v7833_v13 = vld [vmem:[%s11233_s2 + $0x6c] ss:$16 sps:$4 sm:$0xff]  }
 0x17b   :  { %5307 = vmatpush2.bf16.msra.mxu0 %v7790_v45  ;;  %v7836_v45 = vld [vmem:[%s11233_s2 + $0x2ec] ss:$16 sps:$4 sm:$0xff]  }
 0x17c   :  { %5348 = vmatpush2.bf16.msra.mxu1 %v7793_v19  ;;  %5308 = vmatprep.subr.bf16.mxu0 %v7798_v26  ;;  %v7831_v19 = vld [vmem:[%s11233_s2 + $0x68] ss:$16 sps:$4 sm:$0xff]  }
 0x17d   :  { %5349 = vmatprep.subr.bf16.mxu1 %v7801_v30  ;;  %v7834_v26 = vld [vmem:[%s11233_s2 + $0x2e8] ss:$16 sps:$4 sm:$0xff]   ;;  %v7839_v30 = vld [vmem:[%s11233_s2 + $0x4c] ss:$16 sps:$4 sm:$0xff]  }
 0x17f   :  { %5309 = vmatpush2.bf16.msra.mxu0 %v7796_v16  ;;  %v7842_v16 = vld [vmem:[%s11233_s2 + $0x2cc] ss:$16 sps:$4 sm:$0xff]  }
 0x180   :  { %5350 = vmatpush2.bf16.msra.mxu1 %v7799_v17  ;;  %5368 = vmatprep.subr.bf16.mxu0 %v7808_v34  ;;  %v7837_v17 = vld [vmem:[%s11233_s2 + $0x48] ss:$16 sps:$4 sm:$0xff]  }
 0x181   :  { %5401 = vmatprep.subr.bf16.mxu1 %v7811_v35  ;;  %v7840_v34 = vld [vmem:[%s11233_s2 + $0x2c8] ss:$16 sps:$4 sm:$0xff]   ;;  %v7845_v35 = vld [vmem:[%s11233_s2 + $0x2c] ss:$16 sps:$4 sm:$0xff]  }
 0x182   :  { %v5066_v37 = vpop.f32.mrf.mxu0  ;;  %5311 = vmatmul.mubr.bf16.vlgmr.msra.gmra.mxu0 %v9835_v41 }
 0x183   :  { %v5107_v53 = vpop.f32.mrf.mxu1  ;;  %5352 = vmatmul.mubr.bf16.vlgmr.msra.gmra.mxu1 %v9839_v46  ;;  %v5067_v54 = vadd.f32 %v5066_v37, %v9652_v47  ;;  %5369 = vmatpush1.bf16.msra.mxu0 %v7806_v36  ;;  %v7818_v47 = vld [vmem:[%s11233_s2 + $0x1820] ss:$16 sps:$4 sm:$0xff]   ;;  %v7848_v36 = vld [vmem:[%s11233_s2 + $0x2ac] ss:$16 sps:$4 sm:$0xff]  }
 0x184   :  { %5402 = vmatpush1.bf16.msra.mxu1 %v7809_v40  ;;  %v5068_v55 = vpop.f32.mrf.mxu0  ;;  %5370 = vmatprep.subr.bf16.mxu0 %v7814_v29  ;;  %v7843_v40 = vld [vmem:[%s11233_s2 + $0x28] ss:$16 sps:$4 sm:$0xff]   ;;  %v7857_v37 = vld [vmem:[%s11233_s2 + $0x1ec] ss:$16 sps:$4 sm:$0xff]  }
 0x185   :  { %v5109_v58 = vpop.f32.mrf.mxu1  ;;  %5403 = vmatprep.subr.bf16.mxu1 %v7817_v51  ;;  %v9862_v60 = vadd.f32 %v5107_v53, %v5067_v54  ;;  %v5069_v61 = vadd.f32 %v5068_v55, %v9663_v56  ;;  %5392 = vmatprep.mubr.bf16.mxu0 %v8441_v8  ;;  %v7846_v29 = vld [vmem:[%s11233_s2 + $0x2a8] ss:$16 sps:$4 sm:$0xff]   ;;  %v7851_v51 = vld [vmem:[%s11233_s2 + $0xc] ss:$16 sps:$4 sm:$0xff]  }
 0x186   :  { %5433 = vmatprep.mubr.bf16.mxu1 %v8624_v48  ;;  %v5070_v0 = vpop.f32.mrf.mxu0  ;;  %v7824_v48 = vld [vmem:[%s11233_s2 + $0x1800] ss:$16 sps:$4 sm:$0xff]   ;;  %v7860_v53 = vld [vmem:[%s11233_s2 + $0x26c] ss:$16 sps:$4 sm:$0xff]   ;;  %v7855_v54 = vld [vmem:[%s11233_s2 + $0x1e8] ss:$16 sps:$4 sm:$0xff]  }
 0x187   :  { %v5111_v2 = vpop.f32.mrf.mxu1  ;;  %v9873_v3 = vadd.f32 %v5109_v58, %v5069_v61  ;;  %5371 = vmatpush1.bf16.msra.mxu0 %v7812_v18  ;;  %v7849_v18 = vld [vmem:[%s11233_s2 + $0x8] ss:$16 sps:$4 sm:$0xff]   ;;  %v7863_v58 = vld [vmem:[%s11233_s2 + $0x1cc] ss:$16 sps:$4 sm:$0xff]  }
 0x188   :  { %5404 = vmatpush1.bf16.msra.mxu1 %v7815_v42  ;;  %v5071_v4 = vpop.f32.mrf.mxu0  ;;  %5372 = vmatprep.subr.bf16.mxu0 %v7820_v27  ;;  %v7852_v42 = vld [vmem:[%s11233_s2 + $0x288] ss:$16 sps:$4 sm:$0xff]   ;;  %v7866_v27 = vld [vmem:[%s11233_s2 + $0x24c] ss:$16 sps:$4 sm:$0xff]  }
 0x189   :  { %v5112_v56 = vpop.f32.mrf.mxu1  ;;  %5405 = vmatprep.subr.bf16.mxu1 %v7823_v59  ;;  %v7858_v55 = vld [vmem:[%s11233_s2 + $0x268] ss:$16 sps:$4 sm:$0xff]   ;;  %v7875_v4 = vld [vmem:[%s11233_s2 + $0x18c] ss:$16 sps:$4 sm:$0xff]  }
 0x18a   :  { %v7861_v59 = vld [vmem:[%s11233_s2 + $0x1c8] ss:$16 sps:$4 sm:$0xff]   ;;  %v7878_v56 = vld [vmem:[%s11233_s2 + $0x20c] ss:$16 sps:$4 sm:$0xff]  }
 0x18b   :  { %5373 = vmatpush1.bf16.msra.mxu0 %v7818_v47  ;;  %v7864_v61 = vld [vmem:[%s11233_s2 + $0x248] ss:$16 sps:$4 sm:$0xff]   ;;  %v7869_v47 = vld [vmem:[%s11233_s2 + $0x1ac] ss:$16 sps:$4 sm:$0xff]  }
 0x18c   :  { %5406 = vmatpush1.bf16.msra.mxu1 %v7821_v62  ;;  %5374 = vmatprep.subr.bf16.mxu0 %v7826_v5  ;;  %v7872_v62 = vld [vmem:[%s11233_s2 + $0x22c] ss:$16 sps:$4 sm:$0xff]   ;;  %v7867_v0 = vld [vmem:[%s11233_s2 + $0x1a8] ss:$16 sps:$4 sm:$0xff]  }
 0x18d   :  { %5407 = vmatprep.subr.bf16.mxu1 %v7829_v10  ;;  %v7870_v2 = vld [vmem:[%s11233_s2 + $0x228] ss:$16 sps:$4 sm:$0xff]  }
 0x18e   :  { %v7873_v5 = vld [vmem:[%s11233_s2 + $0x188] ss:$16 sps:$4 sm:$0xff]  }
 0x18f   :  { %5375 = vmatpush1.bf16.msra.mxu0 %v7824_v48  ;;  %v7876_v10 = vld [vmem:[%s11233_s2 + $0x208] ss:$16 sps:$4 sm:$0xff]   ;;  %v7881_v48 = vld [vmem:[%s11233_s2 + $0x16c] ss:$16 sps:$4 sm:$0xff]  }
 0x190   :  { %5408 = vmatpush1.bf16.msra.mxu1 %v7827_v11  ;;  %5442 = vmatprep.subr.bf16.mxu0 %v7836_v45  ;;  %v7884_v11 = vld [vmem:[%s11233_s2 + $0x3ec] ss:$16 sps:$4 sm:$0xff]  }
 0x191   :  { %5409 = vmatprep.subr.bf16.mxu1 %v7833_v13  ;;  %v7882_v13 = vld [vmem:[%s11233_s2 + $0x3e8] ss:$16 sps:$4 sm:$0xff]   ;;  %v7887_v45 = vld [vmem:[%s11233_s2 + $0x14c] ss:$16 sps:$4 sm:$0xff]  }
 0x192   :  { %7125 = vmatmul.mubr.msk.bf16.vlgmr.msra.gmra.mxu0 %vm4864_vm0, %v7830_v12  ;;  %v7879_v12 = vld [vmem:[%s11233_s2 + $0x168] ss:$16 sps:$4 sm:$0xff]  }
 0x193   :  { %5443 = vmatpush1.bf16.msra.mxu0 %v7834_v26  ;;  %5474 = vmatprep.mubr.bf16.mxu0 %v8635_v52  ;;  %v7854_v52 = vld [vmem:[%s11233_s2 + $0x28c] ss:$16 sps:$4 sm:$0xff]   ;;  %v7885_v26 = vld [vmem:[%s11233_s2 + $0x148] ss:$16 sps:$4 sm:$0xff]  }
 0x194   :  { %5410 = vmatpush1.bf16.msra.mxu1 %v7831_v19  ;;  %5444 = vmatprep.subr.bf16.mxu0 %v7842_v16  ;;  %v7890_v19 = vld [vmem:[%s11233_s2 + $0x3cc] ss:$16 sps:$4 sm:$0xff]  }
 0x195   :  { %5411 = vmatprep.subr.bf16.mxu1 %v7839_v30  ;;  %v7888_v30 = vld [vmem:[%s11233_s2 + $0x3c8] ss:$16 sps:$4 sm:$0xff]   ;;  %v7893_v16 = vld [vmem:[%s11233_s2 + $0x12c] ss:$16 sps:$4 sm:$0xff]  }
 0x197   :  { %5445 = vmatpush1.bf16.msra.mxu0 %v7840_v34  ;;  %v7891_v34 = vld [vmem:[%s11233_s2 + $0x128] ss:$16 sps:$4 sm:$0xff]  }
 0x198   :  { %5412 = vmatpush1.bf16.msra.mxu1 %v7837_v17  ;;  %5446 = vmatprep.subr.bf16.mxu0 %v7848_v36  ;;  %v7896_v17 = vld [vmem:[%s11233_s2 + $0x3ac] ss:$16 sps:$4 sm:$0xff]  }
 0x199   :  { %5413 = vmatprep.subr.bf16.mxu1 %v7845_v35  ;;  %v7894_v35 = vld [vmem:[%s11233_s2 + $0x3a8] ss:$16 sps:$4 sm:$0xff]   ;;  %v7899_v36 = vld [vmem:[%s11233_s2 + $0x10c] ss:$16 sps:$4 sm:$0xff]  }
 0x19b   :  { %5447 = vmatpush1.bf16.msra.mxu0 %v7846_v29  ;;  %v7897_v29 = vld [vmem:[%s11233_s2 + $0x108] ss:$16 sps:$4 sm:$0xff]  }
 0x19c   :  { %5414 = vmatpush1.bf16.msra.mxu1 %v7843_v40  ;;  %5448 = vmatprep.subr.bf16.mxu0 %v7854_v52  ;;  %v7902_v40 = vld [vmem:[%s11233_s2 + $0x38c] ss:$16 sps:$4 sm:$0xff]  }
 0x19d   :  { %5415 = vmatprep.subr.bf16.mxu1 %v7851_v51  ;;  %v7900_v51 = vld [vmem:[%s11233_s2 + $0x388] ss:$16 sps:$4 sm:$0xff]   ;;  %v7905_v52 = vld [vmem:[%s11233_s2 + $0x36c] ss:$16 sps:$4 sm:$0xff]  }
 0x19f   :  { %5449 = vmatpush1.bf16.msra.mxu0 %v7852_v42  ;;  %v7903_v42 = vld [vmem:[%s11233_s2 + $0x368] ss:$16 sps:$4 sm:$0xff]  }
 0x1a0   :  { %5416 = vmatpush1.bf16.msra.mxu1 %v7849_v18  ;;  %5450 = vmatprep.subr.bf16.mxu0 %v7860_v53  ;;  %v7908_v18 = vld [vmem:[%s11233_s2 + $0x4ec] ss:$16 sps:$4 sm:$0xff]  }
 0x1a1   :  { %5417 = vmatprep.subr.bf16.mxu1 %v7857_v37  ;;  %v7906_v37 = vld [vmem:[%s11233_s2 + $0x4e8] ss:$16 sps:$4 sm:$0xff]   ;;  %v7911_v53 = vld [vmem:[%s11233_s2 + $0x34c] ss:$16 sps:$4 sm:$0xff]  }
 0x1a3   :  { %5451 = vmatpush1.bf16.msra.mxu0 %v7858_v55  ;;  %v7909_v55 = vld [vmem:[%s11233_s2 + $0x348] ss:$16 sps:$4 sm:$0xff]  }
 0x1a4   :  { %5418 = vmatpush2.bf16.msra.mxu1 %v7855_v54  ;;  %5452 = vmatprep.subr.bf16.mxu0 %v7866_v27  ;;  %v7914_v54 = vld [vmem:[%s11233_s2 + $0x4cc] ss:$16 sps:$4 sm:$0xff]  }
 0x1a5   :  { %5419 = vmatprep.subr.bf16.mxu1 %v7863_v58  ;;  %v7912_v58 = vld [vmem:[%s11233_s2 + $0x4c8] ss:$16 sps:$4 sm:$0xff]  }
 0x1a7   :  { %5453 = vmatpush1.bf16.msra.mxu0 %v7864_v61 }
 0x1a8   :  { %5420 = vmatpush2.bf16.msra.mxu1 %v7861_v59  ;;  %5454 = vmatprep.subr.bf16.mxu0 %v7872_v62 }
 0x1a9   :  { %5421 = vmatprep.subr.bf16.mxu1 %v7869_v47 }
 0x1ab   :  { %5455 = vmatpush1.bf16.msra.mxu0 %v7870_v2  ;;  %v7920_v2 = vld [vmem:[%s11233_s2 + $0x4ac] ss:$16 sps:$4 sm:$0xff]  }
 0x1ac   :  { %5422 = vmatpush2.bf16.msra.mxu1 %v7867_v0  ;;  %5456 = vmatprep.subr.bf16.mxu0 %v7878_v56  ;;  %v7917_v0 = vld [vmem:[%s11233_s2 + $0x32c] ss:$16 sps:$4 sm:$0xff]   ;;  %v7918_v56 = vld [vmem:[%s11233_s2 + $0x4a8] ss:$16 sps:$4 sm:$0xff]  }
 0x1ad   :  { %5423 = vmatprep.subr.bf16.mxu1 %v7875_v4 }
 0x1af   :  { %5457 = vmatpush1.bf16.msra.mxu0 %v7876_v10 }
 0x1b0   :  { %5424 = vmatpush2.bf16.msra.mxu1 %v7873_v5  ;;  %5458 = vmatprep.subr.bf16.mxu0 %v7884_v11 }
 0x1b1   :  { %5425 = vmatprep.subr.bf16.mxu1 %v7881_v48 }
 0x1b3   :  { %5459 = vmatpush2.bf16.msra.mxu0 %v7882_v13  ;;  %v7926_v13 = vld [vmem:[%s11233_s2 + $0x48c] ss:$16 sps:$4 sm:$0xff]  }
 0x1b4   :  { %5426 = vmatpush2.bf16.msra.mxu1 %v7879_v12  ;;  %5460 = vmatprep.subr.bf16.mxu0 %v7890_v19  ;;  %v7929_v19 = vld [vmem:[%s11233_s2 + $0x46c] ss:$16 sps:$4 sm:$0xff]  }
 0x1b5   :  { %5427 = vmatprep.subr.bf16.mxu1 %v7887_v45  ;;  %v7924_v45 = vld [vmem:[%s11233_s2 + $0x488] ss:$16 sps:$4 sm:$0xff]  }
 0x1b7   :  { %5461 = vmatpush2.bf16.msra.mxu0 %v7888_v30  ;;  %v7927_v30 = vld [vmem:[%s11233_s2 + $0x468] ss:$16 sps:$4 sm:$0xff]  }
 0x1b8   :  { %5428 = vmatpush2.bf16.msra.mxu1 %v7885_v26  ;;  %5462 = vmatprep.subr.bf16.mxu0 %v7896_v17  ;;  %v7932_v26 = vld [vmem:[%s11233_s2 + $0x6ec] ss:$16 sps:$4 sm:$0xff]  }
 0x1b9   :  { %5429 = vmatprep.subr.bf16.mxu1 %v7893_v16  ;;  %v7930_v16 = vld [vmem:[%s11233_s2 + $0x6e8] ss:$16 sps:$4 sm:$0xff]   ;;  %v7935_v17 = vld [vmem:[%s11233_s2 + $0x44c] ss:$16 sps:$4 sm:$0xff]  }
 0x1bb   :  { %5463 = vmatpush2.bf16.msra.mxu0 %v7894_v35  ;;  %v7933_v35 = vld [vmem:[%s11233_s2 + $0x448] ss:$16 sps:$4 sm:$0xff]  }
 0x1bc   :  { %5430 = vmatpush2.bf16.msra.mxu1 %v7891_v34  ;;  %5464 = vmatprep.subr.bf16.mxu0 %v7902_v40  ;;  %v7938_v34 = vld [vmem:[%s11233_s2 + $0x6cc] ss:$16 sps:$4 sm:$0xff]  }
 0x1bd   :  { %5431 = vmatprep.subr.bf16.mxu1 %v7899_v36  ;;  %v7936_v36 = vld [vmem:[%s11233_s2 + $0x6c8] ss:$16 sps:$4 sm:$0xff]   ;;  %v7941_v40 = vld [vmem:[%s11233_s2 + $0x42c] ss:$16 sps:$4 sm:$0xff]  }
 0x1bf   :  { %5465 = vmatpush2.bf16.msra.mxu0 %v7900_v51  ;;  %v7942_v51 = vld [vmem:[%s11233_s2 + $0x6a8] ss:$16 sps:$4 sm:$0xff]  }
 0x1c0   :  { %5432 = vmatpush2.bf16.msra.mxu1 %v7897_v29  ;;  %5466 = vmatprep.subr.bf16.mxu0 %v7905_v52  ;;  %v7939_v29 = vld [vmem:[%s11233_s2 + $0x428] ss:$16 sps:$4 sm:$0xff]   ;;  %v7947_v52 = vld [vmem:[%s11233_s2 + $0x40c] ss:$16 sps:$4 sm:$0xff]  }
 0x1c1   :  { %5483 = vmatprep.subr.bf16.mxu1 %v7908_v18  ;;  %v7945_v18 = vld [vmem:[%s11233_s2 + $0x408] ss:$16 sps:$4 sm:$0xff]  }
 0x1c2   :  { %v5148_v27 = vpop.f32.mrf.mxu0 }
 0x1c3   :  { %v5189_v59 = vpop.f32.mrf.mxu1  ;;  %5434 = vmatmul.mubr.bf16.vlgmr.msra.gmra.mxu1 %v8693_v7  ;;  %v5149_v61 = vadd.f32 %v5148_v27, %v9862_v60  ;;  %5467 = vmatpush2.bf16.msra.mxu0 %v7903_v42  ;;  %v7915_v60 = vld [vmem:[%s11233_s2 + $0x328] ss:$16 sps:$4 sm:$0xff]   ;;  %v7962_v27 = vld [vmem:[%s11233_s2 + $0x64c] ss:$16 sps:$4 sm:$0xff]  }
 0x1c4   :  { %5484 = vmatpush1.bf16.msra.mxu1 %v7906_v37  ;;  %v5150_v47 = vpop.f32.mrf.mxu0  ;;  %5468 = vmatprep.subr.bf16.mxu0 %v7911_v53  ;;  %v7948_v42 = vld [vmem:[%s11233_s2 + $0x688] ss:$16 sps:$4 sm:$0xff]   ;;  %v7953_v37 = vld [vmem:[%s11233_s2 + $0x5ec] ss:$16 sps:$4 sm:$0xff]  }
 0x1c5   :  { %v5191_v62 = vpop.f32.mrf.mxu1  ;;  %5485 = vmatprep.subr.bf16.mxu1 %v7914_v54  ;;  %v10068_v4 = vadd.f32 %v5189_v59, %v5149_v61  ;;  %v5151_v7 = vadd.f32 %v5150_v47, %v9873_v3  ;;  %5515 = vmatprep.mubr.bf16.mxu1 %v8789_v38  ;;  %v7923_v3 = vld [vmem:[%s11233_s2 + $0x30c] ss:$16 sps:$4 sm:$0xff]   ;;  %v7921_v38 = vld [vmem:[%s11233_s2 + $0x308] ss:$16 sps:$4 sm:$0xff]  }
 0x1c6   :  { %v5152_v5 = vpop.f32.mrf.mxu0  ;;  %v7956_v53 = vld [vmem:[%s11233_s2 + $0x66c] ss:$16 sps:$4 sm:$0xff]   ;;  %v7951_v54 = vld [vmem:[%s11233_s2 + $0x5e8] ss:$16 sps:$4 sm:$0xff]  }
 0x1c7   :  { %v5193_v10 = vpop.f32.mrf.mxu1  ;;  %v10078_v48 = vadd.f32 %v5191_v62, %v5151_v7  ;;  %5469 = vmatpush2.bf16.msra.mxu0 %v7909_v55  ;;  %v7954_v55 = vld [vmem:[%s11233_s2 + $0x668] ss:$16 sps:$4 sm:$0xff]   ;;  %v7965_v47 = vld [vmem:[%s11233_s2 + $0x5ac] ss:$16 sps:$4 sm:$0xff]  }
 0x1c8   :  { %5486 = vmatpush1.bf16.msra.mxu1 %v7912_v58  ;;  %v5153_v11 = vpop.f32.mrf.mxu0  ;;  %5470 = vmatprep.subr.bf16.mxu0 %v7917_v0  ;;  %v7959_v58 = vld [vmem:[%s11233_s2 + $0x5cc] ss:$16 sps:$4 sm:$0xff]   ;;  %v7957_v59 = vld [vmem:[%s11233_s2 + $0x5c8] ss:$16 sps:$4 sm:$0xff]  }
 0x1c9   :  { %v5194_v12 = vpop.f32.mrf.mxu1  ;;  %5487 = vmatprep.subr.bf16.mxu1 %v7920_v2  ;;  %v7960_v61 = vld [vmem:[%s11233_s2 + $0x648] ss:$16 sps:$4 sm:$0xff]   ;;  %v7968_v62 = vld [vmem:[%s11233_s2 + $0x62c] ss:$16 sps:$4 sm:$0xff]  }
 0x1ca   :  { %v7963_v0 = vld [vmem:[%s11233_s2 + $0x5a8] ss:$16 sps:$4 sm:$0xff]   ;;  %v7971_v7 = vld [vmem:[%s11233_s2 + $0x58c] ss:$16 sps:$4 sm:$0xff]  }
 0x1cb   :  { %5471 = vmatpush2.bf16.msra.mxu0 %v7915_v60  ;;  %v7966_v2 = vld [vmem:[%s11233_s2 + $0x628] ss:$16 sps:$4 sm:$0xff]   ;;  %v7974_v60 = vld [vmem:[%s11233_s2 + $0x60c] ss:$16 sps:$4 sm:$0xff]  }
 0x1cc   :  { %5488 = vmatpush1.bf16.msra.mxu1 %v7918_v56  ;;  %5472 = vmatprep.subr.bf16.mxu0 %v7923_v3  ;;  %v7969_v56 = vld [vmem:[%s11233_s2 + $0x588] ss:$16 sps:$4 sm:$0xff]   ;;  %v7977_v10 = vld [vmem:[%s11233_s2 + $0x56c] ss:$16 sps:$4 sm:$0xff]  }
 0x1cd   :  { %5489 = vmatprep.subr.bf16.mxu1 %v7926_v13  ;;  %v7972_v5 = vld [vmem:[%s11233_s2 + $0x608] ss:$16 sps:$4 sm:$0xff]   ;;  %v7980_v11 = vld [vmem:[%s11233_s2 + $0x7ec] ss:$16 sps:$4 sm:$0xff]  }
 0x1ce   :  { %v7975_v12 = vld [vmem:[%s11233_s2 + $0x568] ss:$16 sps:$4 sm:$0xff]   ;;  %v7983_v13 = vld [vmem:[%s11233_s2 + $0x54c] ss:$16 sps:$4 sm:$0xff]  }
 0x1cf   :  { %5473 = vmatpush2.bf16.msra.mxu0 %v7921_v38  ;;  %v7978_v3 = vld [vmem:[%s11233_s2 + $0x7e8] ss:$16 sps:$4 sm:$0xff]   ;;  %v7986_v38 = vld [vmem:[%s11233_s2 + $0x7cc] ss:$16 sps:$4 sm:$0xff]  }
 0x1d0   :  { %5490 = vmatpush1.bf16.msra.mxu1 %v7924_v45  ;;  %5524 = vmatprep.subr.bf16.mxu0 %v7932_v26  ;;  %v7981_v45 = vld [vmem:[%s11233_s2 + $0x548] ss:$16 sps:$4 sm:$0xff]   ;;  %v7989_v26 = vld [vmem:[%s11233_s2 + $0x52c] ss:$16 sps:$4 sm:$0xff]  }
 0x1d1   :  { %5491 = vmatprep.subr.bf16.mxu1 %v7929_v19  ;;  %v7984_v19 = vld [vmem:[%s11233_s2 + $0x7c8] ss:$16 sps:$4 sm:$0xff]  }
 0x1d2   :  { %5475 = vmatmul.mubr.bf16.vlgmr.msra.gmra.mxu0 %v8695_v9  ;;  %v7944_v9 = vld [vmem:[%s11233_s2 + $0x6ac] ss:$16 sps:$4 sm:$0xff]  }
 0x1d3   :  { %5525 = vmatpush1.bf16.msra.mxu0 %v7930_v16  ;;  %5556 = vmatprep.mubr.bf16.mxu0 %v8793_v39  ;;  %v7950_v39 = vld [vmem:[%s11233_s2 + $0x68c] ss:$16 sps:$4 sm:$0xff]   ;;  %v7987_v16 = vld [vmem:[%s11233_s2 + $0x528] ss:$16 sps:$4 sm:$0xff]  }
 0x1d4   :  { %5492 = vmatpush1.bf16.msra.mxu1 %v7927_v30  ;;  %5526 = vmatprep.subr.bf16.mxu0 %v7938_v34  ;;  %v7992_v30 = vld [vmem:[%s11233_s2 + $0x7ac] ss:$16 sps:$4 sm:$0xff]  }
 0x1d5   :  { %5493 = vmatprep.subr.bf16.mxu1 %v7935_v17  ;;  %v7990_v17 = vld [vmem:[%s11233_s2 + $0x7a8] ss:$16 sps:$4 sm:$0xff]   ;;  %v7995_v34 = vld [vmem:[%s11233_s2 + $0x50c] ss:$16 sps:$4 sm:$0xff]  }
 0x1d7   :  { %5527 = vmatpush1.bf16.msra.mxu0 %v7936_v36  ;;  %v7993_v36 = vld [vmem:[%s11233_s2 + $0x508] ss:$16 sps:$4 sm:$0xff]  }
 0x1d8   :  { %5494 = vmatpush1.bf16.msra.mxu1 %v7933_v35  ;;  %5528 = vmatprep.subr.bf16.mxu0 %v7944_v9  ;;  %v7998_v35 = vld [vmem:[%s11233_s2 + $0x78c] ss:$16 sps:$4 sm:$0xff]  }
 0x1d9   :  { %5495 = vmatprep.subr.bf16.mxu1 %v7941_v40  ;;  %v7996_v40 = vld [vmem:[%s11233_s2 + $0x788] ss:$16 sps:$4 sm:$0xff]   ;;  %v8001_v9 = vld [vmem:[%s11233_s2 + $0x76c] ss:$16 sps:$4 sm:$0xff]  }
 0x1db   :  { %5529 = vmatpush1.bf16.msra.mxu0 %v7942_v51  ;;  %v7999_v51 = vld [vmem:[%s11233_s2 + $0x768] ss:$16 sps:$4 sm:$0xff]  }
 0x1dc   :  { %5496 = vmatpush1.bf16.msra.mxu1 %v7939_v29  ;;  %5530 = vmatprep.subr.bf16.mxu0 %v7950_v39  ;;  %v8004_v29 = vld [vmem:[%s11233_s2 + $0x8ec] ss:$16 sps:$4 sm:$0xff]  }
 0x1dd   :  { %5497 = vmatprep.subr.bf16.mxu1 %v7947_v52  ;;  %v8002_v52 = vld [vmem:[%s11233_s2 + $0x8e8] ss:$16 sps:$4 sm:$0xff]   ;;  %v8007_v39 = vld [vmem:[%s11233_s2 + $0x74c] ss:$16 sps:$4 sm:$0xff]  }
 0x1df   :  { %5531 = vmatpush1.bf16.msra.mxu0 %v7948_v42 }
 0x1e0   :  { %5498 = vmatpush1.bf16.msra.mxu1 %v7945_v18  ;;  %5532 = vmatprep.subr.bf16.mxu0 %v7956_v53  ;;  %v8010_v18 = vld [vmem:[%s11233_s2 + $0x8cc] ss:$16 sps:$4 sm:$0xff]  }
 0x1e1   :  { %5499 = vmatprep.subr.bf16.mxu1 %v7953_v37 }
 0x1e3   :  { %5533 = vmatpush1.bf16.msra.mxu0 %v7954_v55  ;;  %v8008_v55 = vld [vmem:[%s11233_s2 + $0x8c8] ss:$16 sps:$4 sm:$0xff]  }
 0x1e4   :  { %5500 = vmatpush2.bf16.msra.mxu1 %v7951_v54  ;;  %5534 = vmatprep.subr.bf16.mxu0 %v7962_v27  ;;  %v8005_v54 = vld [vmem:[%s11233_s2 + $0x748] ss:$16 sps:$4 sm:$0xff]  }
 0x1e5   :  { %5501 = vmatprep.subr.bf16.mxu1 %v7959_v58 }
 0x1e7   :  { %5535 = vmatpush1.bf16.msra.mxu0 %v7960_v61 }
 0x1e8   :  { %5502 = vmatpush2.bf16.msra.mxu1 %v7957_v59  ;;  %5536 = vmatprep.subr.bf16.mxu0 %v7968_v62 }
 0x1e9   :  { %5503 = vmatprep.subr.bf16.mxu1 %v7965_v47 }
 0x1eb   :  { %5537 = vmatpush1.bf16.msra.mxu0 %v7966_v2  ;;  %v8011_v2 = vld [vmem:[%s11233_s2 + $0x728] ss:$16 sps:$4 sm:$0xff]  }
 0x1ec   :  { %5504 = vmatpush2.bf16.msra.mxu1 %v7963_v0  ;;  %5538 = vmatprep.subr.bf16.mxu0 %v7974_v60 }
 0x1ed   :  { %5505 = vmatprep.subr.bf16.mxu1 %v7971_v7  ;;  %v8014_v7 = vld [vmem:[%s11233_s2 + $0x8a8] ss:$16 sps:$4 sm:$0xff]  }
 0x1ef   :  { %5539 = vmatpush1.bf16.msra.mxu0 %v7972_v5  ;;  %v8017_v5 = vld [vmem:[%s11233_s2 + $0x708] ss:$16 sps:$4 sm:$0xff]  }
 0x1f0   :  { %5506 = vmatpush2.bf16.msra.mxu1 %v7969_v56  ;;  %5540 = vmatprep.subr.bf16.mxu0 %v7980_v11  ;;  %v8025_v11 = vld [vmem:[%s11233_s2 + $0x86c] ss:$16 sps:$4 sm:$0xff]  }
 0x1f1   :  { %5507 = vmatprep.subr.bf16.mxu1 %v7977_v10  ;;  %v8020_v10 = vld [vmem:[%s11233_s2 + $0x888] ss:$16 sps:$4 sm:$0xff]  }
 0x1f3   :  { %5541 = vmatpush2.bf16.msra.mxu0 %v7978_v3  ;;  %v8023_v3 = vld [vmem:[%s11233_s2 + $0x868] ss:$16 sps:$4 sm:$0xff]  }
 0x1f4   :  { %5508 = vmatpush2.bf16.msra.mxu1 %v7975_v12  ;;  %5542 = vmatprep.subr.bf16.mxu0 %v7986_v38  ;;  %v8028_v12 = vld [vmem:[%s11233_s2 + $0xaec] ss:$16 sps:$4 sm:$0xff]  }
 0x1f5   :  { %5509 = vmatprep.subr.bf16.mxu1 %v7983_v13  ;;  %v8026_v13 = vld [vmem:[%s11233_s2 + $0xae8] ss:$16 sps:$4 sm:$0xff]   ;;  %v8031_v38 = vld [vmem:[%s11233_s2 + $0x84c] ss:$16 sps:$4 sm:$0xff]  }
 0x1f7   :  { %5543 = vmatpush2.bf16.msra.mxu0 %v7984_v19  ;;  %v8029_v19 = vld [vmem:[%s11233_s2 + $0x848] ss:$16 sps:$4 sm:$0xff]  }
 0x1f8   :  { %5510 = vmatpush2.bf16.msra.mxu1 %v7981_v45  ;;  %5544 = vmatprep.subr.bf16.mxu0 %v7992_v30  ;;  %v8034_v45 = vld [vmem:[%s11233_s2 + $0xacc] ss:$16 sps:$4 sm:$0xff]  }
 0x1f9   :  { %5511 = vmatprep.subr.bf16.mxu1 %v7989_v26  ;;  %v8032_v26 = vld [vmem:[%s11233_s2 + $0xac8] ss:$16 sps:$4 sm:$0xff]   ;;  %v8037_v30 = vld [vmem:[%s11233_s2 + $0x82c] ss:$16 sps:$4 sm:$0xff]  }
 0x1fb   :  { %5545 = vmatpush2.bf16.msra.mxu0 %v7990_v17  ;;  %v8038_v17 = vld [vmem:[%s11233_s2 + $0xaa8] ss:$16 sps:$4 sm:$0xff]  }
 0x1fc   :  { %5512 = vmatpush2.bf16.msra.mxu1 %v7987_v16  ;;  %5546 = vmatprep.subr.bf16.mxu0 %v7998_v35  ;;  %v8035_v16 = vld [vmem:[%s11233_s2 + $0x828] ss:$16 sps:$4 sm:$0xff]  }
 0x1fd   :  { %5513 = vmatprep.subr.bf16.mxu1 %v7995_v34  ;;  %v8043_v34 = vld [vmem:[%s11233_s2 + $0x80c] ss:$16 sps:$4 sm:$0xff]   ;;  %v8041_v35 = vld [vmem:[%s11233_s2 + $0x808] ss:$16 sps:$4 sm:$0xff]  }
 0x1ff   :  { %5547 = vmatpush2.bf16.msra.mxu0 %v7996_v40  ;;  %v8049_v40 = vld [vmem:[%s11233_s2 + $0x9ec] ss:$16 sps:$4 sm:$0xff]  }
 0x200   :  { %5514 = vmatpush2.bf16.msra.mxu1 %v7993_v36  ;;  %5548 = vmatprep.subr.bf16.mxu0 %v8001_v9  ;;  %v8044_v36 = vld [vmem:[%s11233_s2 + $0xa88] ss:$16 sps:$4 sm:$0xff]   ;;  %v8052_v9 = vld [vmem:[%s11233_s2 + $0xa6c] ss:$16 sps:$4 sm:$0xff]  }
 0x201   :  { %5565 = vmatprep.subr.bf16.mxu1 %v8004_v29  ;;  %v8047_v29 = vld [vmem:[%s11233_s2 + $0x9e8] ss:$16 sps:$4 sm:$0xff]  }
 0x202   :  { %v5230_v42 = vpop.f32.mrf.mxu0 }
 0x203   :  { %v5271_v37 = vpop.f32.mrf.mxu1  ;;  %5516 = vmatmul.mubr.bf16.vlgmr.msra.gmra.mxu1 %v8916_v21  ;;  %v5231_v53 = vadd.f32 %v5230_v42, %v10068_v4  ;;  %5549 = vmatpush2.bf16.msra.mxu0 %v7999_v51  ;;  %v8013_v21 = vld [vmem:[%s11233_s2 + $0x72c] ss:$16 sps:$4 sm:$0xff]   ;;  %v8050_v51 = vld [vmem:[%s11233_s2 + $0xa68] ss:$16 sps:$4 sm:$0xff]  }
 0x204   :  { %5566 = vmatpush1.bf16.msra.mxu1 %v8002_v52  ;;  %v5232_v58 = vpop.f32.mrf.mxu0  ;;  %5550 = vmatprep.subr.bf16.mxu0 %v8007_v39  ;;  %v8016_v4 = vld [vmem:[%s11233_s2 + $0x8ac] ss:$16 sps:$4 sm:$0xff]   ;;  %v8056_v42 = vld [vmem:[%s11233_s2 + $0xa48] ss:$16 sps:$4 sm:$0xff]  }
 0x205   :  { %v5273_v27 = vpop.f32.mrf.mxu1  ;;  %5567 = vmatprep.subr.bf16.mxu1 %v8010_v18  ;;  %v10270_v59 = vadd.f32 %v5271_v37, %v5231_v53  ;;  %v5233_v61 = vadd.f32 %v5232_v58, %v10078_v48  ;;  %5597 = vmatprep.mubr.bf16.mxu1 %v8941_v28  ;;  %v8019_v28 = vld [vmem:[%s11233_s2 + $0x70c] ss:$16 sps:$4 sm:$0xff]   ;;  %v8053_v18 = vld [vmem:[%s11233_s2 + $0x9c8] ss:$16 sps:$4 sm:$0xff]  }
 0x206   :  { %v5234_v47 = vpop.f32.mrf.mxu0  ;;  %v8022_v48 = vld [vmem:[%s11233_s2 + $0x88c] ss:$16 sps:$4 sm:$0xff]  }
 0x207   :  { %v5275_v62 = vpop.f32.mrf.mxu1  ;;  %v10274_v0 = vadd.f32 %v5273_v27, %v5233_v61  ;;  %5551 = vmatpush2.bf16.msra.mxu0 %v8005_v54  ;;  %v8055_v52 = vld [vmem:[%s11233_s2 + $0x9cc] ss:$16 sps:$4 sm:$0xff]   ;;  %v8059_v54 = vld [vmem:[%s11233_s2 + $0x9a8] ss:$16 sps:$4 sm:$0xff]  }
 0x208   :  { %5568 = vmatpush1.bf16.msra.mxu1 %v8008_v55  ;;  %v5235_v60 = vpop.f32.mrf.mxu0  ;;  %5552 = vmatprep.subr.bf16.mxu0 %v8013_v21  ;;  %v8058_v39 = vld [vmem:[%s11233_s2 + $0xa4c] ss:$16 sps:$4 sm:$0xff]   ;;  %v8062_v55 = vld [vmem:[%s11233_s2 + $0xa28] ss:$16 sps:$4 sm:$0xff]  }
 0x209   :  { %v5276_v56 = vpop.f32.mrf.mxu1  ;;  %5569 = vmatprep.subr.bf16.mxu1 %v8016_v4  ;;  %v8061_v37 = vld [vmem:[%s11233_s2 + $0x9ac] ss:$16 sps:$4 sm:$0xff]   ;;  %v8065_v21 = vld [vmem:[%s11233_s2 + $0x988] ss:$16 sps:$4 sm:$0xff]  }
 0x20a   :  { %v8064_v53 = vld [vmem:[%s11233_s2 + $0xa2c] ss:$16 sps:$4 sm:$0xff]   ;;  %v8068_v4 = vld [vmem:[%s11233_s2 + $0xa08] ss:$16 sps:$4 sm:$0xff]  }
 0x20b   :  { %5553 = vmatpush2.bf16.msra.mxu0 %v8011_v2  ;;  %v8067_v58 = vld [vmem:[%s11233_s2 + $0x98c] ss:$16 sps:$4 sm:$0xff]   ;;  %v8071_v62 = vld [vmem:[%s11233_s2 + $0x968] ss:$16 sps:$4 sm:$0xff]  }
 0x20c   :  { %5570 = vmatpush1.bf16.msra.mxu1 %v8014_v7  ;;  %5554 = vmatprep.subr.bf16.mxu0 %v8019_v28  ;;  %v8070_v27 = vld [vmem:[%s11233_s2 + $0xa0c] ss:$16 sps:$4 sm:$0xff]   ;;  %v8074_v2 = vld [vmem:[%s11233_s2 + $0xbe8] ss:$16 sps:$4 sm:$0xff]  }
 0x20d   :  { %5571 = vmatprep.subr.bf16.mxu1 %v8022_v48  ;;  %v8073_v61 = vld [vmem:[%s11233_s2 + $0x96c] ss:$16 sps:$4 sm:$0xff]   ;;  %v8077_v56 = vld [vmem:[%s11233_s2 + $0x948] ss:$16 sps:$4 sm:$0xff]  }
 0x20e   :  { %v8076_v47 = vld [vmem:[%s11233_s2 + $0xbec] ss:$16 sps:$4 sm:$0xff]   ;;  %v8080_v28 = vld [vmem:[%s11233_s2 + $0xbc8] ss:$16 sps:$4 sm:$0xff]  }
 0x20f   :  { %5555 = vmatpush2.bf16.msra.mxu0 %v8017_v5  ;;  %v8079_v7 = vld [vmem:[%s11233_s2 + $0x94c] ss:$16 sps:$4 sm:$0xff]  }
 0x210   :  { %5572 = vmatpush1.bf16.msra.mxu1 %v8020_v10  ;;  %5606 = vmatprep.subr.bf16.mxu0 %v8028_v12  ;;  %v8082_v60 = vld [vmem:[%s11233_s2 + $0xbcc] ss:$16 sps:$4 sm:$0xff]   ;;  %v8083_v10 = vld [vmem:[%s11233_s2 + $0x928] ss:$16 sps:$4 sm:$0xff]  }
 0x211   :  { %5573 = vmatprep.subr.bf16.mxu1 %v8025_v11  ;;  %v8085_v48 = vld [vmem:[%s11233_s2 + $0x92c] ss:$16 sps:$4 sm:$0xff]   ;;  %v8086_v11 = vld [vmem:[%s11233_s2 + $0xba8] ss:$16 sps:$4 sm:$0xff]  }
 0x212   :  { %5557 = vmatmul.mubr.bf16.vlgmr.msra.gmra.mxu0 %v8920_v22  ;;  %v8040_v22 = vld [vmem:[%s11233_s2 + $0xaac] ss:$16 sps:$4 sm:$0xff]  }
 0x213   :  { %5607 = vmatpush1.bf16.msra.mxu0 %v8026_v13  ;;  %5638 = vmatprep.mubr.bf16.mxu0 %v8955_v31  ;;  %v8046_v31 = vld [vmem:[%s11233_s2 + $0xa8c] ss:$16 sps:$4 sm:$0xff]   ;;  %v8089_v13 = vld [vmem:[%s11233_s2 + $0x908] ss:$16 sps:$4 sm:$0xff]  }
 0x214   :  { %5574 = vmatpush1.bf16.msra.mxu1 %v8023_v3  ;;  %5608 = vmatprep.subr.bf16.mxu0 %v8034_v45  ;;  %v8088_v5 = vld [vmem:[%s11233_s2 + $0xbac] ss:$16 sps:$4 sm:$0xff]  }
 0x215   :  { %5575 = vmatprep.subr.bf16.mxu1 %v8031_v38  ;;  %v8091_v12 = vld [vmem:[%s11233_s2 + $0x90c] ss:$16 sps:$4 sm:$0xff]   ;;  %v8092_v38 = vld [vmem:[%s11233_s2 + $0xb88] ss:$16 sps:$4 sm:$0xff]  }
 0x216   :  { %v8094_v3 = vld [vmem:[%s11233_s2 + $0xb8c] ss:$16 sps:$4 sm:$0xff]  }
 0x217   :  { %5609 = vmatpush1.bf16.msra.mxu0 %v8032_v26  ;;  %v8097_v45 = vld [vmem:[%s11233_s2 + $0xb6c] ss:$16 sps:$4 sm:$0xff]   ;;  %v8095_v26 = vld [vmem:[%s11233_s2 + $0xb68] ss:$16 sps:$4 sm:$0xff]  }
 0x218   :  { %5576 = vmatpush1.bf16.msra.mxu1 %v8029_v19  ;;  %5610 = vmatprep.subr.bf16.mxu0 %v8040_v22  ;;  %v8100_v19 = vld [vmem:[%s11233_s2 + $0xcec] ss:$16 sps:$4 sm:$0xff]  }
 0x219   :  { %5577 = vmatprep.subr.bf16.mxu1 %v8037_v30  ;;  %v8098_v30 = vld [vmem:[%s11233_s2 + $0xce8] ss:$16 sps:$4 sm:$0xff]   ;;  %v8103_v22 = vld [vmem:[%s11233_s2 + $0xb4c] ss:$16 sps:$4 sm:$0xff]  }
 0x21b   :  { %5611 = vmatpush1.bf16.msra.mxu0 %v8038_v17 }
 0x21c   :  { %5578 = vmatpush1.bf16.msra.mxu1 %v8035_v16  ;;  %5612 = vmatprep.subr.bf16.mxu0 %v8046_v31  ;;  %v8106_v16 = vld [vmem:[%s11233_s2 + $0xccc] ss:$16 sps:$4 sm:$0xff]  }
 0x21d   :  { %5579 = vmatprep.subr.bf16.mxu1 %v8043_v34 }
 0x21f   :  { %5613 = vmatpush1.bf16.msra.mxu0 %v8044_v36  ;;  %v8104_v36 = vld [vmem:[%s11233_s2 + $0xcc8] ss:$16 sps:$4 sm:$0xff]  }
 0x220   :  { %5580 = vmatpush1.bf16.msra.mxu1 %v8041_v35  ;;  %5614 = vmatprep.subr.bf16.mxu0 %v8052_v9  ;;  %v8101_v35 = vld [vmem:[%s11233_s2 + $0xb48] ss:$16 sps:$4 sm:$0xff]  }
 0x221   :  { %5581 = vmatprep.subr.bf16.mxu1 %v8049_v40 }
 0x223   :  { %5615 = vmatpush1.bf16.msra.mxu0 %v8050_v51 }
 0x224   :  { %5582 = vmatpush2.bf16.msra.mxu1 %v8047_v29  ;;  %5616 = vmatprep.subr.bf16.mxu0 %v8058_v39 }
 0x225   :  { %5583 = vmatprep.subr.bf16.mxu1 %v8055_v52 }
 0x227   :  { %5617 = vmatpush1.bf16.msra.mxu0 %v8056_v42  ;;  %v8107_v42 = vld [vmem:[%s11233_s2 + $0xb28] ss:$16 sps:$4 sm:$0xff]  }
 0x228   :  { %5584 = vmatpush2.bf16.msra.mxu1 %v8053_v18  ;;  %5618 = vmatprep.subr.bf16.mxu0 %v8064_v53 }
 0x229   :  { %5585 = vmatprep.subr.bf16.mxu1 %v8061_v37  ;;  %v8110_v37 = vld [vmem:[%s11233_s2 + $0xca8] ss:$16 sps:$4 sm:$0xff]  }
 0x22b   :  { %5619 = vmatpush1.bf16.msra.mxu0 %v8062_v55  ;;  %v8113_v55 = vld [vmem:[%s11233_s2 + $0xb08] ss:$16 sps:$4 sm:$0xff]  }
 0x22c   :  { %5586 = vmatpush2.bf16.msra.mxu1 %v8059_v54  ;;  %5620 = vmatprep.subr.bf16.mxu0 %v8070_v27  ;;  %v8121_v27 = vld [vmem:[%s11233_s2 + $0xc6c] ss:$16 sps:$4 sm:$0xff]  }
 0x22d   :  { %5587 = vmatprep.subr.bf16.mxu1 %v8067_v58  ;;  %v8116_v58 = vld [vmem:[%s11233_s2 + $0xc88] ss:$16 sps:$4 sm:$0xff]  }
 0x22f   :  { %5621 = vmatpush1.bf16.msra.mxu0 %v8068_v4  ;;  %v8119_v4 = vld [vmem:[%s11233_s2 + $0xc68] ss:$16 sps:$4 sm:$0xff]  }
 0x230   :  { %5588 = vmatpush2.bf16.msra.mxu1 %v8065_v21  ;;  %5622 = vmatprep.subr.bf16.mxu0 %v8076_v47  ;;  %v8124_v21 = vld [vmem:[%s11233_s2 + $0xeec] ss:$16 sps:$4 sm:$0xff]  }
 0x231   :  { %5589 = vmatprep.subr.bf16.mxu1 %v8073_v61  ;;  %v8122_v61 = vld [vmem:[%s11233_s2 + $0xee8] ss:$16 sps:$4 sm:$0xff]   ;;  %v8127_v47 = vld [vmem:[%s11233_s2 + $0xc4c] ss:$16 sps:$4 sm:$0xff]  }
 0x233   :  { %5623 = vmatpush2.bf16.msra.mxu0 %v8074_v2 }
 0x234   :  { %5590 = vmatpush2.bf16.msra.mxu1 %v8071_v62  ;;  %5624 = vmatprep.subr.bf16.mxu0 %v8082_v60  ;;  %v8130_v62 = vld [vmem:[%s11233_s2 + $0xecc] ss:$16 sps:$4 sm:$0xff]   ;;  %v8125_v60 = vld [vmem:[%s11233_s2 + $0xc48] ss:$16 sps:$4 sm:$0xff]  }
 0x235   :  { %5591 = vmatprep.subr.bf16.mxu1 %v8079_v7 }
 0x237   :  { %5625 = vmatpush2.bf16.msra.mxu0 %v8080_v28 }
 0x238   :  { %5592 = vmatpush2.bf16.msra.mxu1 %v8077_v56  ;;  %5626 = vmatprep.subr.bf16.mxu0 %v8088_v5  ;;  %v8128_v56 = vld [vmem:[%s11233_s2 + $0xec8] ss:$16 sps:$4 sm:$0xff]  }
 0x239   :  { %5593 = vmatprep.subr.bf16.mxu1 %v8085_v48  ;;  %v8133_v48 = vld [vmem:[%s11233_s2 + $0xc2c] ss:$16 sps:$4 sm:$0xff]  }
 0x23b   :  { %5627 = vmatpush2.bf16.msra.mxu0 %v8086_v11  ;;  %v8131_v11 = vld [vmem:[%s11233_s2 + $0xc28] ss:$16 sps:$4 sm:$0xff]  }
 0x23c   :  { %5594 = vmatpush2.bf16.msra.mxu1 %v8083_v10  ;;  %5628 = vmatprep.subr.bf16.mxu0 %v8094_v3 }
 0x23d   :  { %5595 = vmatprep.subr.bf16.mxu1 %v8091_v12  ;;  %v8134_v12 = vld [vmem:[%s11233_s2 + $0xea8] ss:$16 sps:$4 sm:$0xff]  }
 0x23f   :  { %5629 = vmatpush2.bf16.msra.mxu0 %v8092_v38  ;;  %v8137_v38 = vld [vmem:[%s11233_s2 + $0xc08] ss:$16 sps:$4 sm:$0xff]  }
 0x240   :  { %5596 = vmatpush2.bf16.msra.mxu1 %v8089_v13  ;;  %5630 = vmatprep.subr.bf16.mxu0 %v8097_v45  ;;  %v8139_v13 = vld [vmem:[%s11233_s2 + $0xc0c] ss:$16 sps:$4 sm:$0xff]   ;;  %v8140_v45 = vld [vmem:[%s11233_s2 + $0xe88] ss:$16 sps:$4 sm:$0xff]  }
 0x241   :  { %5647 = vmatprep.subr.bf16.mxu1 %v8100_v19  ;;  %v8145_v19 = vld [vmem:[%s11233_s2 + $0xdec] ss:$16 sps:$4 sm:$0xff]  }
 0x242   :  { %v5312_v17 = vpop.f32.mrf.mxu0 }
 0x243   :  { %v5353_v34 = vpop.f32.mrf.mxu1  ;;  %5598 = vmatmul.mubr.bf16.vlgmr.msra.gmra.mxu1 %v9143_v43  ;;  %v5313_v31 = vadd.f32 %v5312_v17, %v10270_v59  ;;  %5631 = vmatpush2.bf16.msra.mxu0 %v8095_v26  ;;  %v8109_v43 = vld [vmem:[%s11233_s2 + $0xb2c] ss:$16 sps:$4 sm:$0xff]  }
 0x244   :  { %5648 = vmatpush1.bf16.msra.mxu1 %v8098_v30  ;;  %v5314_v40 = vpop.f32.mrf.mxu0  ;;  %5632 = vmatprep.subr.bf16.mxu0 %v8103_v22  ;;  %v8112_v59 = vld [vmem:[%s11233_s2 + $0xcac] ss:$16 sps:$4 sm:$0xff]   ;;  %v8143_v30 = vld [vmem:[%s11233_s2 + $0xde8] ss:$16 sps:$4 sm:$0xff]  }
 0x245   :  { %v5355_v9 = vpop.f32.mrf.mxu1  ;;  %5649 = vmatprep.subr.bf16.mxu1 %v8106_v16  ;;  %v5354_v29 = vadd.f32 %v5353_v34, %v5313_v31  ;;  %v5315_v51 = vadd.f32 %v5314_v40, %v10274_v0  ;;  %5679 = vmatprep.mubr.bf16.mxu1 %v9168_v49  ;;  %v8115_v49 = vld [vmem:[%s11233_s2 + $0xb0c] ss:$16 sps:$4 sm:$0xff]   ;;  %v8146_v22 = vld [vmem:[%s11233_s2 + $0xe68] ss:$16 sps:$4 sm:$0xff]  }
 0x246   :  { %v5316_v52 = vpop.f32.mrf.mxu0  ;;  %v8118_v0 = vld [vmem:[%s11233_s2 + $0xc8c] ss:$16 sps:$4 sm:$0xff]   ;;  %v8149_v34 = vld [vmem:[%s11233_s2 + $0xdc8] ss:$16 sps:$4 sm:$0xff]  }
 0x247   :  { %v5357_v39 = vpop.f32.mrf.mxu1  ;;  %v5356_v18 = vadd.f32 %v5355_v9, %v5315_v51  ;;  %5633 = vmatpush2.bf16.msra.mxu0 %v8101_v35  ;;  %v8148_v26 = vld [vmem:[%s11233_s2 + $0xe6c] ss:$16 sps:$4 sm:$0xff]   ;;  %v8152_v31 = vld [vmem:[%s11233_s2 + $0xe48] ss:$16 sps:$4 sm:$0xff]  }
 0x248   :  { %5650 = vmatpush1.bf16.msra.mxu1 %v8104_v36  ;;  %v5317_v53 = vpop.f32.mrf.mxu0  ;;  %5634 = vmatprep.subr.bf16.mxu0 %v8109_v43  ;;  %v8151_v16 = vld [vmem:[%s11233_s2 + $0xdcc] ss:$16 sps:$4 sm:$0xff]   ;;  %v8155_v40 = vld [vmem:[%s11233_s2 + $0xda8] ss:$16 sps:$4 sm:$0xff]  }
 0x249   :  { %v5358_v54 = vpop.f32.mrf.mxu1  ;;  %5651 = vmatprep.subr.bf16.mxu1 %v8112_v59  ;;  %v8154_v17 = vld [vmem:[%s11233_s2 + $0xe4c] ss:$16 sps:$4 sm:$0xff]   ;;  %v8158_v9 = vld [vmem:[%s11233_s2 + $0xe28] ss:$16 sps:$4 sm:$0xff]  }
 0x24a   :  { %v8157_v35 = vld [vmem:[%s11233_s2 + $0xdac] ss:$16 sps:$4 sm:$0xff]   ;;  %v8164_v51 = vld [vmem:[%s11233_s2 + $0xe08] ss:$16 sps:$4 sm:$0xff]  }
 0x24b   :  { %5635 = vmatpush2.bf16.msra.mxu0 %v8107_v42  ;;  %v8160_v36 = vld [vmem:[%s11233_s2 + $0xe2c] ss:$16 sps:$4 sm:$0xff]   ;;  %v8170_v42 = vld [vmem:[%s11233_s2 + $0xfe8] ss:$16 sps:$4 sm:$0xff]  }
 0x24c   :  { %5652 = vmatpush1.bf16.msra.mxu1 %v8110_v37  ;;  %5636 = vmatprep.subr.bf16.mxu0 %v8115_v49  ;;  %v8163_v43 = vld [vmem:[%s11233_s2 + $0xd8c] ss:$16 sps:$4 sm:$0xff]   ;;  %v8173_v54 = vld [vmem:[%s11233_s2 + $0xd48] ss:$16 sps:$4 sm:$0xff]  }
 0x24d   :  { %5653 = vmatprep.subr.bf16.mxu1 %v8118_v0  ;;  %v8166_v59 = vld [vmem:[%s11233_s2 + $0xe0c] ss:$16 sps:$4 sm:$0xff]   ;;  %v8176_v49 = vld [vmem:[%s11233_s2 + $0xfc8] ss:$16 sps:$4 sm:$0xff]  }
 0x24e   :  { %v8169_v52 = vld [vmem:[%s11233_s2 + $0xd6c] ss:$16 sps:$4 sm:$0xff]  }
 0x24f   :  { %5637 = vmatpush2.bf16.msra.mxu0 %v8113_v55  ;;  %v8172_v39 = vld [vmem:[%s11233_s2 + $0xfec] ss:$16 sps:$4 sm:$0xff]  }
 0x250   :  { %5654 = vmatpush1.bf16.msra.mxu1 %v8116_v58  ;;  %5688 = vmatprep.subr.bf16.mxu0 %v8124_v21  ;;  %v8175_v37 = vld [vmem:[%s11233_s2 + $0xd4c] ss:$16 sps:$4 sm:$0xff]   ;;  %v8179_v58 = vld [vmem:[%s11233_s2 + $0xd28] ss:$16 sps:$4 sm:$0xff]  }
 0x251   :  { %5655 = vmatprep.subr.bf16.mxu1 %v8121_v27  ;;  %v8178_v53 = vld [vmem:[%s11233_s2 + $0xfcc] ss:$16 sps:$4 sm:$0xff]   ;;  %v8182_v27 = vld [vmem:[%s11233_s2 + $0xfa8] ss:$16 sps:$4 sm:$0xff]  }
 0x252   :  { %v5394_v2 = vpop.f32.mrf.mxu0  ;;  %5639 = vmatmul.mubr.bf16.vlgmr.msra.gmra.mxu0 %v9147_v44  ;;  %v8136_v44 = vld [vmem:[%s11233_s2 + $0xeac] ss:$16 sps:$4 sm:$0xff]  }
 0x253   :  { %v10511_v7 = vadd.f32 %v5394_v2, %v5354_v29  ;;  %5689 = vmatpush1.bf16.msra.mxu0 %v8122_v61  ;;  %5720 = vmatprep.mubr.bf16.mxu0 %v9172_v50  ;;  %v8142_v50 = vld [vmem:[%s11233_s2 + $0xe8c] ss:$16 sps:$4 sm:$0xff]   ;;  %v8161_v29 = vld [vmem:[%s11233_s2 + $0xd88] ss:$16 sps:$4 sm:$0xff]  }
 0x254   :  { %5656 = vmatpush1.bf16.msra.mxu1 %v8119_v4  ;;  %v5396_v28 = vpop.f32.mrf.mxu0  ;;  %5690 = vmatprep.subr.bf16.mxu0 %v8130_v62  ;;  %v8181_v0 = vld [vmem:[%s11233_s2 + $0xd2c] ss:$16 sps:$4 sm:$0xff]   ;;  %v8185_v61 = vld [vmem:[%s11233_s2 + $0xd08] ss:$16 sps:$4 sm:$0xff]  }
 0x255   :  { %5657 = vmatprep.subr.bf16.mxu1 %v8127_v47  ;;  %v10525_v5 = vadd.f32 %v5396_v28, %v5356_v18  ;;  %v8167_v18 = vld [vmem:[%s11233_s2 + $0xd68] ss:$16 sps:$4 sm:$0xff]   ;;  %v8184_v55 = vld [vmem:[%s11233_s2 + $0xfac] ss:$16 sps:$4 sm:$0xff]  }
 0x256   :  { %v5398_v10 = vpop.f32.mrf.mxu0  ;;  %v8187_v21 = vld [vmem:[%s11233_s2 + $0xd0c] ss:$16 sps:$4 sm:$0xff]   ;;  %v8188_v47 = vld [vmem:[%s11233_s2 + $0xf88] ss:$16 sps:$4 sm:$0xff]  }
 0x257   :  { %5691 = vmatpush1.bf16.msra.mxu0 %v8128_v56  ;;  %v8190_v4 = vld [vmem:[%s11233_s2 + $0xf8c] ss:$16 sps:$4 sm:$0xff]   ;;  %v8194_v56 = vld [vmem:[%s11233_s2 + $0x10e8] ss:$16 sps:$4 sm:$0xff]  }
 0x258   :  { %5658 = vmatpush1.bf16.msra.mxu1 %v8125_v60  ;;  %v5399_v3 = vpop.f32.mrf.mxu0  ;;  %5692 = vmatprep.subr.bf16.mxu0 %v8136_v44  ;;  %v8193_v62 = vld [vmem:[%s11233_s2 + $0xf6c] ss:$16 sps:$4 sm:$0xff]   ;;  %v8191_v60 = vld [vmem:[%s11233_s2 + $0xf68] ss:$16 sps:$4 sm:$0xff]  }
 0x259   :  { %5659 = vmatprep.subr.bf16.mxu1 %v8133_v48  ;;  %v8196_v2 = vld [vmem:[%s11233_s2 + $0x10ec] ss:$16 sps:$4 sm:$0xff]   ;;  %v8197_v10 = vld [vmem:[%s11233_s2 + $0xf48] ss:$16 sps:$4 sm:$0xff]  }
 0x25a   :  { %v8199_v28 = vld [vmem:[%s11233_s2 + $0xf4c] ss:$16 sps:$4 sm:$0xff]  }
 0x25b   :  { %5693 = vmatpush1.bf16.msra.mxu0 %v8134_v12  ;;  %v8202_v48 = vld [vmem:[%s11233_s2 + $0x10cc] ss:$16 sps:$4 sm:$0xff]  }
 0x25c   :  { %5660 = vmatpush1.bf16.msra.mxu1 %v8131_v11  ;;  %5694 = vmatprep.subr.bf16.mxu0 %v8142_v50  ;;  %v8200_v11 = vld [vmem:[%s11233_s2 + $0x10c8] ss:$16 sps:$4 sm:$0xff]   ;;  %v8205_v3 = vld [vmem:[%s11233_s2 + $0xf2c] ss:$16 sps:$4 sm:$0xff]  }
 0x25d   :  { %5661 = vmatprep.subr.bf16.mxu1 %v8139_v13  ;;  %v843_v13 = vsub.s32 2, %v9331_v57 }
 0x25f   :  { %5695 = vmatpush1.bf16.msra.mxu0 %v8140_v45  ;;  %v8203_v45 = vld [vmem:[%s11233_s2 + $0xf28] ss:$16 sps:$4 sm:$0xff]  }
 0x260   :  { %5662 = vmatpush1.bf16.msra.mxu1 %v8137_v38  ;;  %5696 = vmatprep.subr.bf16.mxu0 %v8148_v26  ;;  %v847_v38 = vsub.s32 3, %v9331_v57 }
 0x261   :  { %5663 = vmatprep.subr.bf16.mxu1 %v8145_v19  ;;  %v8206_v19 = vld [vmem:[%s11233_s2 + $0x10a8] ss:$16 sps:$4 sm:$0xff]  }
 0x263   :  { %5697 = vmatpush1.bf16.msra.mxu0 %v8146_v22  ;;  %v8439_v22 = vld [vmem:[%s11236_s3] sm:$0xf] }
 0x264   :  { %5664 = vmatpush2.bf16.msra.mxu1 %v8143_v30  ;;  %5698 = vmatprep.subr.bf16.mxu0 %v8154_v17  ;;  %v8214_v30 = vld [vmem:[%s11233_s2 + $0x108c] ss:$16 sps:$4 sm:$0xff]   ;;  %v848_v17 = vrot.slane %v8439_v22, %v847_v38 }
 0x265   :  { %5665 = vmatprep.subr.bf16.mxu1 %v8151_v16  ;;  %v844_v16 = vrot.slane %v8439_v22, %v843_v13  ;;  %v8266_v22 = vld [vmem:[%s11233_s2 + $0x13e8] ss:$16 sps:$4 sm:$0xff]  }
 0x267   :  { %5699 = vmatpush1.bf16.msra.mxu0 %v8152_v31  ;;  %v8212_v31 = vld [vmem:[%s11233_s2 + $0x1088] ss:$16 sps:$4 sm:$0xff]  }
 0x268   :  { %5666 = vmatpush2.bf16.msra.mxu1 %v8149_v34  ;;  %5700 = vmatprep.subr.bf16.mxu0 %v8160_v36  ;;  %v8209_v34 = vld [vmem:[%s11233_s2 + $0xf08] ss:$16 sps:$4 sm:$0xff]   ;;  %v8220_v36 = vld [vmem:[%s11233_s2 + $0x12ec] ss:$16 sps:$4 sm:$0xff]  }
 0x269   :  { %5667 = vmatprep.subr.bf16.mxu1 %v8157_v35  ;;  %v8217_v35 = vld [vmem:[%s11233_s2 + $0x106c] ss:$16 sps:$4 sm:$0xff]  }
 0x26b   :  { %5701 = vmatpush1.bf16.msra.mxu0 %v8158_v9  ;;  %v856_v9 = vmul.f32 %v848_v17, %v9364_v6  ;;  %v8274_v17 = vld [vmem:[%s11233_s2 + $0x13cc] ss:$16 sps:$4 sm:$0xff]  }
 0x26c   :  { %5668 = vmatpush2.bf16.msra.mxu1 %v8155_v40  ;;  %5702 = vmatprep.subr.bf16.mxu0 %v8166_v59  ;;  %v855_v40 = vmul.f32 %v844_v16, %v9364_v6  ;;  %v8218_v59 = vld [vmem:[%s11233_s2 + $0x12e8] ss:$16 sps:$4 sm:$0xff]   ;;  %v8226_v6 = vld [vmem:[%s11233_s2 + $0x12cc] ss:$16 sps:$4 sm:$0xff]  }
 0x26d   :  { %5669 = vmatprep.subr.bf16.mxu1 %v8163_v43  ;;  %v8215_v43 = vld [vmem:[%s11233_s2 + $0x1068] ss:$16 sps:$4 sm:$0xff]   ;;  %v8271_v16 = vld [vmem:[%s11233_s2 + $0x114c] ss:$16 sps:$4 sm:$0xff]  }
 0x26f   :  { %5703 = vmatpush1.bf16.msra.mxu0 %v8164_v51 }
 0x270   :  { %5670 = vmatpush2.bf16.msra.mxu1 %v8161_v29  ;;  %5704 = vmatprep.subr.bf16.mxu0 %v8172_v39  ;;  %v8223_v29 = vld [vmem:[%s11233_s2 + $0x104c] ss:$16 sps:$4 sm:$0xff]   ;;  %v8224_v39 = vld [vmem:[%s11233_s2 + $0x12c8] ss:$16 sps:$4 sm:$0xff]  }
 0x271   :  { %5671 = vmatprep.subr.bf16.mxu1 %v8169_v52  ;;  %v8221_v52 = vld [vmem:[%s11233_s2 + $0x1048] ss:$16 sps:$4 sm:$0xff]  }
 0x273   :  { %5705 = vmatpush2.bf16.msra.mxu0 %v8170_v42  ;;  %v8229_v42 = vld [vmem:[%s11233_s2 + $0x102c] ss:$16 sps:$4 sm:$0xff]  }
 0x274   :  { %5672 = vmatpush2.bf16.msra.mxu1 %v8167_v18  ;;  %5706 = vmatprep.subr.bf16.mxu0 %v8178_v53 }
 0x275   :  { %5673 = vmatprep.subr.bf16.mxu1 %v8175_v37 }
 0x277   :  { %5707 = vmatpush2.bf16.msra.mxu0 %v8176_v49  ;;  %v8232_v49 = vld [vmem:[%s11233_s2 + $0x12ac] ss:$16 sps:$4 sm:$0xff]  }
 0x278   :  { %5674 = vmatpush2.bf16.msra.mxu1 %v8173_v54  ;;  %5708 = vmatprep.subr.bf16.mxu0 %v8184_v55  ;;  %v8230_v55 = vld [vmem:[%s11233_s2 + $0x12a8] ss:$16 sps:$4 sm:$0xff]  }
 0x279   :  { %5675 = vmatprep.subr.bf16.mxu1 %v8181_v0 }
 0x27b   :  { %5709 = vmatpush2.bf16.msra.mxu0 %v8182_v27 }
 0x27c   :  { %5676 = vmatpush2.bf16.msra.mxu1 %v8179_v58  ;;  %5710 = vmatprep.subr.bf16.mxu0 %v8190_v4  ;;  %v8238_v4 = vld [vmem:[%s11233_s2 + $0x128c] ss:$16 sps:$4 sm:$0xff]  }
 0x27d   :  { %5677 = vmatprep.subr.bf16.mxu1 %v8187_v21  ;;  %v8235_v21 = vld [vmem:[%s11233_s2 + $0x100c] ss:$16 sps:$4 sm:$0xff]  }
 0x27f   :  { %5711 = vmatpush2.bf16.msra.mxu0 %v8188_v47  ;;  %v8241_v47 = vld [vmem:[%s11233_s2 + $0x11ec] ss:$16 sps:$4 sm:$0xff]  }
 0x280   :  { %5678 = vmatpush2.bf16.msra.mxu1 %v8185_v61  ;;  %5712 = vmatprep.subr.bf16.mxu0 %v8193_v62  ;;  %v8233_v61 = vld [vmem:[%s11233_s2 + $0x1008] ss:$16 sps:$4 sm:$0xff]   ;;  %v8244_v62 = vld [vmem:[%s11233_s2 + $0x126c] ss:$16 sps:$4 sm:$0xff]  }
 0x281   :  { %5729 = vmatprep.subr.bf16.mxu1 %v8196_v2  ;;  %v8239_v2 = vld [vmem:[%s11233_s2 + $0x11e8] ss:$16 sps:$4 sm:$0xff]  }
 0x283   :  { %v5435_v44 = vpop.f32.mrf.mxu1  ;;  %5680 = vmatmul.mubr.bf16.vlgmr.msra.gmra.mxu1 %v9379_v14  ;;  %5713 = vmatpush2.bf16.msra.mxu0 %v8191_v60  ;;  %v8208_v14 = vld [vmem:[%s11233_s2 + $0x10ac] ss:$16 sps:$4 sm:$0xff]   ;;  %v8242_v60 = vld [vmem:[%s11233_s2 + $0x1268] ss:$16 sps:$4 sm:$0xff]  }
 0x284   :  { %5730 = vmatpush1.bf16.msra.mxu1 %v8194_v56  ;;  %5714 = vmatprep.subr.bf16.mxu0 %v8199_v28  ;;  %v5436_v51 = vadd.f32 %v5435_v44, %v855_v40  ;;  %v8247_v56 = vld [vmem:[%s11233_s2 + $0x11cc] ss:$16 sps:$4 sm:$0xff]   ;;  %v8248_v44 = vld [vmem:[%s11233_s2 + $0x1248] ss:$16 sps:$4 sm:$0xff]  }
 0x285   :  { %v5437_v12 = vpop.f32.mrf.mxu1  ;;  %5731 = vmatprep.subr.bf16.mxu1 %v8202_v48  ;;  %5761 = vmatprep.mubr.bf16.mxu1 %v9405_v20  ;;  %v8211_v20 = vld [vmem:[%s11233_s2 + $0xf0c] ss:$16 sps:$4 sm:$0xff]   ;;  %v8245_v48 = vld [vmem:[%s11233_s2 + $0x11c8] ss:$16 sps:$4 sm:$0xff]  }
 0x286   :  { %v5438_v37 = vadd.f32 %v5437_v12, %v856_v9  ;;  %v8250_v28 = vld [vmem:[%s11233_s2 + $0x124c] ss:$16 sps:$4 sm:$0xff]   ;;  %v8251_v12 = vld [vmem:[%s11233_s2 + $0x11a8] ss:$16 sps:$4 sm:$0xff]  }
 0x287   :  { %v5439_v50 = vpop.f32.mrf.mxu1  ;;  %5715 = vmatpush2.bf16.msra.mxu0 %v8197_v10  ;;  %v8253_v10 = vld [vmem:[%s11233_s2 + $0x11ac] ss:$16 sps:$4 sm:$0xff]   ;;  %v8275_v40 = vld [vmem:[%s11233_s2 + $0x1128] ss:$16 sps:$4 sm:$0xff]  }
 0x288   :  { %5732 = vmatpush1.bf16.msra.mxu1 %v8200_v11  ;;  %5716 = vmatprep.subr.bf16.mxu0 %v8205_v3  ;;  %v8256_v11 = vld [vmem:[%s11233_s2 + $0x122c] ss:$16 sps:$4 sm:$0xff]   ;;  %v8254_v3 = vld [vmem:[%s11233_s2 + $0x1228] ss:$16 sps:$4 sm:$0xff]  }
 0x289   :  { %v5440_v26 = vpop.f32.mrf.mxu1  ;;  %5733 = vmatprep.subr.bf16.mxu1 %v8208_v14  ;;  %v8259_v14 = vld [vmem:[%s11233_s2 + $0x118c] ss:$16 sps:$4 sm:$0xff]   ;;  %v8278_v9 = vld [vmem:[%s11233_s2 + $0x13a8] ss:$16 sps:$4 sm:$0xff]  }
 0x28a   :  { %v8262_v50 = vld [vmem:[%s11233_s2 + $0x120c] ss:$16 sps:$4 sm:$0xff]  }
 0x28b   :  { %5717 = vmatpush2.bf16.msra.mxu0 %v8203_v45  ;;  %v8257_v45 = vld [vmem:[%s11233_s2 + $0x1188] ss:$16 sps:$4 sm:$0xff]   ;;  %v8265_v26 = vld [vmem:[%s11233_s2 + $0x116c] ss:$16 sps:$4 sm:$0xff]  }
 0x28c   :  { %5734 = vmatpush1.bf16.msra.mxu1 %v8206_v19  ;;  %5718 = vmatprep.subr.bf16.mxu0 %v8211_v20  ;;  %v8260_v19 = vld [vmem:[%s11233_s2 + $0x1208] ss:$16 sps:$4 sm:$0xff]   ;;  %v8268_v20 = vld [vmem:[%s11233_s2 + $0x13ec] ss:$16 sps:$4 sm:$0xff]  }
 0x28d   :  { %5735 = vmatprep.subr.bf16.mxu1 %v8214_v30  ;;  %v8263_v30 = vld [vmem:[%s11233_s2 + $0x1168] ss:$16 sps:$4 sm:$0xff]  }
 0x28f   :  { %5719 = vmatpush2.bf16.msra.mxu0 %v8209_v34  ;;  %v8269_v34 = vld [vmem:[%s11233_s2 + $0x1148] ss:$16 sps:$4 sm:$0xff]  }
 0x290   :  { %5736 = vmatpush1.bf16.msra.mxu1 %v8212_v31  ;;  %5770 = vmatprep.subr.bf16.mxu0 %v8220_v36  ;;  %v8272_v31 = vld [vmem:[%s11233_s2 + $0x13c8] ss:$16 sps:$4 sm:$0xff]   ;;  %v8280_v36 = vld [vmem:[%s11233_s2 + $0x13ac] ss:$16 sps:$4 sm:$0xff]  }
 0x291   :  { %5737 = vmatprep.subr.bf16.mxu1 %v8217_v35  ;;  %v8277_v35 = vld [vmem:[%s11233_s2 + $0x112c] ss:$16 sps:$4 sm:$0xff]  }
 0x292   :  { %v5476_v18 = vpop.f32.mrf.mxu0  ;;  %5721 = vmatmul.mubr.bf16.vlgmr.msra.gmra.mxu0 %v9383_v15  ;;  %v8227_v15 = vld [vmem:[%s11233_s2 + $0x1028] ss:$16 sps:$4 sm:$0xff]  }
 0x293   :  { %v10731_v53 = vadd.f32 %v5476_v18, %v5436_v51  ;;  %5771 = vmatpush1.bf16.msra.mxu0 %v8218_v59  ;;  %5802 = vmatprep.mubr.bf16.mxu0 %v9409_v23  ;;  %v8236_v23 = vld [vmem:[%s11233_s2 + $0x1288] ss:$16 sps:$4 sm:$0xff]   ;;  %v8286_v59 = vld [vmem:[%s11233_s2 + $0x138c] ss:$16 sps:$4 sm:$0xff]  }
 0x294   :  { %5738 = vmatpush1.bf16.msra.mxu1 %v8215_v43  ;;  %v5478_v54 = vpop.f32.mrf.mxu0  ;;  %5772 = vmatprep.subr.bf16.mxu0 %v8226_v6  ;;  %v8283_v43 = vld [vmem:[%s11233_s2 + $0x110c] ss:$16 sps:$4 sm:$0xff]   ;;  %v8284_v6 = vld [vmem:[%s11233_s2 + $0x1388] ss:$16 sps:$4 sm:$0xff]  }
 0x295   :  { %5739 = vmatprep.subr.bf16.mxu1 %v8223_v29  ;;  %v10736_v0 = vadd.f32 %v5478_v54, %v5438_v37  ;;  %v8281_v29 = vld [vmem:[%s11233_s2 + $0x1108] ss:$16 sps:$4 sm:$0xff]   ;;  %v8289_v51 = vld [vmem:[%s11233_s2 + $0x136c] ss:$16 sps:$4 sm:$0xff]  }
 0x296   :  { %v5480_v58 = vpop.f32.mrf.mxu0  ;;  %v8290_v18 = vld [vmem:[%s11233_s2 + $0x14e8] ss:$16 sps:$4 sm:$0xff]   ;;  %v8298_v37 = vld [vmem:[%s11233_s2 + $0x14cc] ss:$16 sps:$4 sm:$0xff]  }
 0x297   :  { %5773 = vmatpush1.bf16.msra.mxu0 %v8224_v39  ;;  %v8287_v39 = vld [vmem:[%s11233_s2 + $0x1368] ss:$16 sps:$4 sm:$0xff]  }
 0x298   :  { %5740 = vmatpush1.bf16.msra.mxu1 %v8221_v52  ;;  %v5481_v27 = vpop.f32.mrf.mxu0  ;;  %5774 = vmatprep.subr.bf16.mxu0 %v8232_v49  ;;  %v8292_v52 = vld [vmem:[%s11233_s2 + $0x14ec] ss:$16 sps:$4 sm:$0xff]  }
 0x299   :  { %5741 = vmatprep.subr.bf16.mxu1 %v8229_v42  ;;  %v8295_v42 = vld [vmem:[%s11233_s2 + $0x134c] ss:$16 sps:$4 sm:$0xff]  }
 0x29a   :  { %v8301_v27 = vld [vmem:[%s11233_s2 + $0x132c] ss:$16 sps:$4 sm:$0xff]  }
 0x29b   :  { %5775 = vmatpush1.bf16.msra.mxu0 %v8230_v55  ;;  %v8296_v55 = vld [vmem:[%s11233_s2 + $0x14c8] ss:$16 sps:$4 sm:$0xff]  }
 0x29c   :  { %5742 = vmatpush1.bf16.msra.mxu1 %v8227_v15  ;;  %5776 = vmatprep.subr.bf16.mxu0 %v8238_v4  ;;  %v8293_v15 = vld [vmem:[%s11233_s2 + $0x1348] ss:$16 sps:$4 sm:$0xff]  }
 0x29d   :  { %5743 = vmatprep.subr.bf16.mxu1 %v8235_v21  ;;  %v8299_v4 = vld [vmem:[%s11233_s2 + $0x1328] ss:$16 sps:$4 sm:$0xff]  }
 0x29f   :  { %5777 = vmatpush1.bf16.msra.mxu0 %v8236_v23 }
 0x2a0   :  { %5744 = vmatpush1.bf16.msra.mxu1 %v8233_v61  ;;  %5778 = vmatprep.subr.bf16.mxu0 %v8244_v62  ;;  %v8302_v61 = vld [vmem:[%s11233_s2 + $0x14a8] ss:$16 sps:$4 sm:$0xff]  }
 0x2a1   :  { %5745 = vmatprep.subr.bf16.mxu1 %v8241_v47  ;;  %v8305_v47 = vld [vmem:[%s11233_s2 + $0x1308] ss:$16 sps:$4 sm:$0xff]  }
 0x2a2   :  { %v8308_v62 = vld [vmem:[%s11233_s2 + $0x1488] ss:$16 sps:$4 sm:$0xff]  }
 0x2a3   :  { %5779 = vmatpush1.bf16.msra.mxu0 %v8242_v60  ;;  %v8316_v60 = vld [vmem:[%s11233_s2 + $0x16ec] ss:$16 sps:$4 sm:$0xff]  }
 0x2a4   :  { %5746 = vmatpush2.bf16.msra.mxu1 %v8239_v2  ;;  %5780 = vmatprep.subr.bf16.mxu0 %v8250_v28  ;;  %v8313_v2 = vld [vmem:[%s11233_s2 + $0x146c] ss:$16 sps:$4 sm:$0xff]   ;;  %v8314_v28 = vld [vmem:[%s11233_s2 + $0x16e8] ss:$16 sps:$4 sm:$0xff]  }
 0x2a5   :  { %5747 = vmatprep.subr.bf16.mxu1 %v8247_v56  ;;  %v8311_v56 = vld [vmem:[%s11233_s2 + $0x1468] ss:$16 sps:$4 sm:$0xff]  }
 0x2a7   :  { %5781 = vmatpush1.bf16.msra.mxu0 %v8248_v44  ;;  %v8322_v44 = vld [vmem:[%s11233_s2 + $0x16cc] ss:$16 sps:$4 sm:$0xff]  }
 0x2a8   :  { %5748 = vmatpush2.bf16.msra.mxu1 %v8245_v48  ;;  %5782 = vmatprep.subr.bf16.mxu0 %v8256_v11  ;;  %v8319_v48 = vld [vmem:[%s11233_s2 + $0x144c] ss:$16 sps:$4 sm:$0xff]  }
 0x2a9   :  { %5749 = vmatprep.subr.bf16.mxu1 %v8253_v10 }
 0x2ab   :  { %5783 = vmatpush1.bf16.msra.mxu0 %v8254_v3  ;;  %v8320_v3 = vld [vmem:[%s11233_s2 + $0x16c8] ss:$16 sps:$4 sm:$0xff]  }
 0x2ac   :  { %5750 = vmatpush2.bf16.msra.mxu1 %v8251_v12  ;;  %5784 = vmatprep.subr.bf16.mxu0 %v8262_v50  ;;  %v8317_v12 = vld [vmem:[%s11233_s2 + $0x1448] ss:$16 sps:$4 sm:$0xff]   ;;  %v8325_v50 = vld [vmem:[%s11233_s2 + $0x142c] ss:$16 sps:$4 sm:$0xff]  }
 0x2ad   :  { %5751 = vmatprep.subr.bf16.mxu1 %v8259_v14 }
 0x2af   :  { %5785 = vmatpush1.bf16.msra.mxu0 %v8260_v19 }
 0x2b0   :  { %5752 = vmatpush2.bf16.msra.mxu1 %v8257_v45  ;;  %5786 = vmatprep.subr.bf16.mxu0 %v8268_v20  ;;  %v8326_v20 = vld [vmem:[%s11233_s2 + $0x16a8] ss:$16 sps:$4 sm:$0xff]  }
 0x2b1   :  { %5753 = vmatprep.subr.bf16.mxu1 %v8265_v26  ;;  %v8323_v26 = vld [vmem:[%s11233_s2 + $0x1428] ss:$16 sps:$4 sm:$0xff]  }
 0x2b3   :  { %5787 = vmatpush2.bf16.msra.mxu0 %v8266_v22  ;;  %v8331_v22 = vld [vmem:[%s11233_s2 + $0x140c] ss:$16 sps:$4 sm:$0xff]  }
 0x2b4   :  { %5754 = vmatpush2.bf16.msra.mxu1 %v8263_v30  ;;  %5788 = vmatprep.subr.bf16.mxu0 %v8274_v17  ;;  %v8332_v17 = vld [vmem:[%s11233_s2 + $0x1688] ss:$16 sps:$4 sm:$0xff]  }
 0x2b5   :  { %5755 = vmatprep.subr.bf16.mxu1 %v8271_v16  ;;  %v8329_v16 = vld [vmem:[%s11233_s2 + $0x1408] ss:$16 sps:$4 sm:$0xff]  }
 0x2b7   :  { %5789 = vmatpush2.bf16.msra.mxu0 %v8272_v31  ;;  %v8340_v31 = vld [vmem:[%s11233_s2 + $0x166c] ss:$16 sps:$4 sm:$0xff]  }
 0x2b8   :  { %5756 = vmatpush2.bf16.msra.mxu1 %v8269_v34  ;;  %5790 = vmatprep.subr.bf16.mxu0 %v8280_v36  ;;  %v8337_v34 = vld [vmem:[%s11233_s2 + $0x15ec] ss:$16 sps:$4 sm:$0xff]   ;;  %v8338_v36 = vld [vmem:[%s11233_s2 + $0x1668] ss:$16 sps:$4 sm:$0xff]  }
 0x2b9   :  { %5757 = vmatprep.subr.bf16.mxu1 %v8277_v35  ;;  %v8335_v35 = vld [vmem:[%s11233_s2 + $0x15e8] ss:$16 sps:$4 sm:$0xff]  }
 0x2bb   :  { %5791 = vmatpush2.bf16.msra.mxu0 %v8278_v9  ;;  %v8346_v9 = vld [vmem:[%s11233_s2 + $0x164c] ss:$16 sps:$4 sm:$0xff]  }
 0x2bc   :  { %5758 = vmatpush2.bf16.msra.mxu1 %v8275_v40  ;;  %5792 = vmatprep.subr.bf16.mxu0 %v8286_v59  ;;  %v8343_v40 = vld [vmem:[%s11233_s2 + $0x15cc] ss:$16 sps:$4 sm:$0xff]   ;;  %v8344_v59 = vld [vmem:[%s11233_s2 + $0x1648] ss:$16 sps:$4 sm:$0xff]  }
 0x2bd   :  { %5759 = vmatprep.subr.bf16.mxu1 %v8283_v43  ;;  %v8341_v43 = vld [vmem:[%s11233_s2 + $0x15c8] ss:$16 sps:$4 sm:$0xff]  }
 0x2bf   :  { %5793 = vmatpush2.bf16.msra.mxu0 %v8284_v6  ;;  %v8352_v6 = vld [vmem:[%s11233_s2 + $0x162c] ss:$16 sps:$4 sm:$0xff]  }
 0x2c0   :  { %5760 = vmatpush2.bf16.msra.mxu1 %v8281_v29  ;;  %5794 = vmatprep.subr.bf16.mxu0 %v8289_v51  ;;  %v8349_v29 = vld [vmem:[%s11233_s2 + $0x15ac] ss:$16 sps:$4 sm:$0xff]   ;;  %v8347_v51 = vld [vmem:[%s11233_s2 + $0x15a8] ss:$16 sps:$4 sm:$0xff]  }
 0x2c1   :  { %5811 = vmatprep.subr.bf16.mxu1 %v8292_v52  ;;  %v8350_v52 = vld [vmem:[%s11233_s2 + $0x1628] ss:$16 sps:$4 sm:$0xff]  }
 0x2c3   :  { %v5517_v54 = vpop.f32.mrf.mxu1  ;;  %5762 = vmatmul.mubr.bf16.vlgmr.msra.gmra.mxu1 %v9617_v24  ;;  %5795 = vmatpush2.bf16.msra.mxu0 %v8287_v39  ;;  %v8304_v24 = vld [vmem:[%s11233_s2 + $0x14ac] ss:$16 sps:$4 sm:$0xff]  }
 0x2c4   :  { %v5518_v49 = vadd.f32 %v5517_v54, %v10731_v53  ;;  %5812 = vmatpush1.bf16.msra.mxu1 %v8290_v18  ;;  %5796 = vmatprep.subr.bf16.mxu0 %v8295_v42  ;;  %v8355_v39 = vld [vmem:[%s11233_s2 + $0x158c] ss:$16 sps:$4 sm:$0xff]   ;;  %v8353_v42 = vld [vmem:[%s11233_s2 + $0x1588] ss:$16 sps:$4 sm:$0xff]  }
 0x2c5   :  { %v5519_v58 = vpop.f32.mrf.mxu1  ;;  %5813 = vmatprep.subr.bf16.mxu1 %v8298_v37  ;;  %5843 = vmatprep.mubr.bf16.mxu1 %v9637_v32  ;;  %v8310_v32 = vld [vmem:[%s11233_s2 + $0x148c] ss:$16 sps:$4 sm:$0xff]   ;;  %v8356_v37 = vld [vmem:[%s11233_s2 + $0x1608] ss:$16 sps:$4 sm:$0xff]  }
 0x2c6   :  { %v5520_v53 = vadd.f32 %v5519_v58, %v10736_v0  ;;  %v8307_v0 = vld [vmem:[%s11233_s2 + $0x130c] ss:$16 sps:$4 sm:$0xff]  }
 0x2c7   :  { %v5521_v21 = vpop.f32.mrf.mxu1  ;;  %5797 = vmatpush2.bf16.msra.mxu0 %v8293_v15  ;;  %v8358_v18 = vld [vmem:[%s11233_s2 + $0x160c] ss:$16 sps:$4 sm:$0xff]   ;;  %v8359_v15 = vld [vmem:[%s11233_s2 + $0x1568] ss:$16 sps:$4 sm:$0xff]  }
 0x2c8   :  { %5814 = vmatpush1.bf16.msra.mxu1 %v8296_v55  ;;  %5798 = vmatprep.subr.bf16.mxu0 %v8301_v27  ;;  %v8361_v54 = vld [vmem:[%s11233_s2 + $0x156c] ss:$16 sps:$4 sm:$0xff]   ;;  %v8362_v55 = vld [vmem:[%s11233_s2 + $0x17e8] ss:$16 sps:$4 sm:$0xff]  }
 0x2c9   :  { %v5522_v23 = vpop.f32.mrf.mxu1  ;;  %5815 = vmatprep.subr.bf16.mxu1 %v8304_v24  ;;  %v8367_v58 = vld [vmem:[%s11233_s2 + $0x154c] ss:$16 sps:$4 sm:$0xff]   ;;  %v8365_v24 = vld [vmem:[%s11233_s2 + $0x1548] ss:$16 sps:$4 sm:$0xff]  }
 0x2ca   :  { %v8370_v27 = vld [vmem:[%s11233_s2 + $0x17cc] ss:$16 sps:$4 sm:$0xff]   ;;  %v8374_v23 = vld [vmem:[%s11233_s2 + $0x17a8] ss:$16 sps:$4 sm:$0xff]  }
 0x2cb   :  { %5799 = vmatpush2.bf16.msra.mxu0 %v8299_v4  ;;  %v8373_v21 = vld [vmem:[%s11233_s2 + $0x152c] ss:$16 sps:$4 sm:$0xff]  }
 0x2cc   :  { %5816 = vmatpush1.bf16.msra.mxu1 %v8302_v61  ;;  %5800 = vmatprep.subr.bf16.mxu0 %v8307_v0  ;;  %v8376_v4 = vld [vmem:[%s11233_s2 + $0x17ac] ss:$16 sps:$4 sm:$0xff]   ;;  %v8371_v61 = vld [vmem:[%s11233_s2 + $0x1528] ss:$16 sps:$4 sm:$0xff]  }
 0x2cd   :  { %5817 = vmatprep.subr.bf16.mxu1 %v8310_v32  ;;  %v8379_v0 = vld [vmem:[%s11233_s2 + $0x150c] ss:$16 sps:$4 sm:$0xff]  }
 0x2ce   :  { %v8382_v32 = vld [vmem:[%s11233_s2 + $0x178c] ss:$16 sps:$4 sm:$0xff]  }
 0x2cf   :  { %5801 = vmatpush2.bf16.msra.mxu0 %v8305_v47  ;;  %v8377_v47 = vld [vmem:[%s11233_s2 + $0x1508] ss:$16 sps:$4 sm:$0xff]  }
 0x2d0   :  { %5818 = vmatpush1.bf16.msra.mxu1 %v8308_v62  ;;  %5852 = vmatprep.subr.bf16.mxu0 %v8316_v60  ;;  %v8380_v62 = vld [vmem:[%s11233_s2 + $0x1788] ss:$16 sps:$4 sm:$0xff]   ;;  %v8388_v60 = vld [vmem:[%s11233_s2 + $0x186c] ss:$16 sps:$4 sm:$0xff]  }
 0x2d1   :  { %5819 = vmatprep.subr.bf16.mxu1 %v8313_v2  ;;  %v8385_v2 = vld [vmem:[%s11233_s2 + $0x176c] ss:$16 sps:$4 sm:$0xff]  }
 0x2d2   :  { %v5558_v10 = vpop.f32.mrf.mxu0  ;;  %5803 = vmatmul.mubr.bf16.vlgmr.msra.gmra.mxu0 %v9621_v25  ;;  %v8328_v25 = vld [vmem:[%s11233_s2 + $0x16ac] ss:$16 sps:$4 sm:$0xff]  }
 0x2d3   :  { %v10924_v11 = vadd.f32 %v5558_v10, %v5518_v49  ;;  %5853 = vmatpush1.bf16.msra.mxu0 %v8314_v28  ;;  %5884 = vmatprep.mubr.bf16.mxu0 %v9641_v33  ;;  %v8334_v33 = vld [vmem:[%s11233_s2 + $0x168c] ss:$16 sps:$4 sm:$0xff]   ;;  %v8386_v28 = vld [vmem:[%s11233_s2 + $0x1868] ss:$16 sps:$4 sm:$0xff]  }
 0x2d4   :  { %5820 = vmatpush1.bf16.msra.mxu1 %v8311_v56  ;;  %v5560_v14 = vpop.f32.mrf.mxu0  ;;  %5854 = vmatprep.subr.bf16.mxu0 %v8322_v44  ;;  %v8364_v49 = vld [vmem:[%s11233_s2 + $0x17ec] ss:$16 sps:$4 sm:$0xff]   ;;  %v8383_v56 = vld [vmem:[%s11233_s2 + $0x1768] ss:$16 sps:$4 sm:$0xff]  }
 0x2d5   :  { %5821 = vmatprep.subr.bf16.mxu1 %v8319_v48  ;;  %v10938_v45 = vadd.f32 %v5560_v14, %v5520_v53  ;;  %v8368_v53 = vld [vmem:[%s11233_s2 + $0x17c8] ss:$16 sps:$4 sm:$0xff]   ;;  %v8391_v48 = vld [vmem:[%s11233_s2 + $0x174c] ss:$16 sps:$4 sm:$0xff]  }
 0x2d6   :  { %v5562_v19 = vpop.f32.mrf.mxu0  ;;  %v8394_v44 = vld [vmem:[%s11233_s2 + $0x184c] ss:$16 sps:$4 sm:$0xff]   ;;  %v8392_v14 = vld [vmem:[%s11233_s2 + $0x1848] ss:$16 sps:$4 sm:$0xff]  }
 0x2d7   :  { %5855 = vmatpush1.bf16.msra.mxu0 %v8320_v3  ;;  %v8389_v3 = vld [vmem:[%s11233_s2 + $0x1748] ss:$16 sps:$4 sm:$0xff]  }
 0x2d8   :  { %5822 = vmatpush1.bf16.msra.mxu1 %v8317_v12  ;;  %v5563_v30 = vpop.f32.mrf.mxu0  ;;  %5856 = vmatprep.subr.bf16.mxu0 %v8328_v25 }
 0x2d9   :  { %5823 = vmatprep.subr.bf16.mxu1 %v8325_v50  ;;  %v11084_v50 = vld [vmem:[%s11238_s4] sm:$0xf]  ;;  %v8395_v30 = vld [vmem:[%s11233_s2 + $0x1728] ss:$16 sps:$4 sm:$0xff]  }
 0x2da   :  { %v5943_v19 = vrot.slane %v11084_v50, %v839_v1  ;;  %v8403_v1 = vld [vmem:[%s11233_s2 + $0x170c] ss:$16 sps:$4 sm:$0xff]  }
 0x2db   :  { %5857 = vmatpush1.bf16.msra.mxu0 %v8326_v20 }
 0x2dc   :  { %5824 = vmatpush1.bf16.msra.mxu1 %v8323_v26  ;;  %5858 = vmatprep.subr.bf16.mxu0 %v8334_v33 }
 0x2dd   :  { %5825 = vmatprep.subr.bf16.mxu1 %v8331_v22  ;;  %v8398_v22 = vld [vmem:[%s11233_s2 + $0x1828] ss:$16 sps:$4 sm:$0xff]  }
 0x2df   :  { %5859 = vmatpush1.bf16.msra.mxu0 %v8332_v17  ;;  %v8404_v17 = vld [vmem:[%s11233_s2 + $0x1808] ss:$16 sps:$4 sm:$0xff]  }
 0x2e0   :  { %5826 = vmatpush1.bf16.msra.mxu1 %v8329_v16  ;;  %5860 = vmatprep.subr.bf16.mxu0 %v8340_v31  ;;  %v8401_v16 = vld [vmem:[%s11233_s2 + $0x1708] ss:$16 sps:$4 sm:$0xff]  }
 0x2e1   :  { %5827 = vmatprep.subr.bf16.mxu1 %v8337_v34  ;;  %v8407_v34 = vld [vmem:[%s11237_s5 + $0x78] sm:$0xff]  }
 0x2e3   :  { %5861 = vmatpush1.bf16.msra.mxu0 %v8338_v36 }
 0x2e4   :  { %5828 = vmatpush2.bf16.msra.mxu1 %v8335_v35  ;;  %5862 = vmatprep.subr.bf16.mxu0 %v8346_v9  ;;  %v8409_v35 = vld [vmem:[%s11237_s5 + $0x70] sm:$0xff]   ;;  %v8440_v9 = vld [vmem:[%s11234_s0 + $0x60] ss:$0 sps:$4 sm:$0xff]  }
 0x2e5   :  { %5829 = vmatprep.subr.bf16.mxu1 %v8343_v40 }
 0x2e7   :  { %5863 = vmatpush1.bf16.msra.mxu0 %v8344_v59  ;;  %v8410_v59 = vld [vmem:[%s11237_s5 + $0x30] sm:$0xff]  }
 0x2e8   :  { %5830 = vmatpush2.bf16.msra.mxu1 %v8341_v43  ;;  %5864 = vmatprep.subr.bf16.mxu0 %v8352_v6  ;;  %v8411_v6 = vld [vmem:[%s11237_s5 + $0x68] sm:$0xff]  }
 0x2e9   :  { %5831 = vmatprep.subr.bf16.mxu1 %v8349_v29 }
 0x2eb   :  { %5865 = vmatpush1.bf16.msra.mxu0 %v8350_v52  ;;  %v8412_v52 = vld [vmem:[%s11237_s5 + $0x28] sm:$0xff]  }
 0x2ec   :  { %5832 = vmatpush2.bf16.msra.mxu1 %v8347_v51  ;;  %5866 = vmatprep.subr.bf16.mxu0 %v8358_v18  ;;  %v8413_v18 = vld [vmem:[%s11237_s5 + $0x60] sm:$0xff]  }
 0x2ed   :  { %5833 = vmatprep.subr.bf16.mxu1 %v8355_v39 }
 0x2ef   :  { %5867 = vmatpush1.bf16.msra.mxu0 %v8356_v37  ;;  %v8424_v37 = vld [vmem:[%s11237_s5 + $0xb8] sm:$0xff]  }
 0x2f0   :  { %5834 = vmatpush2.bf16.msra.mxu1 %v8353_v42  ;;  %5868 = vmatprep.subr.bf16.mxu0 %v8364_v49  ;;  %v8423_v42 = vld [vmem:[%s11237_s5 + $0xf8] sm:$0xff]  }
 0x2f1   :  { %5835 = vmatprep.subr.bf16.mxu1 %v8361_v54  ;;  %v8414_v54 = vld [vmem:[%s11237_s5 + $0x20] sm:$0xff]   ;;  %v8415_v49 = vld [vmem:[%s11237_s5 + $0x58] sm:$0xff]  }
 0x2f3   :  { %5869 = vmatpush2.bf16.msra.mxu0 %v8362_v55  ;;  %v8417_v55 = vld [vmem:[%s11237_s5 + $0x50] sm:$0xff]  }
 0x2f4   :  { %5836 = vmatpush2.bf16.msra.mxu1 %v8359_v15  ;;  %5870 = vmatprep.subr.bf16.mxu0 %v8370_v27  ;;  %v8416_v15 = vld [vmem:[%s11237_s5 + $0x18] sm:$0xff]   ;;  %v5939_v27 = vrot.slane %v11084_v50, %v835_v63  ;;  %v8422_v63 = vld [vmem:[%s11237_s5] sm:$0xff]  }
 0x2f5   :  { %5837 = vmatprep.subr.bf16.mxu1 %v8367_v58  ;;  %v8418_v58 = vld [vmem:[%s11237_s5 + $0x10] sm:$0xff]  }
 0x2f7   :  { %5871 = vmatpush2.bf16.msra.mxu0 %v8368_v53  ;;  %v8420_v53 = vld [vmem:[%s11237_s5 + $0x8] sm:$0xff]  }
 0x2f8   :  { %5838 = vmatpush2.bf16.msra.mxu1 %v8365_v24  ;;  %5872 = vmatprep.subr.bf16.mxu0 %v8376_v4  ;;  %v8419_v24 = vld [vmem:[%s11237_s5 + $0x48] sm:$0xff]   ;;  %v8421_v4 = vld [vmem:[%s11237_s5 + $0x40] sm:$0xff]  }
 0x2f9   :  { %5839 = vmatprep.subr.bf16.mxu1 %v8373_v21  ;;  %v5956_v21 = vadd.f32 %v5939_v27, %v10511_v7  ;;  %v8425_v7 = vld [vmem:[%s11237_s5 + $0xf0] sm:$0xff]   ;;  %v5951_v27 = vrot.slane %v11084_v50, %v847_v38  ;;  %v7127_v38 = vld [vmem:[%s11239_s6] ss:$0 sm:$0xff] }
 0x2fb   :  { %5873 = vmatpush2.bf16.msra.mxu0 %v8374_v23 }
 0x2fc   :  { %5840 = vmatpush2.bf16.msra.mxu1 %v8371_v61  ;;  %5874 = vmatprep.subr.bf16.mxu0 %v8382_v32  ;;  %v5960_v61 = vmax.f32 %v5956_v21, 0.0 }
 0x2fd   :  { %5841 = vmatprep.subr.bf16.mxu1 %v8379_v0 }
 0x2fe   :  { %v5964_v23 = vpack.c.bf16 %v5960_v61, %v5960_v61 }
 0x2ff   :  { %5875 = vmatpush2.bf16.msra.mxu0 %v8380_v62 }
 0x300   :  { %5842 = vmatpush2.bf16.msra.mxu1 %v8377_v47  ;;  %5876 = vmatprep.subr.bf16.mxu0 %v8385_v2  ;;  %v8426_v47 = vld [vmem:[%s11237_s5 + $0xb0] sm:$0xff]  }
 0x301   :  { %5901 = vmatprep.subr.bf16.mxu1 %v8388_v60 }
 0x303   :  { %v5599_v10 = vpop.f32.mrf.mxu1  ;;  %5844 = vmatmul.mubr.bf16.vlgmr.msra.gmra.mxu1 %v9835_v41  ;;  %5877 = vmatpush2.bf16.msra.mxu0 %v8383_v56  ;;  %v8397_v41 = vld [vmem:[%s11233_s2 + $0x172c] ss:$16 sps:$4 sm:$0xff]  }
 0x304   :  { %v5600_v12 = vadd.f32 %v5599_v10, %v10924_v11  ;;  %5902 = vmatpush1.bf16.msra.mxu1 %v8386_v28  ;;  %5878 = vmatprep.subr.bf16.mxu0 %v8391_v48  ;;  %v8400_v11 = vld [vmem:[%s11233_s2 + $0x182c] ss:$16 sps:$4 sm:$0xff]   ;;  %v8430_v10 = vld [vmem:[%s11237_s5 + $0xa0] sm:$0xff]  }
 0x305   :  { %v5601_v25 = vpop.f32.mrf.mxu1  ;;  %5903 = vmatprep.subr.bf16.mxu1 %v8394_v44  ;;  %5925 = vmatprep.mubr.bf16.mxu1 %v8441_v8  ;;  %v8406_v8 = vld [vmem:[%s11233_s2 + $0x180c] ss:$16 sps:$4 sm:$0xff]   ;;  %v8429_v44 = vld [vmem:[%s11237_s5 + $0xe0] sm:$0xff]  }
 0x306   :  { %v5602_v26 = vadd.f32 %v5601_v25, %v10938_v45  ;;  %v5957_v45 = vadd.f32 %v5943_v19, %v10525_v5  ;;  %v8408_v5 = vld [vmem:[%s11237_s5 + $0x38] sm:$0xff]   ;;  %v8427_v56 = vld [vmem:[%s11237_s5 + $0xe8] sm:$0xff]   ;;  %v8433_v25 = vld [vmem:[%s11237_s5 + $0xd0] sm:$0xff]  }
 0x307   :  { %v5603_v20 = vpop.f32.mrf.mxu1  ;;  %5879 = vmatpush2.bf16.msra.mxu0 %v8389_v3  ;;  %v8428_v28 = vld [vmem:[%s11237_s5 + $0xa8] sm:$0xff]   ;;  %v8432_v3 = vld [vmem:[%s11237_s5 + $0x98] sm:$0xff]  }
 0x308   :  { %5904 = vmatpush1.bf16.msra.mxu1 %v8392_v14  ;;  %5880 = vmatprep.subr.bf16.mxu0 %v8397_v41  ;;  %v5961_v31 = vmax.f32 %v5957_v45, 0.0 }
 0x309   :  { %v5604_v33 = vpop.f32.mrf.mxu1  ;;  %5905 = vmatprep.subr.bf16.mxu1 %v8400_v11  ;;  %v8434_v11 = vld [vmem:[%s11237_s5 + $0x90] sm:$0xff]  }
 0x30a   :  { %v5965_v36 = vpack.c.bf16 %v5961_v31, %v5961_v31 }
 0x30b   :  { %5881 = vmatpush2.bf16.msra.mxu0 %v8395_v30  ;;  %v8435_v30 = vld [vmem:[%s11237_s5 + $0xc8] sm:$0xff]  }
 0x30c   :  { %5906 = vmatpush1.bf16.msra.mxu1 %v8398_v22  ;;  %5882 = vmatprep.subr.bf16.mxu0 %v8403_v1  ;;  %v8436_v22 = vld [vmem:[%s11237_s5 + $0x88] sm:$0xff]   ;;  %v8437_v1 = vld [vmem:[%s11237_s5 + $0xc0] sm:$0xff]  }
 0x30d   :  { %5907 = vmatprep.subr.bf16.mxu1 %v8406_v8  ;;  %v8438_v8 = vld [vmem:[%s11237_s5 + $0x80] sm:$0xff]  }
 0x30f   :  { %5883 = vmatpush2.bf16.msra.mxu0 %v8401_v16 }
 0x310   :  { %5908 = vmatpush1.bf16.msra.mxu1 %v8404_v17  ;;  %7160 = vmatprep.subr.bf16.mxu0 %v8407_v34 }
 0x311   :  { %7182 = vmatprep.subr.bf16.mxu1 %v8423_v42 }
 0x312   :  { %v5640_v40 = vpop.f32.mrf.mxu0  ;;  %5885 = vmatmul.mubr.bf16.vlgmr.msra.gmra.mxu0 %v9839_v46 }
 0x313   :  { %7126 = vmatmul.mubr.msk.bf16.vlgmr.msra.gmra.mxu1 %vm4864_vm0, %v8440_v9  ;;  %v5641_v43 = vadd.f32 %v5640_v40, %v5600_v12  ;;  %7161 = vmatpush3.bf16.msra.mxu0 %v8408_v5  ;;  %v8431_v12 = vld [vmem:[%s11237_s5 + $0xd8] sm:$0xff]  }
 0x314   :  { %6263 = vmatprep.mubr.bf16.mxu0 %v5965_v36  ;;  %v5642_v29 = vpop.f32.mrf.mxu0  ;;  %7162 = vmatprep.subr.bf16.mxu0 %v8409_v35 }
 0x315   :  { %v5643_v46 = vadd.f32 %v5642_v29, %v5602_v26  ;;  %7183 = vmatpush3.bf16.msra.mxu1 %v8424_v37 }
 0x316   :  { %v5644_v51 = vpop.f32.mrf.mxu0  ;;  %7184 = vmatprep.subr.bf16.mxu1 %v8425_v7 }
 0x317   :  { %7163 = vmatpush3.bf16.msra.mxu0 %v8410_v59 }
 0x318   :  { %v5645_v39 = vpop.f32.mrf.mxu0  ;;  %7164 = vmatprep.subr.bf16.mxu0 %v8411_v6 }
 0x319   :  { %7185 = vmatpush3.bf16.msra.mxu1 %v8426_v47 }
 0x31a   :  { %7186 = vmatprep.subr.bf16.mxu1 %v8427_v56 }
 0x31b   :  { %7165 = vmatpush3.bf16.msra.mxu0 %v8412_v52 }
 0x31c   :  { %7166 = vmatprep.subr.bf16.mxu0 %v8413_v18 }
 0x31d   :  { %7187 = vmatpush3.bf16.msra.mxu1 %v8428_v28 }
 0x31e   :  { %7188 = vmatprep.subr.bf16.mxu1 %v8429_v44 }
 0x31f   :  { %7167 = vmatpush3.bf16.msra.mxu0 %v8414_v54  ;;  %v5947_v54 = vrot.slane %v11084_v50, %v843_v13 }
 0x320   :  { %7168 = vmatprep.subr.bf16.mxu0 %v8415_v49 }
 0x321   :  { %7189 = vmatpush3.bf16.msra.mxu1 %v8430_v10 }
 0x322   :  { %7190 = vmatprep.subr.bf16.mxu1 %v8431_v12 }
 0x323   :  { %7169 = vmatpush3.bf16.msra.mxu0 %v8416_v15 }
 0x324   :  { %7170 = vmatprep.subr.bf16.mxu0 %v8417_v55 }
 0x325   :  { %7191 = vmatpush3.bf16.msra.mxu1 %v8432_v3 }
 0x326   :  { %7192 = vmatprep.subr.bf16.mxu1 %v8433_v25 }
 0x327   :  { %7171 = vmatpush3.bf16.msra.mxu0 %v8418_v58 }
 0x328   :  { %7172 = vmatprep.subr.bf16.mxu0 %v8419_v24 }
 0x329   :  { %7193 = vmatpush3.bf16.msra.mxu1 %v8434_v11 }
 0x32a   :  { %7194 = vmatprep.subr.bf16.mxu1 %v8435_v30 }
 0x32b   :  { %7173 = vmatpush3.bf16.msra.mxu0 %v8420_v53 }
 0x32c   :  { %7174 = vmatprep.subr.bf16.mxu0 %v8421_v4 }
 0x32d   :  { %7195 = vmatpush3.bf16.msra.mxu1 %v8436_v22 }
 0x32e   :  { %7196 = vmatprep.subr.bf16.mxu1 %v8437_v1 }
 0x32f   :  { %7175 = vmatpush3.bf16.msra.mxu0 %v8422_v63 }
 0x331   :  { %7197 = vmatpush3.bf16.msra.mxu1 %v8438_v8 }
 0x332   :  { %6264 = vmatmul.mubr.bf16.vlgmr.msra.gmra.mxu0 %v5964_v23 }
 0x343   :  { %v5681_v0 = vpop.f32.mrf.mxu1 }
 0x344   :  { %v5682_v32 = vadd.f32 %v5681_v0, %v5641_v43 }
 0x345   :  { %v5683_v62 = vpop.f32.mrf.mxu1 }
 0x346   :  { %v5684_v2 = vadd.f32 %v5683_v62, %v5643_v46 }
 0x347   :  { %v5685_v60 = vpop.f32.mrf.mxu1 }
 0x349   :  { %v5686_v48 = vpop.f32.mrf.mxu1 }
 0x352   :  { %v5722_v14 = vpop.f32.mrf.mxu0 }
 0x353   :  { %v5723_v41 = vadd.f32 %v5722_v14, %v5682_v32 }
 0x354   :  { %v5724_v19 = vpop.f32.mrf.mxu0 }
 0x355   :  { %v5725_v26 = vadd.f32 %v5724_v19, %v5684_v2 }
 0x356   :  { %v5726_v20 = vpop.f32.mrf.mxu0 }
 0x358   :  { %v5727_v33 = vpop.f32.mrf.mxu0 }
 0x383   :  { %v5763_v45 = vpop.f32.mrf.mxu1 }
 0x384   :  { %v5764_v16 = vadd.f32 %v5763_v45, %v5723_v41 }
 0x385   :  { %v5765_v17 = vpop.f32.mrf.mxu1 }
 0x386   :  { %v5766_v34 = vadd.f32 %v5765_v17, %v5725_v26 }
 0x387   :  { %v5767_v31 = vpop.f32.mrf.mxu1 }
 0x389   :  { %v5768_v5 = vpop.f32.mrf.mxu1 }
 0x392   :  { %v5804_v35 = vpop.f32.mrf.mxu0 }
 0x393   :  { %v5805_v46 = vadd.f32 %v5804_v35, %v5764_v16 }
 0x394   :  { %v5806_v36 = vpop.f32.mrf.mxu0 }
 0x395   :  { %v5807_v51 = vadd.f32 %v5806_v36, %v5766_v34 }
 0x396   :  { %v5808_v40 = vpop.f32.mrf.mxu0 }
 0x398   :  { %v5809_v9 = vpop.f32.mrf.mxu0 }
 0x3c3   :  { %v5845_v43 = vpop.f32.mrf.mxu1 }
 0x3c4   :  { %v5846_v52 = vadd.f32 %v5845_v43, %v5805_v46 }
 0x3c5   :  { %v5847_v59 = vpop.f32.mrf.mxu1 }
 0x3c6   :  { %v5848_v42 = vadd.f32 %v5847_v59, %v5807_v51 }
 0x3c7   :  { %v5849_v29 = vpop.f32.mrf.mxu1 }
 0x3c9   :  { %v5850_v6 = vpop.f32.mrf.mxu1 }
 0x3d2   :  { %v5886_v39 = vpop.f32.mrf.mxu0 }
 0x3d3   :  { %v5927_v18 = vpop.f32.mrf.mxu1  ;;  %v5887_v37 = vadd.f32 %v5886_v39, %v5846_v52 }
 0x3d4   :  { %v5888_v49 = vpop.f32.mrf.mxu0 }
 0x3d5   :  { %v5929_v15 = vpop.f32.mrf.mxu1  ;;  %v5928_v55 = vadd.f32 %v5927_v18, %v5887_v37  ;;  %v5889_v58 = vadd.f32 %v5888_v49, %v5848_v42 }
 0x3d6   :  { %v5890_v24 = vpop.f32.mrf.mxu0 }
 0x3d7   :  { %v5931_v53 = vpop.f32.mrf.mxu1  ;;  %v5958_v21 = vadd.f32 %v5947_v54, %v5928_v55  ;;  %v5930_v4 = vadd.f32 %v5929_v15, %v5889_v58 }
 0x3d8   :  { %v5891_v63 = vpop.f32.mrf.mxu0 }
 0x3d9   :  { %v5932_v61 = vpop.f32.mrf.mxu1  ;;  %v5959_v23 = vadd.f32 %v5951_v27, %v5930_v4  ;;  %v5962_v0 = vmax.f32 %v5958_v21, 0.0 }
 0x3db   :  { %v5963_v7 = vmax.f32 %v5959_v23, 0.0  ;;  %v5966_v47 = vpack.c.bf16 %v5962_v0, %v5962_v0 }
 0x3dd   :  { %v5967_v32 = vpack.c.bf16 %v5963_v7, %v5963_v7 }
 0x3df   :  { %6303 = vmatprep.mubr.bf16.mxu1 %v5967_v32 }
 0x3e0   :  { %6304 = vmatmul.mubr.bf16.vlgmr.msra.gmra.mxu1 %v5966_v47 }
 0x3f2   :  { %v7176_v13 = vpop.f32.mrf.mxu0 }
 0x3f4   :  { %v7177_v62 = vpop.f32.mrf.mxu0 }
 0x3f5   :  { %v7178_v2 = vadd.f32 %v7177_v62, %v7176_v13 }
 0x3f6   :  { %v7179_v60 = vpop.f32.mrf.mxu0 }
 0x3f7   :  { %v6266_v28 = vadd.f32 %v7178_v2, %v7127_v38 }
 0x3f8   :  { %v7180_v57 = vpop.f32.mrf.mxu0 }
 0x4a0   :  { %v7198_v50 = vpop.f32.mrf.mxu1 }
 0x4a2   :  { %v7199_v56 = vpop.f32.mrf.mxu1 }
 0x4a3   :  { %v7200_v48 = vadd.f32 %v7199_v56, %v7198_v50 }
 0x4a4   :  { %v7201_v44 = vpop.f32.mrf.mxu1 }
 0x4a5   :  { %v6306_v10 = vadd.f32 %v7200_v48, %v6266_v28 }
 0x4a6   :  { %v7202_v12 = vpop.f32.mrf.mxu1 }
 0x4a7   :  { %6311 = vst [vmem:[%s11240_s7] sm:$0xff] %v6306_v10 }

</bundles_post_ra>
